<compile_context>
chip_gen: v7x
topology: tpu7x:2x2x1
jax: 0.10.0
libtpu: 0.0.40
codegen_flags: <defaults>
</compile_context>

<pallas_src>
import jax
import jax.numpy as jnp
from jax.experimental import pallas as pl
from jax.experimental.pallas import tpu as pltpu

_EPS = 1e-5  # PyTorch InstanceNorm2d default eps


def _reflect_pad_into(pad_ref, a):
    """Write ReflectionPad2d(1) of `a` (H, W, C) into pad_ref (H+2, W+2, C), casting."""
    H, W, _ = a.shape
    ab = a.astype(pad_ref.dtype)
    pad_ref[1:H + 1, 1:W + 1, :] = ab                       # interior
    pad_ref[0:1, 1:W + 1, :] = ab[1:2]                      # top halo    = row 1
    pad_ref[H + 1:H + 2, 1:W + 1, :] = ab[H - 2:H - 1]      # bottom halo = row H-2
    # Left/right halos: read back the just-written columns so the corners get the
    # double reflection (matches nn.ReflectionPad2d exactly).
    pad_ref[:, 0:1, :] = pad_ref[:, 2:3, :]
    pad_ref[:, W + 1:W + 2, :] = pad_ref[:, W - 1:W, :]


def _conv3x3(pad_ref, w, H, W, C):
    """3x3 valid conv of the padded scratch with w (3, 3, C, C) -> (H*W, C) f32 acc."""
    # Three dx-shifted, row-flattened bf16 copies (one relayout each instead of 9
    # strided reshapes); every (dy, dx) tap below is a pure row slice into the MXU.
    cols = [pad_ref[:, dx:dx + W, :].reshape((H + 2) * W, C) for dx in range(3)]
    acc = jnp.zeros((H * W, C), jnp.float32)
    for dy in range(3):
        for dx in range(3):
            lhs = cols[dx][dy * W:dy * W + H * W]           # (H*W, C) bf16
            acc = acc + jnp.dot(lhs, w[dy, dx],
                                preferred_element_type=jnp.float32)
    return acc


def _instance_norm(acc, n_pix):
    """Per-channel instance norm over axis 0; single-pass moments, biased variance."""
    inv_n = 1.0 / float(n_pix)
    s1 = jnp.sum(acc, axis=0, keepdims=True)
    s2 = jnp.sum(acc * acc, axis=0, keepdims=True)
    mean = s1 * inv_n
    var = jnp.maximum(s2 * inv_n - mean * mean, 0.0)
    return (acc - mean) * jax.lax.rsqrt(var + _EPS)


def resnet_block_kernel(x_ref, w1_ref, w2_ref, out_ref, pad_ref):
    _, H, W, C = x_ref.shape
    x = x_ref[0]                                            # (H, W, C) f32
    w1 = w1_ref[...]                                        # (3, 3, C, C) bf16, resident
    w2 = w2_ref[...]

    # Stage 1: reflect-pad -> conv3x3 -> InstanceNorm -> ReLU (all in VMEM).
    _reflect_pad_into(pad_ref, x)
    y1 = jnp.maximum(_instance_norm(_conv3x3(pad_ref, w1, H, W, C), H * W), 0.0)

    # Stage 2: reflect-pad(y1) -> conv3x3 -> InstanceNorm -> + residual.
    _reflect_pad_into(pad_ref, y1.reshape(H, W, C))
    y2 = _instance_norm(_conv3x3(pad_ref, w2, H, W, C), H * W)
    out_ref[0] = (x + y2.reshape(H, W, C)).astype(out_ref.dtype)


@jax.jit
def resnet_block_forward(x_nchw, w1, b1, w2, b2):
    """ResnetBlock forward. x_nchw: (N, C, H, W) f32; w*: (3, 3, Cin, Cout) HWIO; b*: (C,).

    Biases are accepted for parity with Conv2d(bias=True) but are unused: a per-channel
    constant bias is cancelled exactly by InstanceNorm's mean subtraction.
    """
    del b1, b2
    x = jnp.transpose(x_nchw, (0, 2, 3, 1)).astype(jnp.float32)   # NHWC
    N, H, W, C = x.shape
    w1b = w1.astype(jnp.bfloat16)
    w2b = w2.astype(jnp.bfloat16)

    # TODO(synk): for large H*W / C (v7x: 64 MiB VMEM, 2 TCs), tile H with a halo and a
    # two-pass InstanceNorm (accumulate sum/sumsq over an 'arbitrary' grid axis); the
    # whole-image-per-step block below targets small/medium images.
    # TODO(synk): tiny C (e.g. 4) leaves the lane axis / MXU mostly idle; pad C to 128
    # or repack to a lane-dense layout if small channel counts are a real use case.
    vmem_est = (
        4 * H * W * C * 4                       # x/out blocks, double-buffered
        + 2 * 9 * C * C * 2                     # resident bf16 weights
        + (H + 2) * (W + 2) * C * 2             # padded bf16 scratch
        + 3 * (H + 2) * W * C * 2               # dx-shifted bf16 copies
        + 6 * H * W * C * 4                     # acc / y1 / temporaries headroom
    )
    vmem_limit = int(min(max(2 * vmem_est, 8 << 20), 48 << 20))

    out = pl.pallas_call(
        resnet_block_kernel,
        out_shape=jax.ShapeDtypeStruct((N, H, W, C), jnp.float32),
        grid=(N,),
        in_specs=[
            pl.BlockSpec((1, H, W, C), lambda n: (n, 0, 0, 0)),
            pl.BlockSpec((3, 3, C, C), lambda n: (0, 0, 0, 0)),   # weights stay resident
            pl.BlockSpec((3, 3, C, C), lambda n: (0, 0, 0, 0)),
        ],
        out_specs=pl.BlockSpec((1, H, W, C), lambda n: (n, 0, 0, 0)),
        scratch_shapes=[pltpu.VMEM((H + 2, W + 2, C), jnp.bfloat16)],
        compiler_params=pltpu.CompilerParams(
            dimension_semantics=("parallel",),
            vmem_limit_bytes=vmem_limit),
    )(x, w1b, w2b)
    return jnp.transpose(out, (0, 3, 1, 2))                       # back to NCHW


# ------------------------------ references (pure JAX) ------------------------------
def _conv_in(x_nhwc, w, b, *, cast_bf16):
    xpad = jnp.pad(x_nhwc, ((0, 0), (1, 1), (1, 1), (0, 0)), mode="reflect")
    if cast_bf16:
        xpad = xpad.astype(jnp.bfloat16)
        w = w.astype(jnp.bfloat16)
    y = jax.lax.conv_general_dilated(
        xpad, w, window_strides=(1, 1), padding="VALID",
        dimension_numbers=("NHWC", "HWIO", "NHWC"),
        preferred_element_type=jnp.float32)
    if b is not None:
        y = y + b
    mean = jnp.mean(y, axis=(1, 2), keepdims=True)
    var = jnp.mean((y - mean) ** 2, axis=(1, 2), keepdims=True)
    return (y - mean) * jax.lax.rsqrt(var + _EPS)


def _ref_forward(x_nchw, w1, b1, w2, b2, *, cast_bf16):
    x = jnp.transpose(x_nchw, (0, 2, 3, 1)).astype(jnp.float32)
    y1 = jnp.maximum(_conv_in(x, w1, b1, cast_bf16=cast_bf16), 0.0)
    y2 = _conv_in(y1, w2, b2, cast_bf16=cast_bf16)
    return jnp.transpose(x + y2, (0, 3, 1, 2))


if __name__ == "__main__":
    key = jax.random.PRNGKey(0)
    k_x, k_w1, k_b1, k_w2, k_b2 = jax.random.split(key, 5)

    N, C, H, W = 2, 4, 16, 16
    x = jax.random.normal(k_x, (N, C, H, W), dtype=jnp.float32)

    # Conv2d(dim, dim, 3, bias=True) params in HWIO layout, fan_in-scaled init.
    fan_in = C * 3 * 3
    scale = 1.0 / jnp.sqrt(jnp.float32(fan_in))
    w1 = jax.random.uniform(k_w1, (3, 3, C, C), jnp.float32, -scale, scale)
    b1 = jax.random.uniform(k_b1, (C,), jnp.float32, -scale, scale)
    w2 = jax.random.uniform(k_w2, (3, 3, C, C), jnp.float32, -scale, scale)
    b2 = jax.random.uniform(k_b2, (C,), jnp.float32, -scale, scale)

    out = resnet_block_forward(x, w1, b1, w2, b2)
    jax.block_until_ready(out)
    assert out.shape == (N, C, H, W)

    # Tight check vs. a reference mirroring the kernel math exactly (bf16 conv inputs,
    # f32 accumulation, bias dropped -- it cancels inside InstanceNorm).
    ref_bf16 = _ref_forward(x, w1, None, w2, None, cast_bf16=True)
    err_b = float(jnp.max(jnp.abs(out - ref_bf16)))
    assert jnp.allclose(out, ref_bf16, atol=5e-3, rtol=5e-3), (
        f"mismatch vs bf16-matmul reference (max abs err {err_b})")

    # Sanity bound vs. the exact f32 module semantics (bias included); the only
    # difference is bf16 quantization of the MXU inputs.
    ref_f32 = _ref_forward(x, w1, b1, w2, b2, cast_bf16=False)
    err_f = float(jnp.max(jnp.abs(out - ref_f32)))
    assert jnp.allclose(out, ref_f32, atol=1e-1, rtol=1e-1), (
        f"deviation from f32 module exceeds bf16 quantization bound (max abs err {err_f})")

    print("KERNEL_OK")
</pallas_src>

<mosaic_0001>
module attributes {stable_mosaic.version = 11 : i64} {
  func.func @resnet_block_kernel(%arg0: i32, %arg1: memref<1x16x16x4xf32, #tpu.memory_space<vmem>>, %arg2: memref<3x3x4x4xbf16, #tpu.memory_space<vmem>>, %arg3: memref<3x3x4x4xbf16, #tpu.memory_space<vmem>>, %arg4: memref<1x16x16x4xf32, #tpu.memory_space<vmem>>, %arg5: memref<18x18x4xbf16, #tpu.memory_space<vmem>>) attributes {dimension_semantics = [#tpu.dimension_semantics<parallel>], iteration_bounds = array<i64: 2>, scalar_prefetch = 0 : i64, scratch_operands = 1 : i64, tpu.core_type = #tpu.core_type<tc>, window_params = [{transform_indices = @transform_0, window_bounds = array<i64: 1, 16, 16, 4>}, {pipeline_mode = #tpu.pipeline_mode<synchronous>, transform_indices = @transform_1, window_bounds = array<i64: 3, 3, 4, 4>}, {pipeline_mode = #tpu.pipeline_mode<synchronous>, transform_indices = @transform_2, window_bounds = array<i64: 3, 3, 4, 4>}, {transform_indices = @transform_3, window_bounds = array<i64: 1, 16, 16, 4>}]} {
    %c0 = arith.constant 0 : index
    %c0_0 = arith.constant 0 : index
    %c0_1 = arith.constant 0 : index
    %c0_2 = arith.constant 0 : index
    %0 = vector.load %arg1[%c0, %c0_0, %c0_1, %c0_2] : memref<1x16x16x4xf32, #tpu.memory_space<vmem>>, vector<1x16x16x4xf32>
    %1 = vector.shape_cast %0 : vector<1x16x16x4xf32> to vector<16x16x4xf32>
    %c0_3 = arith.constant 0 : index
    %c0_4 = arith.constant 0 : index
    %c0_5 = arith.constant 0 : index
    %c0_6 = arith.constant 0 : index
    %2 = vector.load %arg2[%c0_3, %c0_4, %c0_5, %c0_6] : memref<3x3x4x4xbf16, #tpu.memory_space<vmem>>, vector<3x3x4x4xbf16>
    %c0_7 = arith.constant 0 : index
    %c0_8 = arith.constant 0 : index
    %c0_9 = arith.constant 0 : index
    %c0_10 = arith.constant 0 : index
    %3 = vector.load %arg3[%c0_7, %c0_8, %c0_9, %c0_10] : memref<3x3x4x4xbf16, #tpu.memory_space<vmem>>, vector<3x3x4x4xbf16>
    %4 = arith.truncf %1 : vector<16x16x4xf32> to vector<16x16x4xbf16>
    %c1 = arith.constant 1 : index
    %c1_11 = arith.constant 1 : index
    %c0_12 = arith.constant 0 : index
    %5 = vector.load %arg5[%c1, %c1_11, %c0_12] : memref<18x18x4xbf16, #tpu.memory_space<vmem>>, vector<16x16x4xbf16>
    tpu.vector_store %arg5[%c1, %c1_11, %c0_12], %4 {strides = array<i32>} : memref<18x18x4xbf16, #tpu.memory_space<vmem>>, vector<16x16x4xbf16>,
    %6 = vector.extract_strided_slice %4 {offsets = [1, 0, 0], sizes = [1, 16, 4], strides = [1, 1, 1]} : vector<16x16x4xbf16> to vector<1x16x4xbf16>
    %c0_13 = arith.constant 0 : index
    %c1_14 = arith.constant 1 : index
    %c0_15 = arith.constant 0 : index
    %7 = vector.load %arg5[%c0_13, %c1_14, %c0_15] : memref<18x18x4xbf16, #tpu.memory_space<vmem>>, vector<1x16x4xbf16>
    tpu.vector_store %arg5[%c0_13, %c1_14, %c0_15], %6 {strides = array<i32>} : memref<18x18x4xbf16, #tpu.memory_space<vmem>>, vector<1x16x4xbf16>,
    %8 = vector.extract_strided_slice %4 {offsets = [14, 0, 0], sizes = [1, 16, 4], strides = [1, 1, 1]} : vector<16x16x4xbf16> to vector<1x16x4xbf16>
    %c17 = arith.constant 17 : index
    %c1_16 = arith.constant 1 : index
    %c0_17 = arith.constant 0 : index
    %9 = vector.load %arg5[%c17, %c1_16, %c0_17] : memref<18x18x4xbf16, #tpu.memory_space<vmem>>, vector<1x16x4xbf16>
    tpu.vector_store %arg5[%c17, %c1_16, %c0_17], %8 {strides = array<i32>} : memref<18x18x4xbf16, #tpu.memory_space<vmem>>, vector<1x16x4xbf16>,
    %c0_18 = arith.constant 0 : index
    %c2 = arith.constant 2 : index
    %c0_19 = arith.constant 0 : index
    %10 = vector.load %arg5[%c0_18, %c2, %c0_19] : memref<18x18x4xbf16, #tpu.memory_space<vmem>>, vector<18x1x4xbf16>
    %c0_20 = arith.constant 0 : index
    %c0_21 = arith.constant 0 : index
    %c0_22 = arith.constant 0 : index
    %11 = vector.load %arg5[%c0_20, %c0_21, %c0_22] : memref<18x18x4xbf16, #tpu.memory_space<vmem>>, vector<18x1x4xbf16>
    tpu.vector_store %arg5[%c0_20, %c0_21, %c0_22], %10 {strides = array<i32>} : memref<18x18x4xbf16, #tpu.memory_space<vmem>>, vector<18x1x4xbf16>,
    %c0_23 = arith.constant 0 : index
    %c15 = arith.constant 15 : index
    %c0_24 = arith.constant 0 : index
    %12 = vector.load %arg5[%c0_23, %c15, %c0_24] : memref<18x18x4xbf16, #tpu.memory_space<vmem>>, vector<18x1x4xbf16>
    %c0_25 = arith.constant 0 : index
    %c17_26 = arith.constant 17 : index
    %c0_27 = arith.constant 0 : index
    %13 = vector.load %arg5[%c0_25, %c17_26, %c0_27] : memref<18x18x4xbf16, #tpu.memory_space<vmem>>, vector<18x1x4xbf16>
    tpu.vector_store %arg5[%c0_25, %c17_26, %c0_27], %12 {strides = array<i32>} : memref<18x18x4xbf16, #tpu.memory_space<vmem>>, vector<18x1x4xbf16>,
    %c0_28 = arith.constant 0 : index
    %c0_29 = arith.constant 0 : index
    %c0_30 = arith.constant 0 : index
    %14 = vector.load %arg5[%c0_28, %c0_29, %c0_30] : memref<18x18x4xbf16, #tpu.memory_space<vmem>>, vector<18x16x4xbf16>
    %15 = vector.shape_cast %14 : vector<18x16x4xbf16> to vector<288x4xbf16>
    %c0_31 = arith.constant 0 : index
    %c1_32 = arith.constant 1 : index
    %c0_33 = arith.constant 0 : index
    %16 = vector.load %arg5[%c0_31, %c1_32, %c0_33] : memref<18x18x4xbf16, #tpu.memory_space<vmem>>, vector<18x16x4xbf16>
    %17 = vector.shape_cast %16 : vector<18x16x4xbf16> to vector<288x4xbf16>
    %c0_34 = arith.constant 0 : index
    %c2_35 = arith.constant 2 : index
    %c0_36 = arith.constant 0 : index
    %18 = vector.load %arg5[%c0_34, %c2_35, %c0_36] : memref<18x18x4xbf16, #tpu.memory_space<vmem>>, vector<18x16x4xbf16>
    %19 = vector.shape_cast %18 : vector<18x16x4xbf16> to vector<288x4xbf16>
    %cst = arith.constant 0.000000e+00 : f32
    %20 = vector.broadcast %cst : f32 to vector<256x4xf32>
    %21 = vector.extract_strided_slice %15 {offsets = [0, 0], sizes = [256, 4], strides = [1, 1]} : vector<288x4xbf16> to vector<256x4xbf16>
    %22 = vector.extract_strided_slice %2 {offsets = [0, 0, 0, 0], sizes = [1, 1, 4, 4], strides = [1, 1, 1, 1]} : vector<3x3x4x4xbf16> to vector<1x1x4x4xbf16>
    %23 = vector.shape_cast %22 : vector<1x1x4x4xbf16> to vector<4x4xbf16>
    %cst_37 = arith.constant dense<0.000000e+00> : vector<256x4xf32>
    %24 = tpu.matmul %21, %23, %cst_37 {dimension_numbers = #tpu.dot_dimension_numbers<[1], [0], [0], [1], [0, 0, 1, 1], [], []>} : vector<256x4xbf16>, vector<4x4xbf16>, vector<256x4xf32> -> vector<256x4xf32>
    %25 = arith.addf %20, %24 : vector<256x4xf32>
    %26 = vector.extract_strided_slice %17 {offsets = [0, 0], sizes = [256, 4], strides = [1, 1]} : vector<288x4xbf16> to vector<256x4xbf16>
    %27 = vector.extract_strided_slice %2 {offsets = [0, 1, 0, 0], sizes = [1, 1, 4, 4], strides = [1, 1, 1, 1]} : vector<3x3x4x4xbf16> to vector<1x1x4x4xbf16>
    %28 = vector.shape_cast %27 : vector<1x1x4x4xbf16> to vector<4x4xbf16>
    %cst_38 = arith.constant dense<0.000000e+00> : vector<256x4xf32>
    %29 = tpu.matmul %26, %28, %cst_38 {dimension_numbers = #tpu.dot_dimension_numbers<[1], [0], [0], [1], [0, 0, 1, 1], [], []>} : vector<256x4xbf16>, vector<4x4xbf16>, vector<256x4xf32> -> vector<256x4xf32>
    %30 = arith.addf %25, %29 : vector<256x4xf32>
    %31 = vector.extract_strided_slice %19 {offsets = [0, 0], sizes = [256, 4], strides = [1, 1]} : vector<288x4xbf16> to vector<256x4xbf16>
    %32 = vector.extract_strided_slice %2 {offsets = [0, 2, 0, 0], sizes = [1, 1, 4, 4], strides = [1, 1, 1, 1]} : vector<3x3x4x4xbf16> to vector<1x1x4x4xbf16>
    %33 = vector.shape_cast %32 : vector<1x1x4x4xbf16> to vector<4x4xbf16>
    %cst_39 = arith.constant dense<0.000000e+00> : vector<256x4xf32>
    %34 = tpu.matmul %31, %33, %cst_39 {dimension_numbers = #tpu.dot_dimension_numbers<[1], [0], [0], [1], [0, 0, 1, 1], [], []>} : vector<256x4xbf16>, vector<4x4xbf16>, vector<256x4xf32> -> vector<256x4xf32>
    %35 = arith.addf %30, %34 : vector<256x4xf32>
    %36 = vector.extract_strided_slice %15 {offsets = [16, 0], sizes = [256, 4], strides = [1, 1]} : vector<288x4xbf16> to vector<256x4xbf16>
    %37 = vector.extract_strided_slice %2 {offsets = [1, 0, 0, 0], sizes = [1, 1, 4, 4], strides = [1, 1, 1, 1]} : vector<3x3x4x4xbf16> to vector<1x1x4x4xbf16>
    %38 = vector.shape_cast %37 : vector<1x1x4x4xbf16> to vector<4x4xbf16>
    %cst_40 = arith.constant dense<0.000000e+00> : vector<256x4xf32>
    %39 = tpu.matmul %36, %38, %cst_40 {dimension_numbers = #tpu.dot_dimension_numbers<[1], [0], [0], [1], [0, 0, 1, 1], [], []>} : vector<256x4xbf16>, vector<4x4xbf16>, vector<256x4xf32> -> vector<256x4xf32>
    %40 = arith.addf %35, %39 : vector<256x4xf32>
    %41 = vector.extract_strided_slice %17 {offsets = [16, 0], sizes = [256, 4], strides = [1, 1]} : vector<288x4xbf16> to vector<256x4xbf16>
    %42 = vector.extract_strided_slice %2 {offsets = [1, 1, 0, 0], sizes = [1, 1, 4, 4], strides = [1, 1, 1, 1]} : vector<3x3x4x4xbf16> to vector<1x1x4x4xbf16>
    %43 = vector.shape_cast %42 : vector<1x1x4x4xbf16> to vector<4x4xbf16>
    %cst_41 = arith.constant dense<0.000000e+00> : vector<256x4xf32>
    %44 = tpu.matmul %41, %43, %cst_41 {dimension_numbers = #tpu.dot_dimension_numbers<[1], [0], [0], [1], [0, 0, 1, 1], [], []>} : vector<256x4xbf16>, vector<4x4xbf16>, vector<256x4xf32> -> vector<256x4xf32>
    %45 = arith.addf %40, %44 : vector<256x4xf32>
    %46 = vector.extract_strided_slice %19 {offsets = [16, 0], sizes = [256, 4], strides = [1, 1]} : vector<288x4xbf16> to vector<256x4xbf16>
    %47 = vector.extract_strided_slice %2 {offsets = [1, 2, 0, 0], sizes = [1, 1, 4, 4], strides = [1, 1, 1, 1]} : vector<3x3x4x4xbf16> to vector<1x1x4x4xbf16>
    %48 = vector.shape_cast %47 : vector<1x1x4x4xbf16> to vector<4x4xbf16>
    %cst_42 = arith.constant dense<0.000000e+00> : vector<256x4xf32>
    %49 = tpu.matmul %46, %48, %cst_42 {dimension_numbers = #tpu.dot_dimension_numbers<[1], [0], [0], [1], [0, 0, 1, 1], [], []>} : vector<256x4xbf16>, vector<4x4xbf16>, vector<256x4xf32> -> vector<256x4xf32>
    %50 = arith.addf %45, %49 : vector<256x4xf32>
    %51 = vector.extract_strided_slice %15 {offsets = [32, 0], sizes = [256, 4], strides = [1, 1]} : vector<288x4xbf16> to vector<256x4xbf16>
    %52 = vector.extract_strided_slice %2 {offsets = [2, 0, 0, 0], sizes = [1, 1, 4, 4], strides = [1, 1, 1, 1]} : vector<3x3x4x4xbf16> to vector<1x1x4x4xbf16>
    %53 = vector.shape_cast %52 : vector<1x1x4x4xbf16> to vector<4x4xbf16>
    %cst_43 = arith.constant dense<0.000000e+00> : vector<256x4xf32>
    %54 = tpu.matmul %51, %53, %cst_43 {dimension_numbers = #tpu.dot_dimension_numbers<[1], [0], [0], [1], [0, 0, 1, 1], [], []>} : vector<256x4xbf16>, vector<4x4xbf16>, vector<256x4xf32> -> vector<256x4xf32>
    %55 = arith.addf %50, %54 : vector<256x4xf32>
    %56 = vector.extract_strided_slice %17 {offsets = [32, 0], sizes = [256, 4], strides = [1, 1]} : vector<288x4xbf16> to vector<256x4xbf16>
    %57 = vector.extract_strided_slice %2 {offsets = [2, 1, 0, 0], sizes = [1, 1, 4, 4], strides = [1, 1, 1, 1]} : vector<3x3x4x4xbf16> to vector<1x1x4x4xbf16>
    %58 = vector.shape_cast %57 : vector<1x1x4x4xbf16> to vector<4x4xbf16>
    %cst_44 = arith.constant dense<0.000000e+00> : vector<256x4xf32>
    %59 = tpu.matmul %56, %58, %cst_44 {dimension_numbers = #tpu.dot_dimension_numbers<[1], [0], [0], [1], [0, 0, 1, 1], [], []>} : vector<256x4xbf16>, vector<4x4xbf16>, vector<256x4xf32> -> vector<256x4xf32>
    %60 = arith.addf %55, %59 : vector<256x4xf32>
    %61 = vector.extract_strided_slice %19 {offsets = [32, 0], sizes = [256, 4], strides = [1, 1]} : vector<288x4xbf16> to vector<256x4xbf16>
    %62 = vector.extract_strided_slice %2 {offsets = [2, 2, 0, 0], sizes = [1, 1, 4, 4], strides = [1, 1, 1, 1]} : vector<3x3x4x4xbf16> to vector<1x1x4x4xbf16>
    %63 = vector.shape_cast %62 : vector<1x1x4x4xbf16> to vector<4x4xbf16>
    %cst_45 = arith.constant dense<0.000000e+00> : vector<256x4xf32>
    %64 = tpu.matmul %61, %63, %cst_45 {dimension_numbers = #tpu.dot_dimension_numbers<[1], [0], [0], [1], [0, 0, 1, 1], [], []>} : vector<256x4xbf16>, vector<4x4xbf16>, vector<256x4xf32> -> vector<256x4xf32>
    %65 = arith.addf %60, %64 : vector<256x4xf32>
    %cst_46 = arith.constant dense<0.000000e+00> : vector<4xf32>
    %66 = vector.multi_reduction <add>, %65, %cst_46 [0] : vector<256x4xf32> to vector<4xf32>
    %67 = vector.shape_cast %66 : vector<4xf32> to vector<1x4xf32>
    %68 = arith.mulf %65, %65 : vector<256x4xf32>
    %cst_47 = arith.constant dense<0.000000e+00> : vector<4xf32>
    %69 = vector.multi_reduction <add>, %68, %cst_47 [0] : vector<256x4xf32> to vector<4xf32>
    %70 = vector.shape_cast %69 : vector<4xf32> to vector<1x4xf32>
    %cst_48 = arith.constant 3.906250e-03 : f32
    %71 = vector.broadcast %cst_48 : f32 to vector<1x4xf32>
    %72 = arith.mulf %67, %71 : vector<1x4xf32>
    %cst_49 = arith.constant 3.906250e-03 : f32
    %73 = vector.broadcast %cst_49 : f32 to vector<1x4xf32>
    %74 = arith.mulf %70, %73 : vector<1x4xf32>
    %75 = arith.mulf %72, %72 : vector<1x4xf32>
    %76 = arith.subf %74, %75 : vector<1x4xf32>
    %cst_50 = arith.constant 0.000000e+00 : f32
    %77 = vector.broadcast %cst_50 : f32 to vector<1x4xf32>
    %78 = arith.maximumf %76, %77 : vector<1x4xf32>
    %79 = vector.broadcast %72 : vector<1x4xf32> to vector<256x4xf32>
    %80 = arith.subf %65, %79 : vector<256x4xf32>
    %cst_51 = arith.constant 9.99999974E-6 : f32
    %81 = vector.broadcast %cst_51 : f32 to vector<1x4xf32>
    %82 = arith.addf %78, %81 : vector<1x4xf32>
    %83 = math.rsqrt %82 : vector<1x4xf32>
    %84 = vector.broadcast %83 : vector<1x4xf32> to vector<256x4xf32>
    %85 = arith.mulf %80, %84 : vector<256x4xf32>
    %cst_52 = arith.constant 0.000000e+00 : f32
    %86 = vector.broadcast %cst_52 : f32 to vector<256x4xf32>
    %87 = arith.maximumf %85, %86 : vector<256x4xf32>
    %88 = vector.shape_cast %87 : vector<256x4xf32> to vector<16x16x4xf32>
    %89 = arith.truncf %88 : vector<16x16x4xf32> to vector<16x16x4xbf16>
    %c1_53 = arith.constant 1 : index
    %c1_54 = arith.constant 1 : index
    %c0_55 = arith.constant 0 : index
    %90 = vector.load %arg5[%c1_53, %c1_54, %c0_55] : memref<18x18x4xbf16, #tpu.memory_space<vmem>>, vector<16x16x4xbf16>
    tpu.vector_store %arg5[%c1_53, %c1_54, %c0_55], %89 {strides = array<i32>} : memref<18x18x4xbf16, #tpu.memory_space<vmem>>, vector<16x16x4xbf16>,
    %91 = vector.extract_strided_slice %89 {offsets = [1, 0, 0], sizes = [1, 16, 4], strides = [1, 1, 1]} : vector<16x16x4xbf16> to vector<1x16x4xbf16>
    %c0_56 = arith.constant 0 : index
    %c1_57 = arith.constant 1 : index
    %c0_58 = arith.constant 0 : index
    %92 = vector.load %arg5[%c0_56, %c1_57, %c0_58] : memref<18x18x4xbf16, #tpu.memory_space<vmem>>, vector<1x16x4xbf16>
    tpu.vector_store %arg5[%c0_56, %c1_57, %c0_58], %91 {strides = array<i32>} : memref<18x18x4xbf16, #tpu.memory_space<vmem>>, vector<1x16x4xbf16>,
    %93 = vector.extract_strided_slice %89 {offsets = [14, 0, 0], sizes = [1, 16, 4], strides = [1, 1, 1]} : vector<16x16x4xbf16> to vector<1x16x4xbf16>
    %c17_59 = arith.constant 17 : index
    %c1_60 = arith.constant 1 : index
    %c0_61 = arith.constant 0 : index
    %94 = vector.load %arg5[%c17_59, %c1_60, %c0_61] : memref<18x18x4xbf16, #tpu.memory_space<vmem>>, vector<1x16x4xbf16>
    tpu.vector_store %arg5[%c17_59, %c1_60, %c0_61], %93 {strides = array<i32>} : memref<18x18x4xbf16, #tpu.memory_space<vmem>>, vector<1x16x4xbf16>,
    %c0_62 = arith.constant 0 : index
    %c2_63 = arith.constant 2 : index
    %c0_64 = arith.constant 0 : index
    %95 = vector.load %arg5[%c0_62, %c2_63, %c0_64] : memref<18x18x4xbf16, #tpu.memory_space<vmem>>, vector<18x1x4xbf16>
    %c0_65 = arith.constant 0 : index
    %c0_66 = arith.constant 0 : index
    %c0_67 = arith.constant 0 : index
    %96 = vector.load %arg5[%c0_65, %c0_66, %c0_67] : memref<18x18x4xbf16, #tpu.memory_space<vmem>>, vector<18x1x4xbf16>
    tpu.vector_store %arg5[%c0_65, %c0_66, %c0_67], %95 {strides = array<i32>} : memref<18x18x4xbf16, #tpu.memory_space<vmem>>, vector<18x1x4xbf16>,
    %c0_68 = arith.constant 0 : index
    %c15_69 = arith.constant 15 : index
    %c0_70 = arith.constant 0 : index
    %97 = vector.load %arg5[%c0_68, %c15_69, %c0_70] : memref<18x18x4xbf16, #tpu.memory_space<vmem>>, vector<18x1x4xbf16>
    %c0_71 = arith.constant 0 : index
    %c17_72 = arith.constant 17 : index
    %c0_73 = arith.constant 0 : index
    %98 = vector.load %arg5[%c0_71, %c17_72, %c0_73] : memref<18x18x4xbf16, #tpu.memory_space<vmem>>, vector<18x1x4xbf16>
    tpu.vector_store %arg5[%c0_71, %c17_72, %c0_73], %97 {strides = array<i32>} : memref<18x18x4xbf16, #tpu.memory_space<vmem>>, vector<18x1x4xbf16>,
    %c0_74 = arith.constant 0 : index
    %c0_75 = arith.constant 0 : index
    %c0_76 = arith.constant 0 : index
    %99 = vector.load %arg5[%c0_74, %c0_75, %c0_76] : memref<18x18x4xbf16, #tpu.memory_space<vmem>>, vector<18x16x4xbf16>
    %100 = vector.shape_cast %99 : vector<18x16x4xbf16> to vector<288x4xbf16>
    %c0_77 = arith.constant 0 : index
    %c1_78 = arith.constant 1 : index
    %c0_79 = arith.constant 0 : index
    %101 = vector.load %arg5[%c0_77, %c1_78, %c0_79] : memref<18x18x4xbf16, #tpu.memory_space<vmem>>, vector<18x16x4xbf16>
    %102 = vector.shape_cast %101 : vector<18x16x4xbf16> to vector<288x4xbf16>
    %c0_80 = arith.constant 0 : index
    %c2_81 = arith.constant 2 : index
    %c0_82 = arith.constant 0 : index
    %103 = vector.load %arg5[%c0_80, %c2_81, %c0_82] : memref<18x18x4xbf16, #tpu.memory_space<vmem>>, vector<18x16x4xbf16>
    %104 = vector.shape_cast %103 : vector<18x16x4xbf16> to vector<288x4xbf16>
    %cst_83 = arith.constant 0.000000e+00 : f32
    %105 = vector.broadcast %cst_83 : f32 to vector<256x4xf32>
    %106 = vector.extract_strided_slice %100 {offsets = [0, 0], sizes = [256, 4], strides = [1, 1]} : vector<288x4xbf16> to vector<256x4xbf16>
    %107 = vector.extract_strided_slice %3 {offsets = [0, 0, 0, 0], sizes = [1, 1, 4, 4], strides = [1, 1, 1, 1]} : vector<3x3x4x4xbf16> to vector<1x1x4x4xbf16>
    %108 = vector.shape_cast %107 : vector<1x1x4x4xbf16> to vector<4x4xbf16>
    %cst_84 = arith.constant dense<0.000000e+00> : vector<256x4xf32>
    %109 = tpu.matmul %106, %108, %cst_84 {dimension_numbers = #tpu.dot_dimension_numbers<[1], [0], [0], [1], [0, 0, 1, 1], [], []>} : vector<256x4xbf16>, vector<4x4xbf16>, vector<256x4xf32> -> vector<256x4xf32>
    %110 = arith.addf %105, %109 : vector<256x4xf32>
    %111 = vector.extract_strided_slice %102 {offsets = [0, 0], sizes = [256, 4], strides = [1, 1]} : vector<288x4xbf16> to vector<256x4xbf16>
    %112 = vector.extract_strided_slice %3 {offsets = [0, 1, 0, 0], sizes = [1, 1, 4, 4], strides = [1, 1, 1, 1]} : vector<3x3x4x4xbf16> to vector<1x1x4x4xbf16>
    %113 = vector.shape_cast %112 : vector<1x1x4x4xbf16> to vector<4x4xbf16>
    %cst_85 = arith.constant dense<0.000000e+00> : vector<256x4xf32>
    %114 = tpu.matmul %111, %113, %cst_85 {dimension_numbers = #tpu.dot_dimension_numbers<[1], [0], [0], [1], [0, 0, 1, 1], [], []>} : vector<256x4xbf16>, vector<4x4xbf16>, vector<256x4xf32> -> vector<256x4xf32>
    %115 = arith.addf %110, %114 : vector<256x4xf32>
    %116 = vector.extract_strided_slice %104 {offsets = [0, 0], sizes = [256, 4], strides = [1, 1]} : vector<288x4xbf16> to vector<256x4xbf16>
    %117 = vector.extract_strided_slice %3 {offsets = [0, 2, 0, 0], sizes = [1, 1, 4, 4], strides = [1, 1, 1, 1]} : vector<3x3x4x4xbf16> to vector<1x1x4x4xbf16>
    %118 = vector.shape_cast %117 : vector<1x1x4x4xbf16> to vector<4x4xbf16>
    %cst_86 = arith.constant dense<0.000000e+00> : vector<256x4xf32>
    %119 = tpu.matmul %116, %118, %cst_86 {dimension_numbers = #tpu.dot_dimension_numbers<[1], [0], [0], [1], [0, 0, 1, 1], [], []>} : vector<256x4xbf16>, vector<4x4xbf16>, vector<256x4xf32> -> vector<256x4xf32>
    %120 = arith.addf %115, %119 : vector<256x4xf32>
    %121 = vector.extract_strided_slice %100 {offsets = [16, 0], sizes = [256, 4], strides = [1, 1]} : vector<288x4xbf16> to vector<256x4xbf16>
    %122 = vector.extract_strided_slice %3 {offsets = [1, 0, 0, 0], sizes = [1, 1, 4, 4], strides = [1, 1, 1, 1]} : vector<3x3x4x4xbf16> to vector<1x1x4x4xbf16>
    %123 = vector.shape_cast %122 : vector<1x1x4x4xbf16> to vector<4x4xbf16>
    %cst_87 = arith.constant dense<0.000000e+00> : vector<256x4xf32>
    %124 = tpu.matmul %121, %123, %cst_87 {dimension_numbers = #tpu.dot_dimension_numbers<[1], [0], [0], [1], [0, 0, 1, 1], [], []>} : vector<256x4xbf16>, vector<4x4xbf16>, vector<256x4xf32> -> vector<256x4xf32>
    %125 = arith.addf %120, %124 : vector<256x4xf32>
    %126 = vector.extract_strided_slice %102 {offsets = [16, 0], sizes = [256, 4], strides = [1, 1]} : vector<288x4xbf16> to vector<256x4xbf16>
    %127 = vector.extract_strided_slice %3 {offsets = [1, 1, 0, 0], sizes = [1, 1, 4, 4], strides = [1, 1, 1, 1]} : vector<3x3x4x4xbf16> to vector<1x1x4x4xbf16>
    %128 = vector.shape_cast %127 : vector<1x1x4x4xbf16> to vector<4x4xbf16>
    %cst_88 = arith.constant dense<0.000000e+00> : vector<256x4xf32>
    %129 = tpu.matmul %126, %128, %cst_88 {dimension_numbers = #tpu.dot_dimension_numbers<[1], [0], [0], [1], [0, 0, 1, 1], [], []>} : vector<256x4xbf16>, vector<4x4xbf16>, vector<256x4xf32> -> vector<256x4xf32>
    %130 = arith.addf %125, %129 : vector<256x4xf32>
    %131 = vector.extract_strided_slice %104 {offsets = [16, 0], sizes = [256, 4], strides = [1, 1]} : vector<288x4xbf16> to vector<256x4xbf16>
    %132 = vector.extract_strided_slice %3 {offsets = [1, 2, 0, 0], sizes = [1, 1, 4, 4], strides = [1, 1, 1, 1]} : vector<3x3x4x4xbf16> to vector<1x1x4x4xbf16>
    %133 = vector.shape_cast %132 : vector<1x1x4x4xbf16> to vector<4x4xbf16>
    %cst_89 = arith.constant dense<0.000000e+00> : vector<256x4xf32>
    %134 = tpu.matmul %131, %133, %cst_89 {dimension_numbers = #tpu.dot_dimension_numbers<[1], [0], [0], [1], [0, 0, 1, 1], [], []>} : vector<256x4xbf16>, vector<4x4xbf16>, vector<256x4xf32> -> vector<256x4xf32>
    %135 = arith.addf %130, %134 : vector<256x4xf32>
    %136 = vector.extract_strided_slice %100 {offsets = [32, 0], sizes = [256, 4], strides = [1, 1]} : vector<288x4xbf16> to vector<256x4xbf16>
    %137 = vector.extract_strided_slice %3 {offsets = [2, 0, 0, 0], sizes = [1, 1, 4, 4], strides = [1, 1, 1, 1]} : vector<3x3x4x4xbf16> to vector<1x1x4x4xbf16>
    %138 = vector.shape_cast %137 : vector<1x1x4x4xbf16> to vector<4x4xbf16>
    %cst_90 = arith.constant dense<0.000000e+00> : vector<256x4xf32>
    %139 = tpu.matmul %136, %138, %cst_90 {dimension_numbers = #tpu.dot_dimension_numbers<[1], [0], [0], [1], [0, 0, 1, 1], [], []>} : vector<256x4xbf16>, vector<4x4xbf16>, vector<256x4xf32> -> vector<256x4xf32>
    %140 = arith.addf %135, %139 : vector<256x4xf32>
    %141 = vector.extract_strided_slice %102 {offsets = [32, 0], sizes = [256, 4], strides = [1, 1]} : vector<288x4xbf16> to vector<256x4xbf16>
    %142 = vector.extract_strided_slice %3 {offsets = [2, 1, 0, 0], sizes = [1, 1, 4, 4], strides = [1, 1, 1, 1]} : vector<3x3x4x4xbf16> to vector<1x1x4x4xbf16>
    %143 = vector.shape_cast %142 : vector<1x1x4x4xbf16> to vector<4x4xbf16>
    %cst_91 = arith.constant dense<0.000000e+00> : vector<256x4xf32>
    %144 = tpu.matmul %141, %143, %cst_91 {dimension_numbers = #tpu.dot_dimension_numbers<[1], [0], [0], [1], [0, 0, 1, 1], [], []>} : vector<256x4xbf16>, vector<4x4xbf16>, vector<256x4xf32> -> vector<256x4xf32>
    %145 = arith.addf %140, %144 : vector<256x4xf32>
    %146 = vector.extract_strided_slice %104 {offsets = [32, 0], sizes = [256, 4], strides = [1, 1]} : vector<288x4xbf16> to vector<256x4xbf16>
    %147 = vector.extract_strided_slice %3 {offsets = [2, 2, 0, 0], sizes = [1, 1, 4, 4], strides = [1, 1, 1, 1]} : vector<3x3x4x4xbf16> to vector<1x1x4x4xbf16>
    %148 = vector.shape_cast %147 : vector<1x1x4x4xbf16> to vector<4x4xbf16>
    %cst_92 = arith.constant dense<0.000000e+00> : vector<256x4xf32>
    %149 = tpu.matmul %146, %148, %cst_92 {dimension_numbers = #tpu.dot_dimension_numbers<[1], [0], [0], [1], [0, 0, 1, 1], [], []>} : vector<256x4xbf16>, vector<4x4xbf16>, vector<256x4xf32> -> vector<256x4xf32>
    %150 = arith.addf %145, %149 : vector<256x4xf32>
    %cst_93 = arith.constant dense<0.000000e+00> : vector<4xf32>
    %151 = vector.multi_reduction <add>, %150, %cst_93 [0] : vector<256x4xf32> to vector<4xf32>
    %152 = vector.shape_cast %151 : vector<4xf32> to vector<1x4xf32>
    %153 = arith.mulf %150, %150 : vector<256x4xf32>
    %cst_94 = arith.constant dense<0.000000e+00> : vector<4xf32>
    %154 = vector.multi_reduction <add>, %153, %cst_94 [0] : vector<256x4xf32> to vector<4xf32>
    %155 = vector.shape_cast %154 : vector<4xf32> to vector<1x4xf32>
    %cst_95 = arith.constant 3.906250e-03 : f32
    %156 = vector.broadcast %cst_95 : f32 to vector<1x4xf32>
    %157 = arith.mulf %152, %156 : vector<1x4xf32>
    %cst_96 = arith.constant 3.906250e-03 : f32
    %158 = vector.broadcast %cst_96 : f32 to vector<1x4xf32>
    %159 = arith.mulf %155, %158 : vector<1x4xf32>
    %160 = arith.mulf %157, %157 : vector<1x4xf32>
    %161 = arith.subf %159, %160 : vector<1x4xf32>
    %cst_97 = arith.constant 0.000000e+00 : f32
    %162 = vector.broadcast %cst_97 : f32 to vector<1x4xf32>
    %163 = arith.maximumf %161, %162 : vector<1x4xf32>
    %164 = vector.broadcast %157 : vector<1x4xf32> to vector<256x4xf32>
    %165 = arith.subf %150, %164 : vector<256x4xf32>
    %cst_98 = arith.constant 9.99999974E-6 : f32
    %166 = vector.broadcast %cst_98 : f32 to vector<1x4xf32>
    %167 = arith.addf %163, %166 : vector<1x4xf32>
    %168 = math.rsqrt %167 : vector<1x4xf32>
    %169 = vector.broadcast %168 : vector<1x4xf32> to vector<256x4xf32>
    %170 = arith.mulf %165, %169 : vector<256x4xf32>
    %171 = vector.shape_cast %170 : vector<256x4xf32> to vector<16x16x4xf32>
    %172 = arith.addf %1, %171 : vector<16x16x4xf32>
    %c0_99 = arith.constant 0 : index
    %c0_100 = arith.constant 0 : index
    %c0_101 = arith.constant 0 : index
    %c0_102 = arith.constant 0 : index
    %173 = vector.load %arg4[%c0_99, %c0_100, %c0_101, %c0_102] : memref<1x16x16x4xf32, #tpu.memory_space<vmem>>, vector<1x16x16x4xf32>
    %174 = vector.shape_cast %173 : vector<1x16x16x4xf32> to vector<16x16x4xf32>
    %175 = vector.shape_cast %172 : vector<16x16x4xf32> to vector<1x16x16x4xf32>
    tpu.vector_store %arg4[%c0_99, %c0_100, %c0_101, %c0_102], %175 {strides = array<i32>} : memref<1x16x16x4xf32, #tpu.memory_space<vmem>>, vector<1x16x16x4xf32>,
    return
  }
  func.func @transform_0(%arg0: i32) -> (i32, i32, i32, i32) {
    %c0_i32 = arith.constant 0 : i32
    %c0_i32_0 = arith.constant 0 : i32
    %c0_i32_1 = arith.constant 0 : i32
    %c0_i32_2 = arith.constant 0 : i32
    return %arg0, %c0_i32, %c0_i32_0, %c0_i32_1 : i32, i32, i32, i32
  }
  func.func @transform_1(%arg0: i32) -> (i32, i32, i32, i32) {
    %c0_i32 = arith.constant 0 : i32
    %c0_i32_0 = arith.constant 0 : i32
    %c0_i32_1 = arith.constant 0 : i32
    %c0_i32_2 = arith.constant 0 : i32
    %c0_i32_3 = arith.constant 0 : i32
    return %c0_i32, %c0_i32_0, %c0_i32_1, %c0_i32_2 : i32, i32, i32, i32
  }
  func.func @transform_2(%arg0: i32) -> (i32, i32, i32, i32) {
    %c0_i32 = arith.constant 0 : i32
    %c0_i32_0 = arith.constant 0 : i32
    %c0_i32_1 = arith.constant 0 : i32
    %c0_i32_2 = arith.constant 0 : i32
    %c0_i32_3 = arith.constant 0 : i32
    return %c0_i32, %c0_i32_0, %c0_i32_1, %c0_i32_2 : i32, i32, i32, i32
  }
  func.func @transform_3(%arg0: i32) -> (i32, i32, i32, i32) {
    %c0_i32 = arith.constant 0 : i32
    %c0_i32_0 = arith.constant 0 : i32
    %c0_i32_1 = arith.constant 0 : i32
    %c0_i32_2 = arith.constant 0 : i32
    return %arg0, %c0_i32, %c0_i32_0, %c0_i32_1 : i32, i32, i32, i32
  }
}

</mosaic_0001>

<bundles_post_ra>
// kernel: resnet_block_forward.1
= control target key start
LH: loop header
LB: loop body
LE: loop exit
PB: predicated region body
PF: predicated region fallthrough
CT: control target
= control target key end

     0   :  { %s10199_s12 = smov 0   ;;  %s13582_s0 = inlined_call_operand.vmem [shape: f32[2,16,16,4], index: 0, kind: input, shape index: {}]   ;;  %s13583_s1 = inlined_call_operand.vmem [shape: bf16[3,3,4,4], index: 1, kind: input, shape index: {}]   ;;  %s13584_s2 = inlined_call_operand.vmem [shape: bf16[3,3,4,4], index: 2, kind: input, shape index: {}]   ;;  %s13585_s3 = inlined_call_operand.vmem [shape: f32[2,16,16,4], index: 3, kind: output, shape index: {}]  }
   0x1 LB: > { %s7987_s13 = sadd.s32 4294967295, %s10177_s12   ;;  %p7991_p0 = scmp.ge.s32.totalorder %s10177_s12, 1  ;;  %s10177_s12 = sphi %s10199_s12, %s13_s12  }
   0x2   : > { %p137_p1 = scmp.lt.s32.totalorder %s10177_s12, 3 }
   0x4   : > { %p138_p2 = pnand %p7991_p0, %p137_p1 }
   0x6   : > { %141 = sbr.rel (%p138_p2) target bundleno = 1958 (0x7a6), region = 32 }
   0xd   : > { %v205_v0 = vld [vmem:[%s13583_s1 + $0x2] sm:$0x3]  ;;  %vm1851_vm0 = vcmask 1041408   ;;  %p161_p3 = scmp.lt.s32.totalorder %s7987_s13, 1  ;;  %v10218_v2 = vld [vmem:[%s13583_s1] sm:$0x3] }
   0xe   : > { %10062 = vmatprep.subr.msk.bf16.mxu0 %vm1851_vm0, %v205_v0  ;;  %v1853_v1 = vsel %vm1851_vm0, %v205_v0, 0  ;;  %vm318_vm1 = vsmask.f32 256  ;;  %vm319_vm2 = vsmask.f32 4368  ;;  %vm642_vm3 = vcmask 27648  }
   0xf   : > { %8939 = vmatpush3.bf16.msra.mxu0 %v1853_v1  ;;  %s13769_s13 = smov (!%p161_p3, %s7987_s13), 1  ;;  %vm643_vm4 = vsmask.f32 7938  ;;  %vm650_vm5 = vcmask 24576   ;;  %vm10236_vm6 = vmor %vm318_vm1, %vm319_vm2  ;;  %v13656_v17 = vmov 0  ;;  %v13659_v26 = vmov 0 }
  0x10   : > { %s8566_s16 = sshll.u32 %s13769_s13, 8  ;;  %10063 = vmatprep.subr.msk.bf16.mxu0 %vm1851_vm0, %v10218_v2  ;;  %v13657_v17 = vsel %vm10236_vm6, 4294967295, %v13656_v17  ;;  %vm10244_vm7 = vmand %vm642_vm3, %vm643_vm4  ;;  %v760_v27 = vld [vmem:[#allocation2] sm:$0xf]  ;;  %v764_v28 = vld [vmem:[#allocation2 + $0x8] sm:$0x1] }
  0x11   : > { %s10225_s21 = scalar_lea.vmem %s13582_s0, %s8566_s16  ;;  %13658 = vst [vmem:[#allocation3_spill] sm:$0xff] %v13657_v17  ;;  %v13660_v26 = vsel %vm10244_vm7, 4294967295, %v13659_v26  ;;  %vm10250_vm8 = vmand %vm650_vm5, %vm318_vm1  ;;  %v645_v34 = vld [vmem:[#allocation2 + $0xc] sm:$0xf]  ;;  %v655_v35 = vld [vmem:[#allocation2 + $0x18] sm:$0xf]  ;;  %s13461_s10 = scalar_lea.vmem %s13585_s3, %s8566_s16 }
  0x12   : > { %v174_v3 = vld [vmem:[%s10225_s21 + $0x10] sm:$0xff]  ;;  %v175_v4 = vld [vmem:[%s10225_s21 + $0x18] sm:$0xff]  ;;  %v172_v7 = vld [vmem:[%s10225_s21] sm:$0xff]  ;;  %13661 = vst [vmem:[#allocation4_spill] sm:$0xff] %v13660_v26  ;;  %vm1118_vm10 = vsmask.f32 3328 }
  0x13   : > { %v8570_v5 = vpack.c.bf16 %v174_v3, %v174_v3  ;;  %v8571_v6 = vpack.c.bf16 %v175_v4, %v175_v4  ;;  %v173_v8 = vld [vmem:[%s10225_s21 + $0x8] sm:$0xff]  ;;  %v8568_v9 = vpack.c.bf16 %v172_v7, %v172_v7  ;;  %v176_v11 = vld [vmem:[%s10225_s21 + $0x20] sm:$0xff]  ;;  %v178_v22 = vld [vmem:[%s10225_s21 + $0x30] sm:$0xff]  ;;  %v10278_v4 = vsel %vm1851_vm0, %v10218_v2, 0 }
  0x14   : > { %v8569_v10 = vpack.c.bf16 %v173_v8, %v173_v8  ;;  %v177_v12 = vld [vmem:[%s10225_s21 + $0x28] sm:$0xff]  ;;  %v179_v23 = vld [vmem:[%s10225_s21 + $0x38] sm:$0xff]  ;;  %v8572_v29 = vpack.c.bf16 %v176_v11, %v176_v11  ;;  %v8574_v36 = vpack.c.bf16 %v178_v22, %v178_v22  ;;  %v652_v42 = vld [vmem:[#allocation2 + $0x14] sm:$0x1]  ;;  %vm1119_vm11 = vsmask.f32 7440 }
  0x15   : > { %v339_v13 = vshrl.u32 %v8570_v5, 16  ;;  %v342_v14 = vshll.u32 %v8570_v5, 16  ;;  %v347_v15 = vshrl.u32 %v8571_v6, 16  ;;  %v350_v16 = vshll.u32 %v8571_v6, 16  ;;  %v659_v43 = vld [vmem:[#allocation2 + $0x20] sm:$0x1]  ;;  %vm10289_vm9 = vmand %vm650_vm5, %vm643_vm4 }
  0x16   : > { %v322_v18 = vshrl.u32 %v8568_v9, 16  ;;  %v325_v19 = vshll.u32 %v8568_v9, 16  ;;  %v330_v20 = vshrl.u32 %v8569_v10, 16  ;;  %v333_v21 = vshll.u32 %v8569_v10, 16  ;;  %v180_v56 = vld [vmem:[%s10225_s21 + $0x40] sm:$0xff]  ;;  %v181_v61 = vld [vmem:[%s10225_s21 + $0x48] sm:$0xff]  ;;  %vm10357_vm13 = vmor %vm1118_vm10, %vm1119_vm11 }
  0x17   : > { %v341_v24 = vrot.slane %v339_v13, 7  ;;  %v349_v25 = vrot.slane %v347_v15, 7  ;;  %v8573_v30 = vpack.c.bf16 %v177_v12, %v177_v12  ;;  %v8575_v37 = vpack.c.bf16 %v179_v23, %v179_v23  ;;  %v182_v62 = vld [vmem:[%s10225_s21 + $0x50] sm:$0xff]  ;;  %v662_v7 = vld [vmem:[#allocation2 + $0x24] sm:$0xf]  ;;  %v183_v13 = vld [vmem:[%s10225_s21 + $0x58] sm:$0xff] }
  0x18   : > { %v324_v32 = vrot.slane %v322_v18, 7  ;;  %v332_v33 = vrot.slane %v330_v20, 7  ;;  %v356_v57 = vshrl.u32 %v8572_v29, 16  ;;  %v359_v58 = vshll.u32 %v8572_v29, 16  ;;  %v666_v9 = vld [vmem:[#allocation2 + $0x2c] sm:$0x1] }
  0x19   : > { %v344_v38 = vor.u32 %v342_v14, %v341_v24  ;;  %v345_v39 = vrot.slane %v341_v24, 4  ;;  %v352_v40 = vor.u32 %v350_v16, %v349_v25  ;;  %v354_v41 = vrot.slane %v349_v25, 4  ;;  %v669_v2 = vld [vmem:[#allocation2 + $0x30] sm:$0xf]  ;;  %v673_v25 = vld [vmem:[#allocation2 + $0x38] sm:$0x1] }
  0x1a   : > { %v327_v44 = vor.u32 %v325_v19, %v324_v32  ;;  %v328_v45 = vrot.slane %v324_v32, 4  ;;  %v335_v46 = vor.u32 %v333_v21, %v332_v33  ;;  %v337_v47 = vrot.slane %v332_v33, 4 }
  0x1b   : > { %v353_v48 = vsel %vm10236_vm6, %v345_v39, %v352_v40  ;;  %v761_v49 = vsel %vm10244_vm7, %v344_v38, %v760_v27  ;;  %v765_v50 = vsel %vm10250_vm8, %v354_v41, %v764_v28  ;;  %v656_v51 = vsel %vm10244_vm7, %v344_v38, %v655_v35  ;;  %v184_v27 = vld [vmem:[%s10225_s21 + $0x60] sm:$0xff] }
  0x1c   : > { %658 = vst.msk [vmem:[#allocation2 + $0x1c] sm:$0xf] %vm642_vm3, %v353_v48  ;;  %762 = vst [vmem:[#allocation2] sm:$0xf] %v761_v49  ;;  %v336_v52 = vsel %vm10236_vm6, %v328_v45, %v335_v46  ;;  %v646_v53 = vsel %vm10244_vm7, %v327_v44, %v645_v34  ;;  %v653_v54 = vsel %vm10250_vm8, %v337_v47, %v652_v42  ;;  %v364_v59 = vshrl.u32 %v8573_v30, 16  ;;  %v186_v49 = vld [vmem:[%s10225_s21 + $0x70] sm:$0xff] }
  0x1d   : > { %763 = vst.msk [vmem:[#allocation2 + $0x4] sm:$0xf] %vm642_vm3, %v353_v48  ;;  %766 = vst [vmem:[#allocation2 + $0x8] sm:$0x1] %v765_v50  ;;  %v660_v55 = vsel %vm10250_vm8, %v354_v41, %v659_v43  ;;  %v367_v60 = vshll.u32 %v8573_v30, 16  ;;  %v373_v63 = vshrl.u32 %v8574_v36, 16  ;;  %v10280_v8 = vpack.c.bf16 %v180_v56, %v180_v56 }
  0x1e   : > { %657 = vst [vmem:[#allocation2 + $0x18] sm:$0xf] %v656_v51  ;;  %647 = vst [vmem:[#allocation2 + $0xc] sm:$0xf] %v646_v53  ;;  %v376_v0 = vshll.u32 %v8574_v36, 16  ;;  %v381_v1 = vshrl.u32 %v8575_v37, 16  ;;  %v10282_v12 = vpack.c.bf16 %v181_v61, %v181_v61  ;;  %v10285_v14 = vpack.c.bf16 %v182_v62, %v182_v62 }
  0x1f   : > { %649 = vst.msk [vmem:[#allocation2 + $0x10] sm:$0xf] %vm642_vm3, %v336_v52  ;;  %654 = vst [vmem:[#allocation2 + $0x14] sm:$0x1] %v653_v54  ;;  %v384_v3 = vshll.u32 %v8575_v37, 16  ;;  %v358_v5 = vrot.slane %v356_v57, 7  ;;  %v10300_v35 = vpack.c.bf16 %v183_v13, %v183_v13  ;;  %v10311_v48 = vpack.c.bf16 %v184_v27, %v184_v27 }
  0x20   : > { %661 = vst [vmem:[#allocation2 + $0x20] sm:$0x1] %v660_v55  ;;  %v366_v6 = vrot.slane %v364_v59, 7  ;;  %v375_v10 = vrot.slane %v373_v63, 7  ;;  %v383_v11 = vrot.slane %v381_v1, 7  ;;  %v185_v36 = vld [vmem:[%s10225_s21 + $0x68] sm:$0xff] }
  0x21   : > { %v361_v15 = vor.u32 %v359_v58, %v358_v5  ;;  %v362_v16 = vrot.slane %v358_v5, 4  ;;  %v390_v55 = vshrl.u32 %v10280_v8, 16  ;;  %vm1802_vm12 = vcmask 31744  }
  0x22   : > { %v369_v18 = vor.u32 %v367_v60, %v366_v6  ;;  %v371_v19 = vrot.slane %v366_v6, 4  ;;  %v378_v21 = vor.u32 %v376_v0, %v375_v10  ;;  %v379_v22 = vrot.slane %v375_v10, 4 }
  0x23   : > { %v386_v23 = vor.u32 %v384_v3, %v383_v11  ;;  %v388_v24 = vrot.slane %v383_v11, 4  ;;  %v775_v28 = vld [vmem:[#allocation2] sm:$0x2]  ;;  %v865_v29 = vld [vmem:[#allocation2] sm:$0x1]  ;;  %v663_v33 = vsel %vm10244_vm7, %v361_v15, %v662_v7  ;;  %v393_v60 = vshll.u32 %v10280_v8, 16 }
  0x24   : > { %v919_v30 = vld [vmem:[#allocation2 + $0x4] sm:$0x8]  ;;  %v370_v32 = vsel %vm10236_vm6, %v362_v16, %v369_v18  ;;  %v667_v34 = vsel %vm10250_vm8, %v371_v19, %v666_v9  ;;  %v8028_v37 = vrot.slane %v775_v28, 9  ;;  %v1010_v39 = vld [vmem:[#allocation2 + $0x8] sm:$0x1]  ;;  %v670_v42 = vsel %vm10244_vm7, %v378_v21, %v669_v2 }
  0x25   : > { %v8046_v38 = vrot.slane %v919_v30, 11  ;;  %v1065_v40 = vld [vmem:[#allocation2 + $0x4] sm:$0xf]  ;;  %664 = vst [vmem:[#allocation2 + $0x24] sm:$0xf] %v663_v33  ;;  %v387_v41 = vsel %vm10236_vm6, %v379_v22, %v386_v23  ;;  %v674_v47 = vsel %vm10250_vm8, %v388_v24, %v673_v25  ;;  %v10324_v3 = vpack.c.bf16 %v185_v36, %v185_v36 }
  0x26   : > { %665 = vst.msk [vmem:[#allocation2 + $0x28] sm:$0xf] %vm642_vm3, %v370_v32  ;;  %668 = vst [vmem:[#allocation2 + $0x2c] sm:$0x1] %v667_v34  ;;  %v1131_v43 = vshll.u32 %v1065_v40, 16  ;;  %v1135_v44 = vshrl.u32 %v1065_v40, 16  ;;  %v866_v50 = vsel %vm10250_vm8, %v8028_v37, %v865_v29  ;;  %v10333_v19 = vpack.c.bf16 %v186_v49, %v186_v49 }
  0x27   : > { %v776_v45 = vld [vmem:[#allocation2 + $0xc] sm:$0x2]  ;;  %v868_v46 = vld [vmem:[#allocation2 + $0xc] sm:$0x1]  ;;  %671 = vst [vmem:[#allocation2 + $0x30] sm:$0xf] %v670_v42  ;;  %v1011_v51 = vsel %vm10289_vm9, %v8046_v38, %v1010_v39 }
  0x28   : > { %672 = vst.msk [vmem:[#allocation2 + $0x34] sm:$0xf] %vm642_vm3, %v387_v41  ;;  %v8029_v52 = vrot.slane %v776_v45, 9  ;;  %v920_v53 = vld [vmem:[#allocation2 + $0x10] sm:$0x8]  ;;  %v10319_v56 = vrot.slane %v1131_v43, 5 }
  0x29   : > { %v1013_v54 = vld [vmem:[#allocation2 + $0x14] sm:$0x1]  ;;  %675 = vst [vmem:[#allocation2 + $0x38] sm:$0x1] %v674_v47  ;;  %867 = vst [vmem:[#allocation2] sm:$0x1] %v866_v50 }
  0x2a   : > { %1012 = vst [vmem:[#allocation2 + $0x8] sm:$0x1] %v1011_v51  ;;  %v1137_v57 = vrot.slane %v1135_v44, 4  ;;  %v8047_v58 = vrot.slane %v920_v53, 11  ;;  %v1067_v59 = vld [vmem:[#allocation2 + $0x10] sm:$0xf]  ;;  %v869_v61 = vsel %vm10250_vm8, %v8029_v52, %v868_v46 }
  0x2b   : > { %v1155_v62 = vshll.u32 %v1067_v59, 16  ;;  %v1159_v63 = vshrl.u32 %v1067_v59, 16  ;;  %v777_v0 = vld [vmem:[#allocation2 + $0x18] sm:$0x2]  ;;  %v871_v1 = vld [vmem:[#allocation2 + $0x18] sm:$0x1] }
  0x2c   : > { %v1138_v5 = vor.u32 %v1137_v57, %v10319_v56  ;;  %870 = vst [vmem:[#allocation2 + $0xc] sm:$0x1] %v869_v61  ;;  %v1014_v6 = vsel %vm10289_vm9, %v8047_v58, %v1013_v54  ;;  %v8030_v7 = vrot.slane %v777_v0, 9  ;;  %v921_v9 = vld [vmem:[#allocation2 + $0x1c] sm:$0x8]  ;;  %v10329_v11 = vrot.slane %v390_v55, 7 }
  0x2d   : > { %v1016_v10 = vld [vmem:[#allocation2 + $0x20] sm:$0x1]  ;;  %v676_v8 = vld [vmem:[#allocation2 + $0x3c] sm:$0xf]  ;;  %1015 = vst [vmem:[#allocation2 + $0x14] sm:$0x1] %v1014_v6 }
  0x2e   : > { %v10331_v13 = vrot.slane %v1155_v62, 5  ;;  %v1161_v15 = vrot.slane %v1159_v63, 4  ;;  %v8048_v16 = vrot.slane %v921_v9, 11  ;;  %v1069_v18 = vld [vmem:[#allocation2 + $0x1c] sm:$0xf]  ;;  %v872_v2 = vsel %vm10250_vm8, %v8030_v7, %v871_v1 }
  0x2f   : > { %v1179_v21 = vshll.u32 %v1069_v18, 16  ;;  %v1183_v22 = vshrl.u32 %v1069_v18, 16  ;;  %v778_v23 = vld [vmem:[#allocation2 + $0x24] sm:$0x2]  ;;  %v398_v24 = vshrl.u32 %v10282_v12, 16  ;;  %v395_v32 = vor.u32 %v393_v60, %v10329_v11  ;;  %v187_v51 = vld [vmem:[%s10225_s21 + $0x78] sm:$0xff] }
  0x30   : > { %v1162_v25 = vor.u32 %v1161_v15, %v10331_v13  ;;  %873 = vst [vmem:[#allocation2 + $0x18] sm:$0x1] %v872_v2  ;;  %v1017_v27 = vsel %vm10289_vm9, %v8048_v16, %v1016_v10  ;;  %v8031_v28 = vrot.slane %v778_v23, 9  ;;  %v874_v29 = vld [vmem:[#allocation2 + $0x24] sm:$0x1]  ;;  %v10342_v33 = vrot.slane %v1138_v5, 4 }
  0x31   : > { %v922_v30 = vld [vmem:[#allocation2 + $0x28] sm:$0x8]  ;;  %1018 = vst [vmem:[#allocation2 + $0x20] sm:$0x1] %v1017_v27  ;;  %v10344_v34 = vrot.slane %v1179_v21, 5  ;;  %v1185_v36 = vrot.slane %v1183_v22, 4  ;;  %v677_v44 = vsel %vm10244_vm7, %v395_v32, %v676_v8  ;;  %v10365_v7 = vpack.c.bf16 %v187_v51, %v187_v51 }
  0x32   : > { %v8049_v37 = vrot.slane %v922_v30, 11  ;;  %v1019_v38 = vld [vmem:[#allocation2 + $0x2c] sm:$0x1]  ;;  %v1064_v39 = vld [vmem:[#allocation2] sm:$0xf]  ;;  %v10346_v41 = vrot.slane %v1162_v25, 4  ;;  %v875_v42 = vsel %vm10250_vm8, %v8031_v28, %v874_v29 }
  0x33   : > { %v1100_v40 = vld [vmem:[#allocation2 + $0x8] sm:$0x1]  ;;  %v396_v43 = vrot.slane %v10329_v11, 4  ;;  %v1122_v45 = vshrl.u32 %v1064_v39, 16  ;;  %v1125_v46 = vshll.u32 %v1064_v39, 16  ;;  %v1186_v49 = vor.u32 %v1185_v36, %v10344_v34 }
  0x34   : > { %v1141_v47 = vshll.u32 %v1100_v40, 16  ;;  %876 = vst [vmem:[#allocation2 + $0x24] sm:$0x1] %v875_v42  ;;  %v1071_v50 = vld [vmem:[#allocation2 + $0x28] sm:$0xf]  ;;  %v13666_v52 = vmov 0  ;;  %v1020_v54 = vsel %vm10289_vm9, %v8049_v37, %v1019_v38 }
  0x35   : > { %678 = vst [vmem:[#allocation2 + $0x3c] sm:$0xf] %v677_v44  ;;  %v13667_v52 = vsel %vm10357_vm13, 4294967295, %v13666_v52  ;;  %v1066_v53 = vld [vmem:[#allocation2 + $0xc] sm:$0xf]  ;;  %v1203_v55 = vshll.u32 %v1071_v50, 16 }
  0x36   : > { %13668 = vst [vmem:[#allocation5_spill] sm:$0xff] %v13667_v52  ;;  %v1207_v57 = vshrl.u32 %v1071_v50, 16  ;;  %v10363_v58 = vrot.slane %v398_v24, 7  ;;  %v1124_v59 = vrot.slane %v1122_v45, 4  ;;  %v1127_v60 = vrot.slane %v1125_v46, 5 }
  0x37   : > { %v1143_v61 = vrot.slane %v1141_v47, 5  ;;  %v1101_v62 = vld [vmem:[#allocation2 + $0x14] sm:$0x1]  ;;  %v1146_v63 = vshrl.u32 %v1066_v53, 16  ;;  %1021 = vst [vmem:[#allocation2 + $0x2c] sm:$0x1] %v1020_v54 }
  0x38   : > { %v1149_v0 = vshll.u32 %v1066_v53, 16  ;;  %v1165_v1 = vshll.u32 %v1101_v62, 16  ;;  %v1187_v5 = vrot.slane %v1186_v49, 4  ;;  %v779_v6 = vld [vmem:[#allocation2 + $0x30] sm:$0x2]  ;;  %v1128_v9 = vor.u32 %v1127_v60, %v1124_v59 }
  0x39   : > { %v1144_v10 = vsel %vm10357_vm13, %v10342_v33, %v1143_v61  ;;  %v1148_v8 = vrot.slane %v1146_v63, 4  ;;  %v1068_v15 = vld [vmem:[#allocation2 + $0x18] sm:$0xf]  ;;  %v10370_v16 = vrot.slane %v1203_v55, 5  ;;  %v1102_v21 = vld [vmem:[#allocation2 + $0x20] sm:$0x1] }
  0x3a   : > { %v1151_v18 = vrot.slane %v1149_v0, 5  ;;  %v1167_v2 = vrot.slane %v1165_v1, 5  ;;  %v1170_v22 = vshrl.u32 %v1068_v15, 16  ;;  %v1173_v23 = vshll.u32 %v1068_v15, 16  ;;  %v877_v42 = vld [vmem:[#allocation2 + $0x30] sm:$0x1] }
  0x3b   : > { %v1129_v24 = vrot.slane %v1128_v9, 4  ;;  %v1189_v25 = vshll.u32 %v1102_v21, 16  ;;  %v1209_v27 = vrot.slane %v1207_v57, 4  ;;  %v8032_v28 = vrot.slane %v779_v6, 9  ;;  %v1070_v36 = vld [vmem:[#allocation2 + $0x24] sm:$0xf] }
  0x3c   : > { %v1152_v29 = vor.u32 %v1151_v18, %v1148_v8  ;;  %v1168_v30 = vsel %vm10357_vm13, %v10346_v41, %v1167_v2  ;;  %v1172_v32 = vrot.slane %v1170_v22, 4  ;;  %v1175_v33 = vrot.slane %v1173_v23, 5  ;;  %v923_v50 = vld [vmem:[#allocation2 + $0x34] sm:$0x8]  ;;  %v1022_v61 = vld [vmem:[#allocation2 + $0x38] sm:$0x1] }
  0x3d   : > { %v1134_v37 = vsel %vm10357_vm13, %v1129_v24, %v10319_v56  ;;  %v1191_v38 = vrot.slane %v1189_v25, 5  ;;  %v1194_v39 = vshrl.u32 %v1070_v36, 16  ;;  %v1197_v40 = vshll.u32 %v1070_v36, 16  ;;  %v1073_v55 = vld [vmem:[#allocation2 + $0x34] sm:$0xf] }
  0x3e   : > { %v8082_v44 = vcombine.low %v1134_v37, %v1144_v10  ;;  %v1153_v45 = vrot.slane %v1152_v29, 4  ;;  %v1176_v46 = vor.u32 %v1175_v33, %v1172_v32  ;;  %v1103_v47 = vld [vmem:[#allocation2 + $0x2c] sm:$0x1]  ;;  %v1210_v49 = vor.u32 %v1209_v27, %v10370_v16  ;;  %v780_v10 = vld [vmem:[#allocation2 + $0x3c] sm:$0x2] }
  0x3f   : > { %v1192_v41 = vsel %vm10357_vm13, %v1187_v5, %v1191_v38  ;;  %v1196_v51 = vrot.slane %v1194_v39, 4  ;;  %v1199_v53 = vrot.slane %v1197_v40, 5  ;;  %v1213_v54 = vshll.u32 %v1103_v47, 16  ;;  %v680_v21 = vld [vmem:[#allocation2 + $0x44] sm:$0x1] }
  0x40   : > { %8940 = vmatprep.mubr.msk.bf16.mxu0 %vm1802_vm12, %v8082_v44  ;;  %v1158_v56 = vsel %vm10357_vm13, %v1153_v45, %v10331_v13  ;;  %v1177_v57 = vrot.slane %v1176_v46, 4  ;;  %v1211_v59 = vrot.slane %v1210_v49, 4  ;;  %v878_v60 = vsel %vm10250_vm8, %v8032_v28, %v877_v42  ;;  %v880_v24 = vld [vmem:[#allocation2 + $0x3c] sm:$0x1]  ;;  %v206_v29 = vld [vmem:[%s13583_s1 + $0x4] sm:$0x3] }
  0x41   : > { %v10387_v62 = vcombine.low %v1158_v56, %v1168_v30  ;;  %v1200_v63 = vor.u32 %v1199_v53, %v1196_v51  ;;  %v1215_v0 = vrot.slane %v1213_v54, 5  ;;  %879 = vst [vmem:[#allocation2 + $0x30] sm:$0x1] %v878_v60  ;;  %v8050_v1 = vrot.slane %v923_v50, 11  ;;  %v683_v11 = vld [vmem:[#allocation2 + $0x48] sm:$0xf] }
  0x42   : > { %v1182_v5 = vsel %vm10357_vm13, %v1177_v57, %v10344_v34  ;;  %v1227_v6 = vshll.u32 %v1073_v55, 16  ;;  %v1231_v9 = vshrl.u32 %v1073_v55, 16  ;;  %v401_v13 = vshll.u32 %v10282_v12, 16  ;;  %v687_v49 = vld [vmem:[#allocation2 + $0x50] sm:$0x1] }
  0x43   : > { %8941 = vmatmul.mubr.msk.bf16.vlgmr.msra.gmra.mrb[0].mxu0 %vm1802_vm12, %v10387_v62  ;;  %v10395_v8 = vcombine.low %v1182_v5, %v1192_v41  ;;  %v1201_v15 = vrot.slane %v1200_v63, 4  ;;  %v1216_v18 = vsel %vm10357_vm13, %v1211_v59, %v1215_v0  ;;  %v1023_v2 = vsel %vm10289_vm9, %v8050_v1, %v1022_v61  ;;  %v690_v53 = vld [vmem:[#allocation2 + $0x54] sm:$0xf]  ;;  %v694_v0 = vld [vmem:[#allocation2 + $0x5c] sm:$0x1] }
  0x44   : > { %8973 = vmatpush3.bf16.msra.mxu0 %v10278_v4  ;;  %1024 = vst [vmem:[#allocation2 + $0x38] sm:$0x1] %v1023_v2  ;;  %v10402_v34 = vrot.slane %v1227_v6, 5  ;;  %v1233_v12 = vrot.slane %v1231_v9, 4  ;;  %v403_v22 = vor.u32 %v401_v13, %v10363_v58  ;;  %v405_v23 = vrot.slane %v10363_v58, 4 }
  0x45   : > { %8944 = vmatprep.mubr.msk.bf16.mxu0 %vm1802_vm12, %v10395_v8  ;;  %v1206_v25 = vsel %vm10357_vm13, %v1201_v15, %v10370_v16  ;;  %v8033_v27 = vrot.slane %v780_v10, 9  ;;  %v407_v28 = vshrl.u32 %v10285_v14, 16  ;;  %v410_v4 = vshll.u32 %v10285_v14, 16  ;;  %10064 = vmatprep.subr.msk.bf16.mxu0 %vm1851_vm0, %v206_v29  ;;  %v753_v52 = vld [vmem:[#allocation2 + $0xc0] sm:$0xf] }
  0x46   : > { %v10416_v30 = vcombine.low %v1206_v25, %v1216_v18  ;;  %v1234_v58 = vor.u32 %v1233_v12, %v10402_v34  ;;  %v404_v32 = vsel %vm10236_vm6, %v396_v43, %v403_v22  ;;  %v681_v16 = vsel %vm10250_vm8, %v405_v23, %v680_v21 }
  0x47   : > { %679 = vst.msk [vmem:[#allocation2 + $0x40] sm:$0xf] %vm642_vm3, %v404_v32  ;;  %682 = vst [vmem:[#allocation2 + $0x44] sm:$0x1] %v681_v16  ;;  %v881_v14 = vsel %vm10250_vm8, %v8033_v27, %v880_v24  ;;  %v409_v33 = vrot.slane %v407_v28, 7  ;;  %v415_v36 = vshrl.u32 %v10300_v35, 16 }
  0x48   : > { %v418_v37 = vshll.u32 %v10300_v35, 16  ;;  %v1072_v38 = vld [vmem:[#allocation2 + $0x30] sm:$0xf]  ;;  %v1235_v39 = vrot.slane %v1234_v58, 4  ;;  %882 = vst [vmem:[#allocation2 + $0x3c] sm:$0x1] %v881_v14 }
  0x49   : > { %v424_v43 = vshrl.u32 %v10311_v48, 16  ;;  %v427_v40 = vshll.u32 %v10311_v48, 16  ;;  %v432_v42 = vshrl.u32 %v10324_v3, 16  ;;  %v1218_v44 = vshrl.u32 %v1072_v38, 16  ;;  %v188_v58 = vld [vmem:[%s10225_s21 + $0x80] sm:$0xff]  ;;  %v189_v32 = vld [vmem:[%s10225_s21 + $0x88] sm:$0xff] }
  0x4a   : > { %v1221_v45 = vshll.u32 %v1072_v38, 16  ;;  %v412_v46 = vor.u32 %v410_v4, %v409_v33  ;;  %v413_v47 = vrot.slane %v409_v33, 4  ;;  %v417_v50 = vrot.slane %v415_v36, 7 }
  0x4b   : > { %v426_v41 = vrot.slane %v424_v43, 7  ;;  %v434_v51 = vrot.slane %v432_v42, 7  ;;  %v435_v35 = vshll.u32 %v10324_v3, 16  ;;  %8945 = vmatmul.mubr.msk.bf16.gmra.mrb[4].mxu0 %vm1802_vm12, %v10416_v30  ;;  %v1104_v54 = vld [vmem:[#allocation2 + $0x38] sm:$0x1]  ;;  %v1220_v55 = vrot.slane %v1218_v44, 4 }
  0x4c   : > { %v1223_v56 = vrot.slane %v1221_v45, 5  ;;  %v684_v48 = vsel %vm10244_vm7, %v412_v46, %v683_v11  ;;  %v441_v57 = vshrl.u32 %v10333_v19, 16  ;;  %v1237_v59 = vshll.u32 %v1104_v54, 16  ;;  %v190_v43 = vld [vmem:[%s10225_s21 + $0x90] sm:$0xff] }
  0x4d   : > { %v420_v60 = vor.u32 %v418_v37, %v417_v50  ;;  %v422_v61 = vrot.slane %v417_v50, 4  ;;  %685 = vst [vmem:[#allocation2 + $0x48] sm:$0xf] %v684_v48  ;;  %v429_v63 = vor.u32 %v427_v40, %v426_v41  ;;  %v430_v3 = vrot.slane %v426_v41, 4  ;;  %v193_v48 = vld [vmem:[%s10225_s21 + $0xa8] sm:$0xff] }
  0x4e   : > { %v1224_v1 = vor.u32 %v1223_v56, %v1220_v55  ;;  %v437_v5 = vor.u32 %v435_v35, %v434_v51  ;;  %v439_v6 = vrot.slane %v434_v51, 4  ;;  %v1239_v9 = vrot.slane %v1237_v59, 5  ;;  %v924_v13 = vld [vmem:[#allocation2 + $0x40] sm:$0x8]  ;;  %v1025_v10 = vld [vmem:[#allocation2 + $0x44] sm:$0x1] }
  0x4f   : > { %v421_v15 = vsel %vm10236_vm6, %v413_v47, %v420_v60  ;;  %v688_v18 = vsel %vm10250_vm8, %v422_v61, %v687_v49  ;;  %v691_v2 = vsel %vm10244_vm7, %v429_v63, %v690_v53  ;;  %v8051_v12 = vrot.slane %v924_v13, 11  ;;  %v1074_v22 = vld [vmem:[#allocation2 + $0x3c] sm:$0xf]  ;;  %v1075_v23 = vld [vmem:[#allocation2 + $0x40] sm:$0xf] }
  0x50   : > { %v1225_v21 = vrot.slane %v1224_v1, 4  ;;  %686 = vst.msk [vmem:[#allocation2 + $0x4c] sm:$0xf] %vm642_vm3, %v421_v15  ;;  %689 = vst [vmem:[#allocation2 + $0x50] sm:$0x1] %v688_v18  ;;  %v438_v24 = vsel %vm10236_vm6, %v430_v3, %v437_v5  ;;  %v695_v25 = vsel %vm10250_vm8, %v439_v6, %v694_v0  ;;  %v1240_v27 = vsel %vm10357_vm13, %v1235_v39, %v1239_v9  ;;  %v191_v35 = vld [vmem:[%s10225_s21 + $0x98] sm:$0xff] }
  0x51   : > { %692 = vst [vmem:[#allocation2 + $0x54] sm:$0xf] %v691_v2  ;;  %v1242_v28 = vshrl.u32 %v1074_v22, 16  ;;  %v1245_v4 = vshll.u32 %v1074_v22, 16  ;;  %v1251_v29 = vshll.u32 %v1075_v23, 16  ;;  %v1026_v14 = vsel %vm10289_vm9, %v8051_v12, %v1025_v10  ;;  %v192_v56 = vld [vmem:[%s10225_s21 + $0xa0] sm:$0xff] }
  0x52   : > { %693 = vst.msk [vmem:[#allocation2 + $0x58] sm:$0xf] %vm642_vm3, %v438_v24  ;;  %696 = vst [vmem:[#allocation2 + $0x5c] sm:$0x1] %v695_v25  ;;  %v1230_v16 = vsel %vm10357_vm13, %v1225_v21, %v10402_v34  ;;  %v1255_v33 = vshrl.u32 %v1075_v23, 16  ;;  %v10461_v36 = vrot.slane %v441_v57, 7  ;;  %v10469_v45 = vpack.c.bf16 %v188_v58, %v188_v58 }
  0x53   : > { %v10463_v37 = vcombine.low %v1230_v16, %v1240_v27  ;;  %1027 = vst [vmem:[#allocation2 + $0x44] sm:$0x1] %v1026_v14  ;;  %v1244_v11 = vrot.slane %v1242_v28, 4  ;;  %v1247_v38 = vrot.slane %v1245_v4, 5  ;;  %v10465_v39 = vrot.slane %v1251_v29, 5 }
  0x54   : > { %v1257_v40 = vrot.slane %v1255_v33, 4  ;;  %v781_v42 = vld [vmem:[#allocation2 + $0x48] sm:$0x2]  ;;  %v883_v44 = vld [vmem:[#allocation2 + $0x48] sm:$0x1]  ;;  %v444_v34 = vshll.u32 %v10333_v19, 16  ;;  %v10471_v46 = vpack.c.bf16 %v189_v32, %v189_v32  ;;  %v10486_v0 = vpack.c.bf16 %v190_v43, %v190_v43 }
  0x55   : > { %8948 = vmatprep.mubr.msk.bf16.mxu0 %vm1802_vm12, %v10463_v37  ;;  %v1248_v47 = vor.u32 %v1247_v38, %v1244_v11  ;;  %v8034_v49 = vrot.slane %v781_v42, 9  ;;  %v447_v50 = vrot.slane %v10461_v36, 4  ;;  %v449_v41 = vshrl.u32 %v10365_v7, 16  ;;  %v697_v51 = vld [vmem:[#allocation2 + $0x60] sm:$0xf] }
  0x56   : > { %v1258_v53 = vor.u32 %v1257_v40, %v10465_v39  ;;  %v446_v54 = vor.u32 %v444_v34, %v10461_v36  ;;  %v452_v19 = vshll.u32 %v10365_v7, 16  ;;  %v458_v55 = vshrl.u32 %v10469_v45, 16  ;;  %v701_v11 = vld [vmem:[#allocation2 + $0x68] sm:$0x1] }
  0x57   : > { %v1249_v57 = vrot.slane %v1248_v47, 4  ;;  %v884_v59 = vsel %vm10250_vm8, %v8034_v49, %v883_v44  ;;  %v925_v60 = vld [vmem:[#allocation2 + $0x4c] sm:$0x8]  ;;  %v1028_v61 = vld [vmem:[#allocation2 + $0x50] sm:$0x1]  ;;  %v451_v63 = vrot.slane %v449_v41, 7  ;;  %v10492_v9 = vpack.c.bf16 %v191_v35, %v191_v35 }
  0x58   : > { %v1259_v1 = vrot.slane %v1258_v53, 4  ;;  %885 = vst [vmem:[#allocation2 + $0x48] sm:$0x1] %v884_v59  ;;  %v8052_v3 = vrot.slane %v925_v60, 11  ;;  %v10488_v5 = vld [vmem:[#allocation2 + $0x4c] sm:$0xf]  ;;  %v698_v7 = vsel %vm10244_vm7, %v446_v54, %v697_v51  ;;  %v10501_v25 = vpack.c.bf16 %v192_v56, %v192_v56 }
  0x59   : > { %v782_v6 = vld [vmem:[#allocation2 + $0x54] sm:$0x2]  ;;  %v1254_v13 = vsel %vm10357_vm13, %v1249_v57, %v10465_v39  ;;  %v1275_v10 = vshll.u32 %v10488_v5, 16  ;;  %v1279_v15 = vshrl.u32 %v10488_v5, 16  ;;  %v886_v2 = vld [vmem:[#allocation2 + $0x54] sm:$0x1]  ;;  %v454_v24 = vor.u32 %v452_v19, %v451_v63 }
  0x5a   : > { %v8035_v18 = vrot.slane %v782_v6, 9  ;;  %699 = vst [vmem:[#allocation2 + $0x60] sm:$0xf] %v698_v7  ;;  %v1105_v21 = vld [vmem:[#allocation2 + $0x44] sm:$0x1]  ;;  %v1029_v12 = vsel %vm10289_vm9, %v8052_v3, %v1028_v61  ;;  %v10503_v27 = vpack.c.bf16 %v193_v48, %v193_v48  ;;  %v456_v43 = vrot.slane %v451_v63, 4 }
  0x5b   : > { %v926_v22 = vld [vmem:[#allocation2 + $0x58] sm:$0x8]  ;;  %v1031_v23 = vld [vmem:[#allocation2 + $0x5c] sm:$0x1]  ;;  %v1261_v28 = vshll.u32 %v1105_v21, 16  ;;  %v10505_v4 = vrot.slane %v1275_v10, 5  ;;  %v455_v36 = vsel %vm10236_vm6, %v447_v50, %v454_v24 }
  0x5c   : > { %1030 = vst [vmem:[#allocation2 + $0x50] sm:$0x1] %v1029_v12  ;;  %v1281_v29 = vrot.slane %v1279_v15, 4  ;;  %v887_v58 = vsel %vm10250_vm8, %v8035_v18, %v886_v2  ;;  %v10509_v32 = vld [vmem:[#allocation2 + $0x58] sm:$0xf]  ;;  %v8053_v16 = vrot.slane %v926_v22, 11  ;;  %v702_v51 = vsel %vm10250_vm8, %v456_v43, %v701_v11 }
  0x5d   : > { %888 = vst [vmem:[#allocation2 + $0x54] sm:$0x1] %v887_v58  ;;  %v1299_v14 = vshll.u32 %v10509_v32, 16  ;;  %v1303_v33 = vshrl.u32 %v10509_v32, 16  ;;  %v1263_v38 = vrot.slane %v1261_v28, 5  ;;  %v460_v40 = vrot.slane %v458_v55, 7 }
  0x5e   : > { %v1282_v39 = vor.u32 %v1281_v29, %v10505_v4  ;;  %700 = vst.msk [vmem:[#allocation2 + $0x64] sm:$0xf] %vm642_vm3, %v455_v36  ;;  %v1032_v42 = vsel %vm10289_vm9, %v8053_v16, %v1031_v23  ;;  %v461_v47 = vshll.u32 %v10469_v45, 16  ;;  %v704_v53 = vld [vmem:[#allocation2 + $0x6c] sm:$0xf]  ;;  %v466_v60 = vshrl.u32 %v10471_v46, 16 }
  0x5f   : > { %v10519_v44 = vrot.slane %v1299_v14, 5  ;;  %v1305_v34 = vrot.slane %v1303_v33, 4  ;;  %v1264_v49 = vsel %vm10357_vm13, %v1259_v1, %v1263_v38  ;;  %v10524_v50 = vld [vmem:[#allocation2 + $0x48] sm:$0xf]  ;;  %1033 = vst [vmem:[#allocation2 + $0x5c] sm:$0x1] %v1032_v42 }
  0x60   : > { %v1283_v41 = vrot.slane %v1282_v39, 4  ;;  %v464_v35 = vrot.slane %v460_v40, 4  ;;  %v10528_v54 = vcombine.low %v1254_v13, %v1264_v49  ;;  %v1266_v19 = vshrl.u32 %v10524_v50, 16  ;;  %703 = vst [vmem:[#allocation2 + $0x68] sm:$0x1] %v702_v51  ;;  %v194_v63 = vld [vmem:[%s10225_s21 + $0xb0] sm:$0xff] }
  0x61   : > { %v1269_v55 = vshll.u32 %v10524_v50, 16  ;;  %v1306_v45 = vor.u32 %v1305_v34, %v10519_v44  ;;  %v783_v56 = vld [vmem:[#allocation2 + $0x60] sm:$0x2]  ;;  %v889_v48 = vld [vmem:[#allocation2 + $0x60] sm:$0x1]  ;;  %v463_v59 = vor.u32 %v461_v47, %v460_v40  ;;  %v469_v61 = vshll.u32 %v10471_v46, 16 }
  0x62   : > { %v8036_v57 = vrot.slane %v783_v56, 9  ;;  %8949 = vmatmul.mubr.msk.bf16.gmra.mrb[8].mxu0 %vm1802_vm12, %v10528_v54  ;;  %v1268_v3 = vrot.slane %v1266_v19, 4  ;;  %v475_v13 = vshrl.u32 %v10486_v0, 16  ;;  %v468_v2 = vrot.slane %v466_v60, 7 }
  0x63   : > { %v1106_v1 = vld [vmem:[#allocation2 + $0x50] sm:$0x1]  ;;  %v1271_v6 = vrot.slane %v1269_v55, 5  ;;  %v1307_v7 = vrot.slane %v1306_v45, 4  ;;  %v705_v46 = vsel %vm10244_vm7, %v463_v59, %v704_v53  ;;  %v10549_v28 = vpack.c.bf16 %v194_v63, %v194_v63  ;;  %v708_v55 = vld [vmem:[#allocation2 + $0x74] sm:$0x1] }
  0x64   : > { %v1285_v10 = vshll.u32 %v1106_v1, 16  ;;  %v10539_v15 = vld [vmem:[#allocation2 + $0x54] sm:$0xf]  ;;  %v890_v18 = vsel %vm10250_vm8, %v8036_v57, %v889_v48  ;;  %706 = vst [vmem:[#allocation2 + $0x6c] sm:$0xf] %v705_v46  ;;  %v471_v39 = vor.u32 %v469_v61, %v468_v2  ;;  %v473_v48 = vrot.slane %v468_v2, 4 }
  0x65   : > { %v1272_v21 = vor.u32 %v1271_v6, %v1268_v3  ;;  %v1290_v12 = vshrl.u32 %v10539_v15, 16  ;;  %v1293_v22 = vshll.u32 %v10539_v15, 16  ;;  %891 = vst [vmem:[#allocation2 + $0x60] sm:$0x1] %v890_v18  ;;  %v927_v23 = vld [vmem:[#allocation2 + $0x64] sm:$0x8] }
  0x66   : > { %v10547_v24 = vld [vmem:[#allocation2 + $0x64] sm:$0xf]  ;;  %v1287_v29 = vrot.slane %v1285_v10, 5  ;;  %v8054_v58 = vrot.slane %v927_v23, 11  ;;  %v1107_v36 = vld [vmem:[#allocation2 + $0x5c] sm:$0x1]  ;;  %v472_v19 = vsel %vm10236_vm6, %v464_v35, %v471_v39  ;;  %v709_v3 = vsel %vm10250_vm8, %v473_v48, %v708_v55 }
  0x67   : > { %v1323_v16 = vshll.u32 %v10547_v24, 16  ;;  %v1327_v14 = vshrl.u32 %v10547_v24, 16  ;;  %v1273_v33 = vrot.slane %v1272_v21, 4  ;;  %v1292_v11 = vrot.slane %v1290_v12, 4  ;;  %v1034_v42 = vld [vmem:[#allocation2 + $0x68] sm:$0x1] }
  0x68   : > { %v1295_v38 = vrot.slane %v1293_v22, 5  ;;  %v1288_v43 = vsel %vm10357_vm13, %v1283_v41, %v1287_v29  ;;  %v1309_v40 = vshll.u32 %v1107_v36, 16  ;;  %v1035_v53 = vsel %vm10289_vm9, %v8054_v58, %v1034_v42  ;;  %707 = vst.msk [vmem:[#allocation2 + $0x70] sm:$0xf] %vm642_vm3, %v472_v19  ;;  %v711_v61 = vld [vmem:[#allocation2 + $0x78] sm:$0xf] }
  0x69   : > { %v10555_v34 = vrot.slane %v1323_v16, 5  ;;  %v1329_v47 = vrot.slane %v1327_v14, 4  ;;  %v1278_v49 = vsel %vm10357_vm13, %v1273_v33, %v10505_v4  ;;  %1036 = vst [vmem:[#allocation2 + $0x68] sm:$0x1] %v1035_v53  ;;  %v477_v59 = vrot.slane %v475_v13, 7  ;;  %v195_v23 = vld [vmem:[%s10225_s21 + $0xb8] sm:$0xff] }
  0x6a   : > { %v1296_v51 = vor.u32 %v1295_v38, %v1292_v11  ;;  %v10564_v45 = vcombine.low %v1278_v49, %v1288_v43  ;;  %v1311_v41 = vrot.slane %v1309_v40, 5  ;;  %v478_v4 = vshll.u32 %v10486_v0, 16  ;;  %710 = vst [vmem:[#allocation2 + $0x74] sm:$0x1] %v709_v3  ;;  %v196_v29 = vld [vmem:[%s10225_s21 + $0xc0] sm:$0xff]  ;;  %v197_v58 = vld [vmem:[%s10225_s21 + $0xc8] sm:$0xff] }
  0x6b   : > { %v1330_v56 = vor.u32 %v1329_v47, %v10555_v34  ;;  %v483_v60 = vshrl.u32 %v10492_v9, 16  ;;  %v784_v6 = vld [vmem:[#allocation2 + $0x6c] sm:$0x2]  ;;  %v486_v0 = vshll.u32 %v10492_v9, 16  ;;  %v892_v2 = vld [vmem:[#allocation2 + $0x6c] sm:$0x1]  ;;  %v10601_v49 = vpack.c.bf16 %v195_v23, %v195_v23 }
  0x6c   : > { %v1297_v57 = vrot.slane %v1296_v51, 4  ;;  %8952 = vmatprep.mubr.msk.bf16.mxu0 %vm1802_vm12, %v10564_v45  ;;  %v1312_v35 = vsel %vm10357_vm13, %v1307_v7, %v1311_v41  ;;  %v10574_v63 = vld [vmem:[#allocation2 + $0x60] sm:$0xf]  ;;  %v8037_v18 = vrot.slane %v784_v6, 9  ;;  %v480_v21 = vor.u32 %v478_v4, %v477_v59  ;;  %v718_v4 = vld [vmem:[#allocation2 + $0x84] sm:$0xf] }
  0x6d   : > { %v1331_v1 = vrot.slane %v1330_v56, 4  ;;  %v1314_v10 = vshrl.u32 %v10574_v63, 16  ;;  %v1317_v7 = vshll.u32 %v10574_v63, 16  ;;  %v481_v12 = vrot.slane %v477_v59, 4  ;;  %v715_v38 = vld [vmem:[#allocation2 + $0x80] sm:$0x1] }
  0x6e   : > { %v1302_v13 = vsel %vm10357_vm13, %v1297_v57, %v10519_v44  ;;  %v485_v22 = vrot.slane %v483_v60, 7  ;;  %v893_v44 = vsel %vm10250_vm8, %v8037_v18, %v892_v2  ;;  %v492_v14 = vshrl.u32 %v10501_v25, 16 }
  0x6f   : > { %v10584_v46 = vcombine.low %v1302_v13, %v1312_v35  ;;  %v1316_v9 = vrot.slane %v1314_v10, 4  ;;  %v1319_v16 = vrot.slane %v1317_v7, 5  ;;  %894 = vst [vmem:[#allocation2 + $0x6c] sm:$0x1] %v893_v44  ;;  %v712_v11 = vsel %vm10244_vm7, %v480_v21, %v711_v61  ;;  %v928_v42 = vld [vmem:[#allocation2 + $0x70] sm:$0x8] }
  0x70   : > { %v488_v33 = vor.u32 %v486_v0, %v485_v22  ;;  %v490_v36 = vrot.slane %v485_v22, 4  ;;  %v495_v39 = vshll.u32 %v10501_v25, 16  ;;  %v10597_v43 = vld [vmem:[#allocation2 + $0x68] sm:$0x1]  ;;  %v10599_v47 = vld [vmem:[#allocation2 + $0x70] sm:$0xf]  ;;  %v10603_v51 = vpack.c.bf16 %v196_v29, %v196_v29 }
  0x71   : > { %13669 = vst [vmem:[#allocation6_spill] sm:$0xff] %v10584_v46  ;;  %8953 = vmatmul.mubr.msk.bf16.gmra.mrb[12].mxu0 %vm1802_vm12, %v10584_v46  ;;  %v1320_v40 = vor.u32 %v1319_v16, %v1316_v9  ;;  %713 = vst [vmem:[#allocation2 + $0x78] sm:$0xf] %v712_v11  ;;  %v10605_v53 = vpack.c.bf16 %v197_v58, %v197_v58  ;;  %v1333_v19 = vshll.u32 %v10597_v43, 16  ;;  %v8055_v55 = vrot.slane %v928_v42, 11 }
  0x72   : > { %v1347_v41 = vshll.u32 %v10599_v47, 16  ;;  %v1351_v25 = vshrl.u32 %v10599_v47, 16  ;;  %v489_v48 = vsel %vm10236_vm6, %v481_v12, %v488_v33  ;;  %v716_v57 = vsel %vm10250_vm8, %v490_v36, %v715_v38  ;;  %v1037_v61 = vld [vmem:[#allocation2 + $0x74] sm:$0x1]  ;;  %v722_v29 = vld [vmem:[#allocation2 + $0x8c] sm:$0x1] }
  0x73   : > { %v1321_v56 = vrot.slane %v1320_v40, 4  ;;  %v494_v59 = vrot.slane %v492_v14, 7  ;;  %v1335_v60 = vrot.slane %v1333_v19, 5  ;;  %714 = vst.msk [vmem:[#allocation2 + $0x7c] sm:$0xf] %vm642_vm3, %v489_v48  ;;  %v500_v6 = vshrl.u32 %v10503_v27, 16 }
  0x74   : > { %v10614_v35 = vrot.slane %v1347_v41, 5  ;;  %v1353_v3 = vrot.slane %v1351_v25, 4  ;;  %717 = vst [vmem:[#allocation2 + $0x80] sm:$0x1] %v716_v57  ;;  %v1038_v13 = vsel %vm10289_vm9, %v8055_v55, %v1037_v61  ;;  %v503_v12 = vshll.u32 %v10503_v27, 16  ;;  %v198_v33 = vld [vmem:[%s10225_s21 + $0xd0] sm:$0xff] }
  0x75   : > { %v1326_v0 = vsel %vm10357_vm13, %v1321_v56, %v10555_v34  ;;  %v497_v10 = vor.u32 %v495_v39, %v494_v59  ;;  %v498_v7 = vrot.slane %v494_v59, 4  ;;  %v1336_v18 = vsel %vm10357_vm13, %v1331_v1, %v1335_v60  ;;  %1039 = vst [vmem:[#allocation2 + $0x74] sm:$0x1] %v1038_v13  ;;  %v725_v41 = vld [vmem:[#allocation2 + $0x90] sm:$0xf] }
  0x76   : > { %v1354_v2 = vor.u32 %v1353_v3, %v10614_v35  ;;  %v502_v21 = vrot.slane %v500_v6, 7  ;;  %v10627_v22 = vcombine.low %v1326_v0, %v1336_v18  ;;  %v10629_v23 = vld [vmem:[#allocation2 + $0x6c] sm:$0xf]  ;;  %v509_v58 = vshrl.u32 %v10549_v28, 16  ;;  %v199_v0 = vld [vmem:[%s10225_s21 + $0xd8] sm:$0xff] }
  0x77   : > { %v719_v34 = vsel %vm10244_vm7, %v497_v10, %v718_v4  ;;  %v512_v9 = vshll.u32 %v10549_v28, 16  ;;  %v1338_v1 = vshrl.u32 %v10629_v23, 16  ;;  %v1341_v16 = vshll.u32 %v10629_v23, 16  ;;  %v10127_v46 = vld [vmem:[#allocation2 + $0x20] sm:$0x1] }
  0x78   : > { %13670 = vst [vmem:[#allocation7_spill] sm:$0xff] %v10627_v22  ;;  %v10637_v44 = vrot.slane %v1354_v2, 4  ;;  %v785_v14 = vld [vmem:[#allocation2 + $0x78] sm:$0x2]  ;;  %v505_v27 = vor.u32 %v503_v12, %v502_v21  ;;  %720 = vst [vmem:[#allocation2 + $0x84] sm:$0xf] %v719_v34  ;;  %8956 = vmatprep.mubr.msk.bf16.mxu0 %vm1802_vm12, %v10627_v22  ;;  %v10653_v60 = vpack.c.bf16 %v198_v33, %v198_v33 }
  0x79   : > { %v8038_v36 = vrot.slane %v785_v14, 9  ;;  %v895_v11 = vld [vmem:[#allocation2 + $0x78] sm:$0x1]  ;;  %v507_v38 = vrot.slane %v502_v21, 4  ;;  %v511_v39 = vrot.slane %v509_v58, 7  ;;  %v517_v40 = vshrl.u32 %v10601_v49, 16 }
  0x7a   : > { %v1340_v28 = vrot.slane %v1338_v1, 4  ;;  %v1343_v42 = vrot.slane %v1341_v16, 5  ;;  %v506_v19 = vsel %vm10236_vm6, %v498_v7, %v505_v27  ;;  %v520_v55 = vshll.u32 %v10601_v49, 16  ;;  %v929_v56 = vld [vmem:[#allocation2 + $0x7c] sm:$0x8] }
  0x7b   : > { %v896_v25 = vsel %vm10250_vm8, %v8038_v36, %v895_v11  ;;  %v1040_v48 = vld [vmem:[#allocation2 + $0x80] sm:$0x1]  ;;  %v10648_v57 = vld [vmem:[#allocation2 + $0x7c] sm:$0xf]  ;;  %721 = vst.msk [vmem:[#allocation2 + $0x88] sm:$0xf] %vm642_vm3, %v506_v19  ;;  %v723_v59 = vsel %vm10250_vm8, %v507_v38, %v722_v29  ;;  %v514_v4 = vor.u32 %v512_v9, %v511_v39  ;;  %v10668_v33 = vpack.c.bf16 %v199_v0, %v199_v0 }
  0x7c   : > { %v1344_v61 = vor.u32 %v1343_v42, %v1340_v28  ;;  %897 = vst [vmem:[#allocation2 + $0x78] sm:$0x1] %v896_v25  ;;  %v8056_v49 = vrot.slane %v929_v56, 11  ;;  %v1371_v3 = vshll.u32 %v10648_v57, 16  ;;  %v1375_v6 = vshrl.u32 %v10648_v57, 16 }
  0x7d   : > { %724 = vst [vmem:[#allocation2 + $0x8c] sm:$0x1] %v723_v59  ;;  %v10658_v13 = vld [vmem:[#allocation2 + $0x74] sm:$0x1]  ;;  %v515_v10 = vrot.slane %v511_v39, 4  ;;  %v519_v7 = vrot.slane %v517_v40, 7  ;;  %v726_v18 = vsel %vm10244_vm7, %v514_v4, %v725_v41 }
  0x7e   : > { %v526_v2 = vshrl.u32 %v10603_v51, 16  ;;  %v1345_v21 = vrot.slane %v1344_v61, 4  ;;  %v1357_v12 = vshll.u32 %v10658_v13, 16  ;;  %v1041_v34 = vsel %vm10289_vm9, %v8056_v49, %v1040_v48  ;;  %727 = vst [vmem:[#allocation2 + $0x90] sm:$0xf] %v726_v18 }
  0x7f   : > { %v10666_v29 = vrot.slane %v1371_v3, 5  ;;  %v729_v58 = vld [vmem:[#allocation2 + $0x98] sm:$0x1]  ;;  %1042 = vst [vmem:[#allocation2 + $0x80] sm:$0x1] %v1041_v34  ;;  %v1377_v9 = vrot.slane %v1375_v6, 4  ;;  %v522_v14 = vor.u32 %v520_v55, %v519_v7 }
  0x80   : > { %v786_v1 = vld [vmem:[#allocation2 + $0x84] sm:$0x2]  ;;  %v898_v16 = vld [vmem:[#allocation2 + $0x84] sm:$0x1]  ;;  %v524_v27 = vrot.slane %v519_v7, 4  ;;  %v1350_v36 = vsel %vm10357_vm13, %v1345_v21, %v10614_v35  ;;  %v1359_v11 = vrot.slane %v1357_v12, 5 }
  0x81   : > { %v8039_v38 = vrot.slane %v786_v1, 9  ;;  %v528_v39 = vrot.slane %v526_v2, 7  ;;  %v1378_v40 = vor.u32 %v1377_v9, %v10666_v29  ;;  %v523_v28 = vsel %vm10236_vm6, %v515_v10, %v522_v14  ;;  %v732_v55 = vld [vmem:[#allocation2 + $0x9c] sm:$0xf]  ;;  %v736_v18 = vld [vmem:[#allocation2 + $0xa4] sm:$0x1] }
  0x82   : > { %v730_v42 = vsel %vm10250_vm8, %v524_v27, %v729_v58  ;;  %v529_v19 = vshll.u32 %v10603_v51, 16  ;;  %v1360_v41 = vsel %vm10357_vm13, %v10637_v44, %v1359_v11  ;;  %v930_v25 = vld [vmem:[#allocation2 + $0x88] sm:$0x8]  ;;  %728 = vst.msk [vmem:[#allocation2 + $0x94] sm:$0xf] %vm642_vm3, %v523_v28  ;;  %v534_v59 = vshrl.u32 %v10605_v53, 16 }
  0x83   : > { %v899_v35 = vsel %vm10250_vm8, %v8039_v38, %v898_v16  ;;  %v10684_v56 = vld [vmem:[#allocation2 + $0x88] sm:$0xf]  ;;  %731 = vst [vmem:[#allocation2 + $0x98] sm:$0x1] %v730_v42  ;;  %v532_v48 = vrot.slane %v528_v39, 4  ;;  %v10688_v4 = vcombine.low %v1350_v36, %v1360_v41  ;;  %v1379_v61 = vrot.slane %v1378_v40, 4 }
  0x84   : > { %v10690_v51 = vld [vmem:[#allocation2 + $0x78] sm:$0xf]  ;;  %900 = vst [vmem:[#allocation2 + $0x84] sm:$0x1] %v899_v35  ;;  %v8057_v49 = vrot.slane %v930_v25, 11  ;;  %v531_v3 = vor.u32 %v529_v19, %v528_v39  ;;  %v1395_v10 = vshll.u32 %v10684_v56, 16 }
  0x85   : > { %13671 = vst [vmem:[#allocation8_spill] sm:$0xff] %v10688_v4  ;;  %v1043_v44 = vld [vmem:[#allocation2 + $0x8c] sm:$0x1]  ;;  %v1362_v6 = vshrl.u32 %v10690_v51, 16  ;;  %v1365_v0 = vshll.u32 %v10690_v51, 16  ;;  %v1399_v7 = vshrl.u32 %v10684_v56, 16  ;;  %8957 = vmatmul.mubr.msk.bf16.gmra.mrb[16].mxu0 %vm1802_vm12, %v10688_v4 }
  0x86   : > { %v1044_v2 = vsel %vm10289_vm9, %v8057_v49, %v1043_v44  ;;  %v787_v21 = vld [vmem:[#allocation2 + $0x90] sm:$0x2]  ;;  %v901_v12 = vld [vmem:[#allocation2 + $0x90] sm:$0x1]  ;;  %v536_v34 = vrot.slane %v534_v59, 7  ;;  %v537_v58 = vshll.u32 %v10605_v53, 16  ;;  %v733_v9 = vsel %vm10244_vm7, %v531_v3, %v732_v55 }
  0x87   : > { %v10703_v1 = vld [vmem:[#allocation2 + $0x80] sm:$0x1]  ;;  %v1364_v16 = vrot.slane %v1362_v6, 4  ;;  %v1367_v14 = vrot.slane %v1365_v0, 5  ;;  %1045 = vst [vmem:[#allocation2 + $0x8c] sm:$0x1] %v1044_v2 }
  0x88   : > { %v10705_v27 = vrot.slane %v1395_v10, 5  ;;  %v1401_v36 = vrot.slane %v1399_v7, 4  ;;  %734 = vst [vmem:[#allocation2 + $0x9c] sm:$0xf] %v733_v9  ;;  %v1381_v11 = vshll.u32 %v10703_v1, 16  ;;  %v8040_v38 = vrot.slane %v787_v21, 9 }
  0x89   : > { %v539_v39 = vor.u32 %v537_v58, %v536_v34  ;;  %v541_v40 = vrot.slane %v536_v34, 4  ;;  %v1368_v28 = vor.u32 %v1367_v14, %v1364_v16  ;;  %v543_v42 = vshrl.u32 %v10653_v60, 16  ;;  %v931_v35 = vld [vmem:[#allocation2 + $0x94] sm:$0x8]  ;;  %v200_v9 = vld [vmem:[%s10225_s21 + $0xe0] sm:$0xff] }
  0x8a   : > { %v1402_v53 = vor.u32 %v1401_v36, %v10705_v27  ;;  %v546_v19 = vshll.u32 %v10653_v60, 16  ;;  %v1383_v55 = vrot.slane %v1381_v11, 5  ;;  %v902_v41 = vsel %vm10250_vm8, %v8040_v38, %v901_v12  ;;  %v1046_v25 = vld [vmem:[#allocation2 + $0x98] sm:$0x1]  ;;  %v10724_v2 = vld [vmem:[#allocation2 + $0x94] sm:$0xf] }
  0x8b   : > { %v540_v59 = vsel %vm10236_vm6, %v532_v48, %v539_v39  ;;  %v737_v49 = vsel %vm10250_vm8, %v541_v40, %v736_v18  ;;  %v1369_v44 = vrot.slane %v1368_v28, 4  ;;  %v10717_v3 = vld [vmem:[#allocation2 + $0x84] sm:$0xf]  ;;  %903 = vst [vmem:[#allocation2 + $0x90] sm:$0x1] %v902_v41  ;;  %v8058_v0 = vrot.slane %v931_v35, 11 }
  0x8c   : > { %v1403_v6 = vrot.slane %v1402_v53, 4  ;;  %735 = vst.msk [vmem:[#allocation2 + $0xa0] sm:$0xf] %vm642_vm3, %v540_v59  ;;  %738 = vst [vmem:[#allocation2 + $0xa4] sm:$0x1] %v737_v49  ;;  %v545_v60 = vrot.slane %v543_v42, 7  ;;  %v1384_v10 = vsel %vm10357_vm13, %v1379_v61, %v1383_v55 }
  0x8d   : > { %v1386_v7 = vshrl.u32 %v10717_v3, 16  ;;  %v1389_v48 = vshll.u32 %v10717_v3, 16  ;;  %v551_v18 = vshrl.u32 %v10668_v33, 16  ;;  %v1374_v21 = vsel %vm10357_vm13, %v1369_v44, %v10666_v29  ;;  %v739_v61 = vld [vmem:[#allocation2 + $0xa8] sm:$0xf] }
  0x8e   : > { %v1047_v12 = vsel %vm10289_vm9, %v8058_v0, %v1046_v25  ;;  %v1419_v34 = vshll.u32 %v10724_v2, 16  ;;  %v1423_v58 = vshrl.u32 %v10724_v2, 16  ;;  %v10735_v16 = vcombine.low %v1374_v21, %v1384_v10  ;;  %v10737_v14 = vld [vmem:[#allocation2 + $0x8c] sm:$0x1]  ;;  %v743_v0 = vld [vmem:[#allocation2 + $0xb0] sm:$0x1] }
  0x8f   : > { %v1388_v36 = vrot.slane %v1386_v7, 4  ;;  %v1391_v11 = vrot.slane %v1389_v48, 5  ;;  %1048 = vst [vmem:[#allocation2 + $0x98] sm:$0x1] %v1047_v12  ;;  %v788_v38 = vld [vmem:[#allocation2 + $0x9c] sm:$0x2]  ;;  %v548_v39 = vor.u32 %v546_v19, %v545_v60 }
  0x90   : > { %13672 = vst [vmem:[#allocation9_spill] sm:$0xff] %v10735_v16  ;;  %v1405_v29 = vshll.u32 %v10737_v14, 16  ;;  %v10740_v40 = vrot.slane %v1419_v34, 5  ;;  %v1425_v28 = vrot.slane %v1423_v58, 4  ;;  %v8041_v53 = vrot.slane %v788_v38, 9  ;;  %8960 = vmatprep.mubr.msk.bf16.mxu0 %vm1802_vm12, %v10735_v16 }
  0x91   : > { %v904_v42 = vld [vmem:[#allocation2 + $0x9c] sm:$0x1]  ;;  %v1392_v55 = vor.u32 %v1391_v11, %v1388_v36  ;;  %v549_v41 = vrot.slane %v545_v60, 4  ;;  %v553_v35 = vrot.slane %v551_v18, 7  ;;  %v554_v25 = vshll.u32 %v10668_v33, 16 }
  0x92   : > { %v1407_v59 = vrot.slane %v1405_v29, 5  ;;  %v1426_v49 = vor.u32 %v1425_v28, %v10740_v40  ;;  %v905_v19 = vsel %vm10250_vm8, %v8041_v53, %v904_v42  ;;  %v740_v44 = vsel %vm10244_vm7, %v548_v39, %v739_v61  ;;  %v10750_v7 = vld [vmem:[#allocation2 + $0x90] sm:$0xf]  ;;  %v201_v61 = vld [vmem:[%s10225_s21 + $0xe8] sm:$0xff] }
  0x93   : > { %v1393_v10 = vrot.slane %v1392_v55, 4  ;;  %906 = vst [vmem:[#allocation2 + $0x9c] sm:$0x1] %v905_v19  ;;  %v932_v48 = vld [vmem:[#allocation2 + $0xa0] sm:$0x8]  ;;  %v556_v60 = vor.u32 %v554_v25, %v553_v35  ;;  %v558_v18 = vrot.slane %v553_v35, 4  ;;  %v8596_v33 = vpack.c.bf16 %v200_v9, %v200_v9 }
  0x94   : > { %741 = vst [vmem:[#allocation2 + $0xa8] sm:$0xf] %v740_v44  ;;  %v1408_v21 = vsel %vm10357_vm13, %v1403_v6, %v1407_v59  ;;  %v1410_v12 = vshrl.u32 %v10750_v7, 16  ;;  %v1413_v34 = vshll.u32 %v10750_v7, 16  ;;  %v1427_v58 = vrot.slane %v1426_v49, 4 }
  0x95   : > { %v1049_v36 = vld [vmem:[#allocation2 + $0xa4] sm:$0x1]  ;;  %v1398_v11 = vsel %vm10357_vm13, %v1393_v10, %v10705_v27  ;;  %v8059_v38 = vrot.slane %v932_v48, 11  ;;  %v10760_v39 = vld [vmem:[#allocation2 + $0xa0] sm:$0xf]  ;;  %v557_v9 = vsel %vm10236_vm6, %v549_v41, %v556_v60  ;;  %v744_v6 = vsel %vm10250_vm8, %v558_v18, %v743_v0 }
  0x96   : > { %v10766_v29 = vcombine.low %v1398_v11, %v1408_v21  ;;  %v10768_v28 = vld [vmem:[#allocation2 + $0x98] sm:$0x1]  ;;  %v1412_v53 = vrot.slane %v1410_v12, 4  ;;  %v1415_v42 = vrot.slane %v1413_v34, 5  ;;  %v1443_v55 = vshll.u32 %v10760_v39, 16 }
  0x97   : > { %742 = vst.msk [vmem:[#allocation2 + $0xac] sm:$0xf] %vm642_vm3, %v557_v9  ;;  %745 = vst [vmem:[#allocation2 + $0xb0] sm:$0x1] %v744_v6  ;;  %v1429_v27 = vshll.u32 %v10768_v28, 16  ;;  %v1050_v35 = vsel %vm10289_vm9, %v8059_v38, %v1049_v36  ;;  %v1447_v41 = vshrl.u32 %v10760_v39, 16  ;;  %v8597_v25 = vpack.c.bf16 %v201_v61, %v201_v61 }
  0x98   : > { %13673 = vst [vmem:[#allocation10_spill] sm:$0xff] %v10766_v29  ;;  %8961 = vmatmul.mubr.msk.bf16.gmra.mrb[20].mxu0 %vm1802_vm12, %v10766_v29  ;;  %v1416_v59 = vor.u32 %v1415_v42, %v1412_v53  ;;  %1051 = vst [vmem:[#allocation2 + $0xa4] sm:$0x1] %v1050_v35  ;;  %v1445_v49 = vrot.slane %v1443_v55, 5  ;;  %v560_v19 = vshrl.u32 %v8596_v33, 16  ;;  %v563_v44 = vshll.u32 %v8596_v33, 16 }
  0x99   : > { %v1431_v0 = vrot.slane %v1429_v27, 5  ;;  %v1449_v10 = vrot.slane %v1447_v41, 4  ;;  %v568_v48 = vshrl.u32 %v8597_v25, 16  ;;  %v746_v9 = vld [vmem:[#allocation2 + $0xb4] sm:$0xf]  ;;  %v571_v42 = vshll.u32 %v8597_v25, 16 }
  0x9a   : > { %v1417_v60 = vrot.slane %v1416_v59, 4  ;;  %v10778_v18 = vld [vmem:[#allocation2 + $0x9c] sm:$0xf]  ;;  %v562_v12 = vrot.slane %v560_v19, 7  ;;  %vm1625_vm14 = vcmask 1042432   ;;  %vm1626_vm15 = vcmask 1046532  }
  0x9b   : > { %v789_v21 = vld [vmem:[#allocation2 + $0xa8] sm:$0x2]  ;;  %v1432_v34 = vsel %vm10357_vm13, %v1427_v58, %v1431_v0  ;;  %v1434_v36 = vshrl.u32 %v10778_v18, 16  ;;  %v1437_v61 = vshll.u32 %v10778_v18, 16  ;;  %v1450_v11 = vor.u32 %v1449_v10, %v1445_v49  ;;  %v907_v38 = vld [vmem:[#allocation2 + $0xa8] sm:$0x1]  ;;  %vm10978_vm1 = vmor %vm1625_vm14, %vm1626_vm15 }
  0x9c   : > { %v1422_v33 = vsel %vm10357_vm13, %v1417_v60, %v10740_v40  ;;  %v8042_v6 = vrot.slane %v789_v21, 9  ;;  %v10787_v53 = vor.u32 %v563_v44, %v562_v12  ;;  %v566_v41 = vrot.slane %v562_v12, 4  ;;  %v750_v59 = vld [vmem:[#allocation2 + $0xbc] sm:$0x1] }
  0x9d   : > { %v10789_v55 = vcombine.low %v1422_v33, %v1432_v34  ;;  %v1436_v27 = vrot.slane %v1434_v36, 4  ;;  %v1439_v35 = vrot.slane %v1437_v61, 5  ;;  %v10795_v16 = vrot.slane %v568_v48, 7 }
  0x9e   : > { %13674 = vst [vmem:[#allocation11_spill] sm:$0xff] %v10787_v53  ;;  %v933_v58 = vld [vmem:[#allocation2 + $0xac] sm:$0x8]  ;;  %v908_v19 = vsel %vm10250_vm8, %v8042_v6, %v907_v38  ;;  %v1052_v10 = vld [vmem:[#allocation2 + $0xb0] sm:$0x1]  ;;  %v747_v40 = vsel %vm10244_vm7, %v10787_v53, %v746_v9  ;;  %v1451_v60 = vrot.slane %v1450_v11, 4 }
  0x9f   : > { %13675 = vst [vmem:[#allocation12_spill] sm:$0xff] %v10789_v55  ;;  %v8060_v0 = vrot.slane %v933_v58, 11  ;;  %v10793_v29 = vld [vmem:[#allocation2 + $0xac] sm:$0xf]  ;;  %13676 = vst [vmem:[#allocation13_spill] sm:$0xff] %v10795_v16  ;;  %8964 = vmatprep.mubr.msk.bf16.mxu0 %vm1802_vm12, %v10789_v55  ;;  %v1440_v44 = vor.u32 %v1439_v35, %v1436_v27  ;;  %v573_v36 = vor.u32 %v571_v42, %v10795_v16  ;;  %v13590_v61 = vrot.slane %v10795_v16, 4 }
  0xa0   : > { %v10802_v25 = vld [vmem:[#allocation2 + $0xa4] sm:$0x1]  ;;  %909 = vst [vmem:[#allocation2 + $0xa8] sm:$0x1] %v908_v19  ;;  %v1467_v21 = vshll.u32 %v10793_v29, 16  ;;  %v1471_v12 = vshrl.u32 %v10793_v29, 16 }
  0xa1   : > { %748 = vst [vmem:[#allocation2 + $0xb4] sm:$0xf] %v747_v40  ;;  %v1453_v48 = vshll.u32 %v10802_v25, 16  ;;  %v1053_v34 = vsel %vm10289_vm9, %v8060_v0, %v1052_v10  ;;  %v1441_v38 = vrot.slane %v1440_v44, 4  ;;  %v574_v6 = vsel %vm10236_vm6, %v566_v41, %v573_v36 }
  0xa2   : > { %1054 = vst [vmem:[#allocation2 + $0xb0] sm:$0x1] %v1053_v34  ;;  %v1469_v9 = vrot.slane %v1467_v21, 5  ;;  %v1473_v33 = vrot.slane %v1471_v12, 4  ;;  %v751_v27 = vsel %vm10250_vm8, %v13590_v61, %v750_v59  ;;  %749 = vst.msk [vmem:[#allocation2 + $0xb8] sm:$0xf] %vm642_vm3, %v574_v6  ;;  %v10927_v61 = vcombine.low %v10574_v63, %v10547_v24 }
  0xa3   : > { %v1455_v11 = vrot.slane %v1453_v48, 5  ;;  %v1446_v35 = vsel %vm10357_vm13, %v1441_v38, %v1445_v49  ;;  %752 = vst [vmem:[#allocation2 + $0xbc] sm:$0x1] %v751_v27  ;;  %771 = vst.msk [vmem:[#allocation2 + $0xd0] sm:$0xf] %vm642_vm3, %v574_v6 }
  0xa4   : > { %v1474_v58 = vor.u32 %v1473_v33, %v1469_v9 }
  0xa5   : > { %v1456_v42 = vsel %vm10357_vm13, %v1451_v60, %v1455_v11 }
  0xa6   : > { %v10823_v19 = vcombine.low %v1446_v35, %v1456_v42  ;;  %v1475_v21 = vrot.slane %v1474_v58, 4 }
  0xa7   : > { %v10825_v41 = vld [vmem:[#allocation2 + $0xa8] sm:$0xf] }
  0xa8   : > { %13677 = vst [vmem:[#allocation14_spill] sm:$0xff] %v10823_v19  ;;  %v790_v0 = vld [vmem:[#allocation2 + $0xb4] sm:$0x2]  ;;  %v910_v10 = vld [vmem:[#allocation2 + $0xb4] sm:$0x1]  ;;  %8965 = vmatmul.mubr.msk.bf16.gmra.mrb[24].mxu0 %vm1802_vm12, %v10823_v19  ;;  %v1458_v49 = vshrl.u32 %v10825_v41, 16 }
  0xa9   : > { %v1461_v59 = vshll.u32 %v10825_v41, 16  ;;  %v8043_v40 = vrot.slane %v790_v0, 9  ;;  %v10831_v44 = vld [vmem:[#allocation2 + $0xb0] sm:$0x1]  ;;  %v934_v36 = vld [vmem:[#allocation2 + $0xb8] sm:$0x8] }
  0xaa   : > { %v1460_v12 = vrot.slane %v1458_v49, 4  ;;  %v1477_v48 = vshll.u32 %v10831_v44, 16  ;;  %v1055_v38 = vld [vmem:[#allocation2 + $0xbc] sm:$0x1]  ;;  %v10836_v33 = vld [vmem:[#allocation2 + $0xb8] sm:$0xf] }
  0xab   : > { %v1463_v60 = vrot.slane %v1461_v59, 5  ;;  %v911_v34 = vsel %vm10250_vm8, %v8043_v40, %v910_v10  ;;  %v8061_v27 = vrot.slane %v934_v36, 11  ;;  %v1491_v35 = vshll.u32 %v10836_v33, 16 }
  0xac   : > { %912 = vst [vmem:[#allocation2 + $0xb4] sm:$0x1] %v911_v34  ;;  %v1479_v6 = vrot.slane %v1477_v48, 5  ;;  %v1495_v42 = vshrl.u32 %v10836_v33, 16 }
  0xad   : > { %v1464_v11 = vor.u32 %v1463_v60, %v1460_v12  ;;  %v1056_v49 = vsel %vm10289_vm9, %v8061_v27, %v1055_v38  ;;  %v1493_v10 = vrot.slane %v1491_v35, 5 }
  0xae   : > { %v1480_v0 = vsel %vm10357_vm13, %v1475_v21, %v1479_v6  ;;  %1057 = vst [vmem:[#allocation2 + $0xbc] sm:$0x1] %v1056_v49  ;;  %v1497_v59 = vrot.slane %v1495_v42, 4  ;;  %v10861_v49 = vld [vmem:[#allocation2 + $0x4] sm:$0xf] }
  0xaf   : > { %v1465_v58 = vrot.slane %v1464_v11, 4 }
  0xb0   : > { %v1498_v34 = vor.u32 %v1497_v59, %v1493_v10 }
  0xb1   : > { %v1470_v40 = vsel %vm10357_vm13, %v1465_v58, %v1469_v9 }
  0xb2   : > { %v10846_v12 = vcombine.low %v1470_v40, %v1480_v0  ;;  %v1499_v27 = vrot.slane %v1498_v34, 4  ;;  %v10113_v40 = vld [vmem:[#allocation2] sm:$0xf]  ;;  %v10115_v34 = vld [vmem:[#allocation2 + $0xc] sm:$0xf] }
  0xb3   : > { %v10848_v60 = vld [vmem:[#allocation2 + $0xb4] sm:$0xf]  ;;  %v8114_v59 = vcombine.low %v10113_v40, %v10861_v49 }
  0xb4   : > { %13678 = vst [vmem:[#allocation15_spill] sm:$0xff] %v10846_v12  ;;  %8968 = vmatprep.mubr.msk.bf16.mxu0 %vm1802_vm12, %v10846_v12  ;;  %v1482_v48 = vshrl.u32 %v10848_v60, 16  ;;  %v1485_v21 = vshll.u32 %v10848_v60, 16  ;;  %v10899_v40 = vld [vmem:[#allocation2 + $0x34] sm:$0xf] }
  0xb5   : > { %v10854_v11 = vld [vmem:[#allocation2 + $0xbc] sm:$0x1] }
  0xb6   : > { %v1484_v36 = vrot.slane %v1482_v48, 4  ;;  %v1487_v38 = vrot.slane %v1485_v21, 5  ;;  %v1501_v9 = vshll.u32 %v10854_v11, 16  ;;  %v10869_v21 = vld [vmem:[#allocation2 + $0x10] sm:$0xf] }
  0xb8   : > { %v1488_v6 = vor.u32 %v1487_v38, %v1484_v36  ;;  %v1503_v42 = vrot.slane %v1501_v9, 5  ;;  %v10874_v36 = vld [vmem:[#allocation2 + $0x1c] sm:$0xf]  ;;  %v10117_v38 = vld [vmem:[#allocation2 + $0x18] sm:$0xf] }
  0xba   : > { %v1489_v35 = vrot.slane %v1488_v6, 4  ;;  %v1504_v0 = vsel %vm10357_vm13, %v1499_v27, %v1503_v42  ;;  %v10877_v6 = vcombine.low %v10117_v38, %v10874_v36  ;;  %v10118_v27 = vld [vmem:[%s13583_s1 + $0x4] sm:$0x3]  ;;  %v10894_v42 = vld [vmem:[#allocation2 + $0x28] sm:$0xf] }
  0xbb   : > { %v2389_v9 = vsel %vm1851_vm0, %v10118_v27, 0  ;;  %v10123_v38 = vld [vmem:[#allocation2 + $0x3c] sm:$0xf]  ;;  %v10908_v27 = vld [vmem:[#allocation2 + $0x40] sm:$0xf] }
  0xbc   : > { %v1494_v58 = vsel %vm10357_vm13, %v1489_v35, %v1493_v10  ;;  %v10872_v10 = vcombine.low %v10115_v34, %v10869_v21  ;;  %v10886_v35 = vld [vmem:[%s13583_s1 + $0x6] sm:$0x3] }
  0xbd   : > { %v10864_v48 = vcombine.low %v1494_v58, %v1504_v0  ;;  %v10120_v58 = vld [vmem:[#allocation2 + $0x24] sm:$0xf] }
  0xbe   : > { %v10897_v0 = vcombine.low %v10120_v58, %v10894_v42  ;;  %v10915_v58 = vcombine.low %v10524_v50, %v10488_v5  ;;  %v202_v5 = vld [vmem:[%s10225_s21 + $0xf0] sm:$0xff] }
  0xbf   : > { %13679 = vst [vmem:[#allocation16_spill] sm:$0xff] %v10864_v48  ;;  %8969 = vmatmul.mubr.msk.bf16.gmra.mrb[28].mxu0 %vm1802_vm12, %v10864_v48  ;;  %v8598_v50 = vpack.c.bf16 %v202_v5, %v202_v5 }
  0xc0   : > { %8974 = vmatprep.mubr.msk.bf16.mxu0 %vm1802_vm12, %v8114_v59  ;;  %v10122_v59 = vld [vmem:[#allocation2 + $0x30] sm:$0xf] }
  0xc1   : > { %v10902_v34 = vcombine.low %v10122_v59, %v10899_v40  ;;  %v10923_v59 = vcombine.low %v10539_v15, %v10509_v32  ;;  %v577_v16 = vshrl.u32 %v8598_v50, 16  ;;  %v10940_v32 = vcombine.low %v10690_v51, %v10648_v57  ;;  %v203_v51 = vld [vmem:[%s10225_s21 + $0xf8] sm:$0xff] }
  0xc2   : > { %v580_v24 = vshll.u32 %v8598_v50, 16  ;;  %v8599_v50 = vpack.c.bf16 %v203_v51, %v203_v51  ;;  %v10967_v51 = vcombine.low %v10778_v18, %v10760_v39  ;;  %v13680_v18 = vmov 0 }
  0xc3   : > { %v579_v15 = vrot.slane %v577_v16, 7  ;;  %v10955_v16 = vcombine.low %v10750_v7, %v10724_v2  ;;  %v13681_v18 = vsel %vm10978_vm1, 4294967295, %v13680_v18 }
  0xc4   : > { %v585_v48 = vshrl.u32 %v8599_v50, 16  ;;  %13682 = vst [vmem:[#allocation17_spill] sm:$0xff] %v13681_v18  ;;  %v4529_v18 = vld [vmem:[#allocation2 + $0x54] sm:$0xf] }
  0xc5   : > { %v582_v63 = vor.u32 %v580_v24, %v579_v15  ;;  %v583_v12 = vrot.slane %v579_v15, 4 }
  0xc6   : > { %v10961_v24 = vrot.slane %v585_v48, 7  ;;  %v10971_v48 = vcombine.low %v10825_v41, %v10793_v29 }
  0xc7   : > { %8975 = vmatmul.mubr.msk.bf16.vlgmr.msra.gmra.mrb[0].mxu0 %vm1802_vm12, %v10872_v10  ;;  %v754_v5 = vsel %vm10244_vm7, %v582_v63, %v753_v52  ;;  %v588_v52 = vshll.u32 %v8599_v50, 16  ;;  %v1630_v63 = vrot.slane %v10861_v49, 5 }
  0xc8   : > { %9007 = vmatpush3.bf16.msra.mxu0 %v2389_v9  ;;  %8978 = vmatprep.mubr.msk.bf16.mxu0 %vm1802_vm12, %v10877_v6  ;;  %v10911_v9 = vcombine.low %v10123_v38, %v10908_v27  ;;  %v10936_v38 = vcombine.low %v10629_v23, %v10599_v47  ;;  %755 = vst [vmem:[#allocation2 + $0xc0] sm:$0xf] %v754_v5  ;;  %v1553_v5 = vld [vmem:[#allocation2] sm:$0xe] }
  0xc9   : > { %10065 = vmatprep.subr.msk.bf16.mxu0 %vm1851_vm0, %v10886_v35  ;;  %v10950_v23 = vcombine.low %v10717_v3, %v10684_v56  ;;  %v590_v19 = vor.u32 %v588_v52, %v10961_v24  ;;  %v8064_v50 = vrot.slane %v1553_v5, 9  ;;  %v1632_v52 = vrot.slane %v1630_v63, 4 }
  0xca   : > { %v1644_v5 = vrot.slane %v10874_v36, 5  ;;  %v1651_v36 = vrot.slane %v10894_v42, 5  ;;  %v2592_v42 = vsel %vm1851_vm0, %v10886_v35, 0 }
  0xcb   : > { %v591_v49 = vsel %vm10236_vm6, %v583_v12, %v590_v19  ;;  %v1637_v19 = vrot.slane %v10869_v21, 5  ;;  %v1554_v12 = vld [vmem:[#allocation2 + $0xc] sm:$0xe] }
  0xcc   : > { %756 = vst.msk [vmem:[#allocation2 + $0xc4] sm:$0xf] %vm642_vm3, %v591_v49  ;;  %v10994_v49 = vcombine.low %v10848_v60, %v10836_v33  ;;  %v8065_v53 = vrot.slane %v1554_v12, 9  ;;  %v1646_v22 = vrot.slane %v1644_v5, 4 }
  0xcd   : > { %v1639_v4 = vrot.slane %v1637_v19, 4 }
  0xcf   : > { %8979 = vmatmul.mubr.msk.bf16.gmra.mrb[4].mxu0 %vm1802_vm12, %v10897_v0  ;;  %v791_v3 = vld [vmem:[#allocation2 + $0xc0] sm:$0x2]  ;;  %v913_v55 = vld [vmem:[#allocation2 + $0xc0] sm:$0x1] }
  0xd0   : > { %8982 = vmatprep.mubr.msk.bf16.mxu0 %vm1802_vm12, %v10902_v34  ;;  %v8044_v7 = vrot.slane %v791_v3, 9  ;;  %v10125_v3 = vld [vmem:[#allocation2 + $0x8] sm:$0x1] }
  0xd1   : > { %v1633_v26 = vrot.slane %v10125_v3, 5 }
  0xd2   : > { %v914_v15 = vsel %vm10250_vm8, %v8044_v7, %v913_v55  ;;  %v1631_v55 = vsel %vm10978_vm1, %v8064_v50, %v1630_v63  ;;  %v1555_v7 = vld [vmem:[#allocation2 + $0x18] sm:$0xe]  ;;  %v1647_v63 = vrot.slane %v10127_v46, 5  ;;  %v1556_v46 = vld [vmem:[#allocation2 + $0x24] sm:$0xe] }
  0xd3   : > { %915 = vst [vmem:[#allocation2 + $0xc0] sm:$0x1] %v914_v15  ;;  %v1634_v41 = vsel %vm10978_vm1, %v1632_v52, %v1633_v26  ;;  %v10126_v15 = vld [vmem:[#allocation2 + $0x14] sm:$0x1]  ;;  %v8066_v21 = vrot.slane %v1555_v7, 9  ;;  %v1638_v26 = vsel %vm10978_vm1, %v8065_v53, %v1637_v19  ;;  %v8067_v53 = vrot.slane %v1556_v46, 9 }
  0xd4   : > { %v1640_v3 = vrot.slane %v10126_v15, 5  ;;  %v8146_v17 = vcombine.low %v1631_v55, %v1634_v41  ;;  %v1648_v52 = vsel %vm10978_vm1, %v1646_v22, %v1647_v63  ;;  %v1658_v55 = vrot.slane %v10899_v40, 5  ;;  %v1557_v41 = vld [vmem:[#allocation2 + $0x30] sm:$0xe]  ;;  %v10128_v7 = vld [vmem:[#allocation2 + $0x2c] sm:$0x1] }
  0xd5   : > { %v1645_v50 = vsel %vm10978_vm1, %v8066_v21, %v1644_v5  ;;  %v1653_v19 = vrot.slane %v1651_v36, 4  ;;  %v8068_v15 = vrot.slane %v1557_v41, 9  ;;  %v11018_v22 = vld [vmem:[%s13583_s1 + $0x8] sm:$0x3]  ;;  %v1652_v40 = vsel %vm10978_vm1, %v8067_v53, %v1651_v36 }
  0xd6   : > { %v1641_v60 = vsel %vm10978_vm1, %v1639_v4, %v1640_v3  ;;  %v1654_v4 = vrot.slane %v10128_v7, 5  ;;  %v1660_v5 = vrot.slane %v1658_v55, 4  ;;  %v10129_v3 = vld [vmem:[#allocation2 + $0x38] sm:$0x1]  ;;  %v1665_v63 = vrot.slane %v10908_v27, 5 }
  0xd7   : > { %8983 = vmatmul.mubr.msk.bf16.gmra.mrb[8].mxu0 %vm1802_vm12, %v10911_v9  ;;  %v11009_v12 = vcombine.low %v1638_v26, %v1641_v60  ;;  %v1661_v21 = vrot.slane %v10129_v3, 5  ;;  %v1659_v26 = vsel %vm10978_vm1, %v8068_v15, %v1658_v55  ;;  %v1559_v41 = vld [vmem:[#allocation2 + $0x48] sm:$0xe]  ;;  %v10131_v27 = vld [vmem:[#allocation2 + $0x44] sm:$0x1] }
  0xd8   : > { %8986 = vmatprep.mubr.msk.bf16.mxu0 %vm1802_vm12, %v10915_v58  ;;  %v1655_v35 = vsel %vm10978_vm1, %v1653_v19, %v1654_v4  ;;  %v1667_v19 = vrot.slane %v1665_v63, 4  ;;  %v1668_v4 = vrot.slane %v10131_v27, 5  ;;  %v10132_v15 = vld [vmem:[#allocation2 + $0x50] sm:$0x1]  ;;  %v1561_v27 = vld [vmem:[#allocation2 + $0x60] sm:$0xe] }
  0xd9   : > { %v1662_v60 = vsel %vm10978_vm1, %v1660_v5, %v1661_v21  ;;  %v11035_v7 = vcombine.low %v1652_v40, %v1655_v35  ;;  %v1675_v3 = vrot.slane %v10132_v15, 5  ;;  %v10133_v40 = vld [vmem:[#allocation2 + $0x58] sm:$0xf] }
  0xda   : > { %v11037_v36 = vcombine.low %v1659_v26, %v1662_v60  ;;  %v1669_v21 = vsel %vm10978_vm1, %v1667_v19, %v1668_v4  ;;  %v1679_v35 = vrot.slane %v10133_v40, 5  ;;  %v8072_v4 = vrot.slane %v1561_v27, 9 }
  0xdb   : > { %13684 = vst [vmem:[#allocation19_spill] sm:$0xff] %v11035_v7 }
  0xdc   : > { %13685 = vst [vmem:[#allocation20_spill] sm:$0xff] %v11037_v36 }
  0xdf   : > { %8987 = vmatmul.mubr.msk.bf16.gmra.mrb[12].mxu0 %vm1802_vm12, %v10923_v59 }
  0xe0   : > { %8990 = vmatprep.mubr.msk.bf16.mxu0 %vm1802_vm12, %v10927_v61 }
  0xe7   : > { %8991 = vmatmul.mubr.msk.bf16.gmra.mrb[16].mxu0 %vm1802_vm12, %v10936_v38 }
  0xe8   : > { %8994 = vmatprep.mubr.msk.bf16.mxu0 %vm1802_vm12, %v10940_v32 }
  0xef   : > { %8995 = vmatmul.mubr.msk.bf16.gmra.mrb[20].mxu0 %vm1802_vm12, %v10950_v23 }
  0xf0   : > { %8998 = vmatprep.mubr.msk.bf16.mxu0 %vm1802_vm12, %v10955_v16 }
  0xf7   : > { %8999 = vmatmul.mubr.msk.bf16.gmra.mrb[24].mxu0 %vm1802_vm12, %v10967_v51 }
  0xf8   : > { %9002 = vmatprep.mubr.msk.bf16.mxu0 %vm1802_vm12, %v10971_v48 }
  0xff   : > { %9003 = vmatmul.mubr.msk.bf16.gmra.mrb[28].mxu0 %vm1802_vm12, %v10994_v49 }
 0x100   : > { %9008 = vmatprep.mubr.msk.bf16.mxu0 %vm1802_vm12, %v8146_v17  ;;  %v11011_v17 = vcombine.low %v1645_v50, %v1648_v52  ;;  %v1558_v50 = vld [vmem:[#allocation2 + $0x3c] sm:$0xe]  ;;  %v10130_v52 = vld [vmem:[#allocation2 + $0x4c] sm:$0xf] }
 0x101   : > { %v1672_v46 = vrot.slane %v10130_v52, 5  ;;  %v8069_v53 = vrot.slane %v1558_v50, 9  ;;  %v1560_v50 = vld [vmem:[#allocation2 + $0x54] sm:$0xe]  ;;  %v10134_v52 = vld [vmem:[#allocation2 + $0x64] sm:$0xf] }
 0x102   : > { %13683 = vst [vmem:[#allocation18_spill] sm:$0xff] %v11011_v17 }
 0x103   : > { %v1674_v55 = vrot.slane %v1672_v46, 4  ;;  %v1666_v5 = vsel %vm10978_vm1, %v8069_v53, %v1665_v63  ;;  %v8071_v63 = vrot.slane %v1560_v50, 9  ;;  %v1681_v53 = vrot.slane %v1679_v35, 4 }
 0x104   : > { %v11051_v15 = vcombine.low %v1666_v5, %v1669_v21  ;;  %v1700_v5 = vrot.slane %v10648_v57, 5  ;;  %v1563_v21 = vld [vmem:[#allocation2 + $0x78] sm:$0xe] }
 0x105   : > { %v1676_v60 = vsel %vm10978_vm1, %v1674_v55, %v1675_v3  ;;  %v1693_v55 = vrot.slane %v10599_v47, 5  ;;  %v1562_v3 = vld [vmem:[#allocation2 + $0x6c] sm:$0xe]  ;;  %v8074_v27 = vrot.slane %v1563_v21, 9  ;;  %v757_v21 = vld [vmem:[#allocation2 + $0xc8] sm:$0x1] }
 0x106   : > { %v1702_v47 = vrot.slane %v1700_v5, 4 }
 0x107   : > { %9009 = vmatmul.mubr.msk.bf16.vlgmr.msra.gmra.mrb[0].mxu0 %vm1802_vm12, %v11009_v12  ;;  %v1695_v50 = vrot.slane %v1693_v55, 4 }
 0x108   : > { %9041 = vmatpush3.bf16.msra.mxu0 %v2592_v42  ;;  %9012 = vmatprep.mubr.msk.bf16.mxu0 %vm1802_vm12, %v11011_v17  ;;  %v8070_v42 = vrot.slane %v1559_v41, 9  ;;  %v1686_v41 = vrot.slane %v10134_v52, 5  ;;  %v1689_v17 = vrot.slane %v10597_v43, 5  ;;  %v1696_v52 = vrot.slane %v10658_v13, 5 }
 0x109   : > { %10066 = vmatprep.subr.msk.bf16.mxu0 %vm1851_vm0, %v11018_v22  ;;  %v1701_v13 = vsel %vm10978_vm1, %v8074_v27, %v1700_v5  ;;  %v1717_v5 = vrot.slane %v10768_v28, 5  ;;  %v1728_v27 = vrot.slane %v10793_v29, 5 }
 0x10a   : > { %v1673_v26 = vsel %vm10978_vm1, %v8070_v42, %v1672_v46  ;;  %v1688_v40 = vrot.slane %v1686_v41, 4  ;;  %v1680_v46 = vsel %vm10978_vm1, %v8071_v63, %v1679_v35  ;;  %v8073_v35 = vrot.slane %v1562_v3, 9 }
 0x10b   : > { %v1703_v63 = vrot.slane %v10703_v1, 5 }
 0x10c   : > { %v1690_v43 = vsel %vm10978_vm1, %v1688_v40, %v1689_v17  ;;  %v1694_v57 = vsel %vm10978_vm1, %v8073_v35, %v1693_v55  ;;  %v1697_v17 = vsel %vm10978_vm1, %v1695_v50, %v1696_v52  ;;  %v592_v40 = vrot.slane %v10961_v24, 4  ;;  %v1566_v52 = vld [vmem:[#allocation2 + $0x9c] sm:$0xe] }
 0x10d   : > { %v1704_v1 = vsel %vm10978_vm1, %v1702_v47, %v1703_v63  ;;  %v1721_v24 = vrot.slane %v10760_v39, 5  ;;  %v1567_v47 = vld [vmem:[#allocation2 + $0xa8] sm:$0xe] }
 0x10e   : > { %v758_v35 = vsel %vm10250_vm8, %v592_v40, %v757_v21  ;;  %v8078_v39 = vrot.slane %v1567_v47, 9  ;;  %v13687_v47 = vld [vmem:[#allocation7_spill] sm:$0xff] }
 0x10f   : > { %9013 = vmatmul.mubr.msk.bf16.gmra.mrb[4].mxu0 %vm1802_vm12, %v11035_v7  ;;  %v10135_v7 = vld [vmem:[#allocation2 + $0x5c] sm:$0x1]  ;;  %759 = vst [vmem:[#allocation2 + $0xc8] sm:$0x1] %v758_v35 }
 0x110   : > { %9016 = vmatprep.mubr.msk.bf16.mxu0 %vm1802_vm12, %v11037_v36  ;;  %v11053_v36 = vcombine.low %v1673_v26, %v1676_v60  ;;  %v1682_v19 = vrot.slane %v10135_v7, 5  ;;  %v1687_v7 = vsel %vm10978_vm1, %v8072_v4, %v1686_v41  ;;  %v1707_v41 = vrot.slane %v10684_v56, 5  ;;  %v1565_v4 = vld [vmem:[#allocation2 + $0x90] sm:$0xe] }
 0x111   : > { %v11072_v60 = vcombine.low %v1687_v7, %v1690_v43  ;;  %v1710_v56 = vrot.slane %v10737_v14, 5  ;;  %v8076_v43 = vrot.slane %v1565_v4, 9 }
 0x112   : > { %v1683_v42 = vsel %vm10978_vm1, %v1681_v53, %v1682_v19  ;;  %v1564_v53 = vld [vmem:[#allocation2 + $0x84] sm:$0xe]  ;;  %v1714_v19 = vrot.slane %v10724_v2, 5  ;;  %v1709_v7 = vrot.slane %v1707_v41, 4 }
 0x113   : > { %v11070_v26 = vcombine.low %v1680_v46, %v1683_v42  ;;  %v11091_v46 = vcombine.low %v1694_v57, %v1697_v17  ;;  %v11093_v42 = vcombine.low %v1701_v13, %v1704_v1  ;;  %v8075_v55 = vrot.slane %v1564_v53, 9  ;;  %v935_v1 = vld [vmem:[#allocation2 + $0xc4] sm:$0x8] }
 0x114   : > { %v1716_v3 = vrot.slane %v1714_v19, 4  ;;  %v1711_v14 = vsel %vm10978_vm1, %v1709_v7, %v1710_v56  ;;  %v1715_v28 = vsel %vm10978_vm1, %v8076_v43, %v1714_v19  ;;  %v8077_v17 = vrot.slane %v1566_v52, 9  ;;  %v1568_v43 = vld [vmem:[#allocation2 + $0xb4] sm:$0xe] }
 0x115   : > { %v1708_v2 = vsel %vm10978_vm1, %v8075_v55, %v1707_v41  ;;  %v1723_v41 = vrot.slane %v1721_v24, 4  ;;  %v1724_v13 = vrot.slane %v10802_v25, 5  ;;  %v1730_v53 = vrot.slane %v1728_v27, 4 }
 0x116   : > { %v1718_v50 = vsel %vm10978_vm1, %v1716_v3, %v1717_v5  ;;  %v11113_v63 = vcombine.low %v1708_v2, %v1711_v14  ;;  %v1731_v19 = vrot.slane %v10831_v44, 5  ;;  %v8062_v4 = vrot.slane %v935_v1, 11  ;;  %v1058_v40 = vld [vmem:[#allocation2 + $0xc8] sm:$0x1] }
 0x117   : > { %9017 = vmatmul.mubr.msk.bf16.gmra.mrb[8].mxu0 %vm1802_vm12, %v11051_v15  ;;  %v11115_v57 = vcombine.low %v1715_v28, %v1718_v50  ;;  %v1722_v55 = vsel %vm10978_vm1, %v8077_v17, %v1721_v24  ;;  %v1725_v25 = vsel %vm10978_vm1, %v1723_v41, %v1724_v13  ;;  %v1735_v7 = vrot.slane %v10836_v33, 5  ;;  %v209_v28 = vld [vmem:[%s13583_s1 + $0xa] sm:$0x3]  ;;  %v13688_v17 = vld [vmem:[#allocation8_spill] sm:$0xff]  ;;  %v13690_v13 = vld [vmem:[#allocation10_spill] sm:$0xff] }
 0x118   : > { %9020 = vmatprep.mubr.msk.bf16.mxu0 %vm1802_vm12, %v11053_v36  ;;  %v1059_v29 = vsel %vm10289_vm9, %v8062_v4, %v1058_v40  ;;  %v1729_v44 = vsel %vm10978_vm1, %v8078_v39, %v1728_v27  ;;  %v1732_v56 = vsel %vm10978_vm1, %v1730_v53, %v1731_v19  ;;  %v11134_v3 = vcombine.low %v1722_v55, %v1725_v25  ;;  %v210_v27 = vld [vmem:[%s13583_s1 + $0xc] sm:$0x3]  ;;  %v13691_v40 = vld [vmem:[#allocation11_spill] sm:$0xff] }
 0x119   : > { %1060 = vst [vmem:[#allocation2 + $0xc8] sm:$0x1] %v1059_v29  ;;  %v11136_v5 = vcombine.low %v1729_v44, %v1732_v56  ;;  %v8079_v21 = vrot.slane %v1568_v43, 9  ;;  %v1737_v35 = vrot.slane %v1735_v7, 4  ;;  %v1738_v2 = vrot.slane %v10854_v11, 5  ;;  %v13689_v41 = vld [vmem:[#allocation9_spill] sm:$0xff] }
 0x11a   : > { %v2794_v11 = vsel %vm1851_vm0, %v11018_v22, 0  ;;  %v11187_v22 = vld [vmem:[#allocation2 + $0xc4] sm:$0xf]  ;;  %v2996_v52 = vsel %vm1851_vm0, %v209_v28, 0  ;;  %v768_v4 = vld [vmem:[#allocation2 + $0xcc] sm:$0xf] }
 0x11b   : > { %v1736_v33 = vsel %vm10978_vm1, %v8079_v21, %v1735_v7  ;;  %v1739_v14 = vsel %vm10978_vm1, %v1737_v35, %v1738_v2  ;;  %v1515_v53 = vshll.u32 %v11187_v22, 16  ;;  %v1519_v19 = vshrl.u32 %v11187_v22, 16  ;;  %v13693_v21 = vld [vmem:[#allocation12_spill] sm:$0xff]  ;;  %v13694_v35 = vld [vmem:[#allocation14_spill] sm:$0xff] }
 0x11c   : > { %v11147_v24 = vcombine.low %v1736_v33, %v1739_v14  ;;  %v769_v55 = vsel %vm10244_vm7, %v13691_v40, %v768_v4 }
 0x11d   : > { %770 = vst [vmem:[#allocation2 + $0xcc] sm:$0xf] %v769_v55  ;;  %v1517_v44 = vrot.slane %v1515_v53, 5  ;;  %v1521_v56 = vrot.slane %v1519_v19, 4  ;;  %v13696_v53 = vld [vmem:[#allocation16_spill] sm:$0xff] }
 0x11f   : > { %9021 = vmatmul.mubr.msk.bf16.gmra.mrb[12].mxu0 %vm1802_vm12, %v11070_v26  ;;  %v1522_v33 = vor.u32 %v1521_v56, %v1517_v44  ;;  %v3199_v56 = vsel %vm1851_vm0, %v210_v27, 0 }
 0x120   : > { %9024 = vmatprep.mubr.msk.bf16.mxu0 %vm1802_vm12, %v11072_v60  ;;  %v1116_v43 = vld [vmem:[#allocation2 + $0xc8] sm:$0x1] }
 0x121   : > { %v1525_v14 = vshll.u32 %v1116_v43, 16  ;;  %v1523_v4 = vrot.slane %v1522_v33, 4  ;;  %v13698_v33 = vld [vmem:[#allocation18_spill] sm:$0xff] }
 0x123   : > { %v1527_v40 = vrot.slane %v1525_v14, 5  ;;  %v13700_v14 = vld [vmem:[#allocation20_spill] sm:$0xff] }
 0x127   : > { %9025 = vmatmul.mubr.msk.bf16.gmra.mrb[16].mxu0 %vm1802_vm12, %v11091_v46 }
 0x128   : > { %9028 = vmatprep.mubr.msk.bf16.mxu0 %vm1802_vm12, %v11093_v42 }
 0x12f   : > { %9029 = vmatmul.mubr.msk.bf16.gmra.mrb[20].mxu0 %vm1802_vm12, %v11113_v63 }
 0x130   : > { %9032 = vmatprep.mubr.msk.bf16.mxu0 %vm1802_vm12, %v11115_v57 }
 0x137   : > { %9033 = vmatmul.mubr.msk.bf16.gmra.mrb[24].mxu0 %vm1802_vm12, %v11134_v3 }
 0x138   : > { %9036 = vmatprep.mubr.msk.bf16.mxu0 %vm1802_vm12, %v11136_v5 }
 0x13f   : > { %9037 = vmatmul.mubr.msk.bf16.gmra.mrb[28].mxu0 %vm1802_vm12, %v11147_v24 }
 0x140   : > { %9042 = vmatprep.mubr.msk.bf16.mxu0 %vm1802_vm12, %v10872_v10  ;;  %v1096_v10 = vld [vmem:[#allocation2 + $0xc0] sm:$0xf] }
 0x141   : > { %v11190_v50 = vcombine.low %v1096_v10, %v11187_v22  ;;  %v1506_v1 = vshrl.u32 %v1096_v10, 16  ;;  %v1509_v39 = vshll.u32 %v1096_v10, 16  ;;  %v916_v10 = vld [vmem:[#allocation2 + $0xcc] sm:$0x1] }
 0x143   : > { %v1508_v25 = vrot.slane %v1506_v1, 4  ;;  %v1511_v7 = vrot.slane %v1509_v39, 5  ;;  %v13695_v39 = vld [vmem:[#allocation15_spill] sm:$0xff] }
 0x145   : > { %v1512_v2 = vor.u32 %v1511_v7, %v1508_v25  ;;  %v1528_v25 = vsel %vm10357_vm13, %v1523_v4, %v1527_v40 }
 0x147   : > { %9043 = vmatmul.mubr.msk.bf16.vlgmr.msra.gmra.mrb[0].mxu0 %vm1802_vm12, %v10877_v6 }
 0x148   : > { %9075 = vmatpush3.bf16.msra.mxu0 %v2794_v11  ;;  %9046 = vmatprep.mubr.msk.bf16.mxu0 %vm1802_vm12, %v10897_v0  ;;  %v792_v11 = vld [vmem:[#allocation2 + $0xcc] sm:$0x2] }
 0x149   : > { %10067 = vmatprep.subr.msk.bf16.mxu0 %vm1851_vm0, %v209_v28  ;;  %v8045_v28 = vrot.slane %v792_v11, 9 }
 0x14b   : > { %v917_v1 = vsel %vm10250_vm8, %v8045_v28, %v916_v10  ;;  %v936_v10 = vld [vmem:[#allocation2 + $0xd0] sm:$0x8] }
 0x14c   : > { %918 = vst [vmem:[#allocation2 + $0xcc] sm:$0x1] %v917_v1  ;;  %v1742_v1 = vrot.slane %v11187_v22, 5 }
 0x14f   : > { %9047 = vmatmul.mubr.msk.bf16.gmra.mrb[4].mxu0 %vm1802_vm12, %v10902_v34 }
 0x150   : > { %9050 = vmatprep.mubr.msk.bf16.mxu0 %vm1802_vm12, %v10911_v9 }
 0x157   : > { %9051 = vmatmul.mubr.msk.bf16.gmra.mrb[8].mxu0 %vm1802_vm12, %v10915_v58 }
 0x158   : > { %9054 = vmatprep.mubr.msk.bf16.mxu0 %vm1802_vm12, %v10923_v59 }
 0x15f   : > { %9055 = vmatmul.mubr.msk.bf16.gmra.mrb[12].mxu0 %vm1802_vm12, %v10927_v61 }
 0x160   : > { %9058 = vmatprep.mubr.msk.bf16.mxu0 %vm1802_vm12, %v10936_v38 }
 0x167   : > { %9059 = vmatmul.mubr.msk.bf16.gmra.mrb[16].mxu0 %vm1802_vm12, %v10940_v32 }
 0x168   : > { %9062 = vmatprep.mubr.msk.bf16.mxu0 %vm1802_vm12, %v10950_v23 }
 0x16f   : > { %9063 = vmatmul.mubr.msk.bf16.gmra.mrb[20].mxu0 %vm1802_vm12, %v10955_v16 }
 0x170   : > { %9066 = vmatprep.mubr.msk.bf16.mxu0 %vm1802_vm12, %v10967_v51 }
 0x177   : > { %9067 = vmatmul.mubr.msk.bf16.gmra.mrb[24].mxu0 %vm1802_vm12, %v10971_v48 }
 0x178   : > { %9070 = vmatprep.mubr.msk.bf16.mxu0 %vm1802_vm12, %v10994_v49 }
 0x17f   : > { %9071 = vmatmul.mubr.msk.bf16.gmra.mrb[28].mxu0 %vm1802_vm12, %v11190_v50 }
 0x180   : > { %9076 = vmatprep.mubr.msk.bf16.mxu0 %vm1802_vm12, %v10387_v62  ;;  %v13686_v62 = vld [vmem:[#allocation6_spill] sm:$0xff] }
 0x187   : > { %9077 = vmatmul.mubr.msk.bf16.vlgmr.msra.gmra.mrb[0].mxu0 %vm1802_vm12, %v10395_v8 }
 0x188   : > { %9109 = vmatpush3.bf16.msra.mxu0 %v2996_v52  ;;  %9080 = vmatprep.mubr.msk.bf16.mxu0 %vm1802_vm12, %v10416_v30  ;;  %v1513_v52 = vrot.slane %v1512_v2, 4  ;;  %v211_v2 = vld [vmem:[%s13583_s1 + $0xe] sm:$0x3] }
 0x189   : > { %10068 = vmatprep.subr.msk.bf16.mxu0 %vm1851_vm0, %v210_v27  ;;  %v13701_v27 = vld [vmem:[#allocation13_spill] sm:$0xff]  ;;  %v3401_v22 = vsel %vm1851_vm0, %v211_v2, 0 }
 0x18a   : > { %v1518_v55 = vsel %vm10357_vm13, %v1513_v52, %v1517_v44  ;;  %v13699_v44 = vld [vmem:[#allocation19_spill] sm:$0xff]  ;;  %v13702_v11 = vrot.slane %v13701_v27, 4  ;;  %v8063_v52 = vrot.slane %v936_v10, 11 }
 0x18b   : > { %v11240_v7 = vcombine.low %v1518_v55, %v1528_v25  ;;  %v1569_v55 = vld [vmem:[#allocation2 + $0xc0] sm:$0xe] }
 0x18c   : > { %v8080_v25 = vrot.slane %v1569_v55, 9 }
 0x18e   : > { %v1743_v27 = vsel %vm10978_vm1, %v8080_v25, %v1742_v1 }
 0x18f   : > { %9081 = vmatmul.mubr.msk.bf16.gmra.mrb[4].mxu0 %vm1802_vm12, %v10463_v37 }
 0x190   : > { %9084 = vmatprep.mubr.msk.bf16.mxu0 %vm1802_vm12, %v10528_v54 }
 0x197   : > { %9085 = vmatmul.mubr.msk.bf16.gmra.mrb[8].mxu0 %vm1802_vm12, %v10564_v45 }
 0x198   : > { %9088 = vmatprep.mubr.msk.bf16.mxu0 %vm1802_vm12, %v13686_v62 }
 0x19f   : > { %9089 = vmatmul.mubr.msk.bf16.gmra.mrb[12].mxu0 %vm1802_vm12, %v13687_v47 }
 0x1a0   : > { %9092 = vmatprep.mubr.msk.bf16.mxu0 %vm1802_vm12, %v13688_v17 }
 0x1a7   : > { %9093 = vmatmul.mubr.msk.bf16.gmra.mrb[16].mxu0 %vm1802_vm12, %v13689_v41 }
 0x1a8   : > { %9096 = vmatprep.mubr.msk.bf16.mxu0 %vm1802_vm12, %v13690_v13 }
 0x1af   : > { %9097 = vmatmul.mubr.msk.bf16.gmra.mrb[20].mxu0 %vm1802_vm12, %v13693_v21 }
 0x1b0   : > { %9100 = vmatprep.mubr.msk.bf16.mxu0 %vm1802_vm12, %v13694_v35 }
 0x1b7   : > { %9101 = vmatmul.mubr.msk.bf16.gmra.mrb[24].mxu0 %vm1802_vm12, %v13695_v39 }
 0x1b8   : > { %9104 = vmatprep.mubr.msk.bf16.mxu0 %vm1802_vm12, %v13696_v53 }
 0x1bf   : > { %9105 = vmatmul.mubr.msk.bf16.gmra.mrb[28].mxu0 %vm1802_vm12, %v11240_v7 }
 0x1c0   : > { %9110 = vmatprep.mubr.msk.bf16.mxu0 %vm1802_vm12, %v11009_v12  ;;  %v772_v12 = vld [vmem:[#allocation2 + $0xd4] sm:$0x1] }
 0x1c1   : > { %v773_v28 = vsel %vm10250_vm8, %v13702_v11, %v772_v12  ;;  %v1745_v12 = vrot.slane %v1116_v43, 5  ;;  %v212_v43 = vld [vmem:[%s13583_s1 + $0x10] sm:$0x3] }
 0x1c2   : > { %774 = vst [vmem:[#allocation2 + $0xd4] sm:$0x1] %v773_v28 }
 0x1c7   : > { %9111 = vmatmul.mubr.msk.bf16.vlgmr.msra.gmra.mrb[0].mxu0 %vm1802_vm12, %v13698_v33 }
 0x1c8   : > { %9143 = vmatpush3.bf16.msra.mxu0 %v3199_v56  ;;  %9114 = vmatprep.mubr.msk.bf16.mxu0 %vm1802_vm12, %v13699_v44  ;;  %v1744_v56 = vrot.slane %v1742_v1, 4 }
 0x1c9   : > { %10069 = vmatprep.subr.msk.bf16.mxu0 %vm1851_vm0, %v211_v2  ;;  %v1061_v4 = vld [vmem:[#allocation2 + $0xd4] sm:$0x1] }
 0x1ca   : > { %v1062_v40 = vsel %vm10289_vm9, %v8063_v52, %v1061_v4  ;;  %v1746_v11 = vsel %vm10978_vm1, %v1744_v56, %v1745_v12 }
 0x1cb   : > { %1063 = vst [vmem:[#allocation2 + $0xd4] sm:$0x1] %v1062_v40  ;;  %v11290_v28 = vcombine.low %v1743_v27, %v1746_v11 }
 0x1cf   : > { %9115 = vmatmul.mubr.msk.bf16.gmra.mrb[4].mxu0 %vm1802_vm12, %v13700_v14 }
 0x1d0   : > { %9118 = vmatprep.mubr.msk.bf16.mxu0 %vm1802_vm12, %v11051_v15 }
 0x1d7   : > { %9119 = vmatmul.mubr.msk.bf16.gmra.mrb[8].mxu0 %vm1802_vm12, %v11053_v36 }
 0x1d8   : > { %9122 = vmatprep.mubr.msk.bf16.mxu0 %vm1802_vm12, %v11070_v26 }
 0x1df   : > { %9123 = vmatmul.mubr.msk.bf16.gmra.mrb[12].mxu0 %vm1802_vm12, %v11072_v60 }
 0x1e0   : > { %9126 = vmatprep.mubr.msk.bf16.mxu0 %vm1802_vm12, %v11091_v46 }
 0x1e7   : > { %9127 = vmatmul.mubr.msk.bf16.gmra.mrb[16].mxu0 %vm1802_vm12, %v11093_v42 }
 0x1e8   : > { %9130 = vmatprep.mubr.msk.bf16.mxu0 %vm1802_vm12, %v11113_v63 }
 0x1ef   : > { %9131 = vmatmul.mubr.msk.bf16.gmra.mrb[20].mxu0 %vm1802_vm12, %v11115_v57 }
 0x1f0   : > { %9134 = vmatprep.mubr.msk.bf16.mxu0 %vm1802_vm12, %v11134_v3 }
 0x1f7   : > { %9135 = vmatmul.mubr.msk.bf16.gmra.mrb[24].mxu0 %vm1802_vm12, %v11136_v5 }
 0x1f8   : > { %9138 = vmatprep.mubr.msk.bf16.mxu0 %vm1802_vm12, %v11147_v24 }
 0x1ff   : > { %9139 = vmatmul.mubr.msk.bf16.gmra.mrb[28].mxu0 %vm1802_vm12, %v11290_v28 }
 0x200   : > { %9144 = vmatprep.mubr.msk.bf16.mxu0 %vm1802_vm12, %v10877_v6  ;;  %v1099_v6 = vld [vmem:[#allocation2 + $0xd0] sm:$0xf] }
 0x207   : > { %9145 = vmatmul.mubr.msk.bf16.vlgmr.msra.gmra.mrb[0].mxu0 %vm1802_vm12, %v10897_v0 }
 0x208   : > { %9177 = vmatpush3.bf16.msra.mxu0 %v3401_v22  ;;  %9148 = vmatprep.mubr.msk.bf16.mxu0 %vm1802_vm12, %v10902_v34  ;;  %v3603_v34 = vsel %vm1851_vm0, %v212_v43, 0 }
 0x209   : > { %10070 = vmatprep.subr.msk.bf16.mxu0 %vm1851_vm0, %v212_v43 }
 0x20f   : > { %9149 = vmatmul.mubr.msk.bf16.gmra.mrb[4].mxu0 %vm1802_vm12, %v10911_v9 }
 0x210   : > { %9152 = vmatprep.mubr.msk.bf16.mxu0 %vm1802_vm12, %v10915_v58 }
 0x217   : > { %9153 = vmatmul.mubr.msk.bf16.gmra.mrb[8].mxu0 %vm1802_vm12, %v10923_v59 }
 0x218   : > { %9156 = vmatprep.mubr.msk.bf16.mxu0 %vm1802_vm12, %v10927_v61  ;;  %v1098_v61 = vld [vmem:[#allocation2 + $0xcc] sm:$0xf] }
 0x219   : > { %v8229_v0 = vcombine.low %v1098_v61, %v1099_v6 }
 0x21f   : > { %9157 = vmatmul.mubr.msk.bf16.gmra.mrb[12].mxu0 %vm1802_vm12, %v10936_v38  ;;  %v1117_v38 = vld [vmem:[#allocation2 + $0xd4] sm:$0x1] }
 0x220   : > { %9160 = vmatprep.mubr.msk.bf16.mxu0 %vm1802_vm12, %v10940_v32 }
 0x227   : > { %9161 = vmatmul.mubr.msk.bf16.gmra.mrb[16].mxu0 %vm1802_vm12, %v10950_v23 }
 0x228   : > { %9164 = vmatprep.mubr.msk.bf16.mxu0 %vm1802_vm12, %v10955_v16  ;;  %v1549_v16 = vshll.u32 %v1117_v38, 16 }
 0x22f   : > { %9165 = vmatmul.mubr.msk.bf16.gmra.mrb[20].mxu0 %vm1802_vm12, %v10967_v51 }
 0x230   : > { %9168 = vmatprep.mubr.msk.bf16.mxu0 %vm1802_vm12, %v10971_v48 }
 0x237   : > { %9169 = vmatmul.mubr.msk.bf16.gmra.mrb[24].mxu0 %vm1802_vm12, %v10994_v49  ;;  %v1551_v49 = vrot.slane %v1549_v16, 5 }
 0x238   : > { %9172 = vmatprep.mubr.msk.bf16.mxu0 %vm1802_vm12, %v11190_v50 }
 0x23f   : > { %9173 = vmatmul.mubr.msk.bf16.gmra.mrb[28].mxu0 %vm1802_vm12, %v8229_v0 }
 0x240   : > { %9178 = vmatprep.mubr.msk.bf16.mxu0 %vm1802_vm12, %v10395_v8  ;;  %v1530_v8 = vshrl.u32 %v1098_v61, 16 }
 0x247   : > { %9179 = vmatmul.mubr.msk.bf16.vlgmr.msra.gmra.mrb[0].mxu0 %vm1802_vm12, %v10416_v30  ;;  %v1533_v30 = vshll.u32 %v1098_v61, 16 }
 0x248   : > { %9211 = vmatpush3.bf16.msra.mxu0 %v3603_v34  ;;  %9182 = vmatprep.mubr.msk.bf16.mxu0 %vm1802_vm12, %v10463_v37  ;;  %v1539_v37 = vshll.u32 %v1099_v6, 16 }
 0x249   : > { %v1535_v9 = vrot.slane %v1533_v30, 5 }
 0x24a   : > { %v1541_v58 = vrot.slane %v1539_v37, 5 }
 0x24f   : > { %9183 = vmatmul.mubr.msk.bf16.gmra.mrb[4].mxu0 %vm1802_vm12, %v10528_v54  ;;  %v1543_v54 = vshrl.u32 %v1099_v6, 16 }
 0x250   : > { %9186 = vmatprep.mubr.msk.bf16.mxu0 %vm1802_vm12, %v10564_v45  ;;  %v1532_v45 = vrot.slane %v1530_v8, 4 }
 0x251   : > { %v1545_v59 = vrot.slane %v1543_v54, 4 }
 0x252   : > { %v1536_v32 = vor.u32 %v1535_v9, %v1532_v45 }
 0x253   : > { %v1546_v23 = vor.u32 %v1545_v59, %v1541_v58 }
 0x254   : > { %v1537_v51 = vrot.slane %v1536_v32, 4 }
 0x255   : > { %v1547_v48 = vrot.slane %v1546_v23, 4 }
 0x256   : > { %v1542_v50 = vsel %vm10357_vm13, %v1537_v51, %v1541_v58 }
 0x257   : > { %9187 = vmatmul.mubr.msk.bf16.gmra.mrb[8].mxu0 %vm1802_vm12, %v13686_v62  ;;  %v1552_v62 = vsel %vm10357_vm13, %v1547_v48, %v1551_v49 }
 0x258   : > { %9190 = vmatprep.mubr.msk.bf16.mxu0 %vm1802_vm12, %v13687_v47  ;;  %v8246_v47 = vcombine.low %v1542_v50, %v1552_v62 }
 0x25f   : > { %9191 = vmatmul.mubr.msk.bf16.gmra.mrb[12].mxu0 %vm1802_vm12, %v13688_v17 }
 0x260   : > { %9194 = vmatprep.mubr.msk.bf16.mxu0 %vm1802_vm12, %v13689_v41 }
 0x267   : > { %9195 = vmatmul.mubr.msk.bf16.gmra.mrb[16].mxu0 %vm1802_vm12, %v13690_v13 }
 0x268   : > { %9198 = vmatprep.mubr.msk.bf16.mxu0 %vm1802_vm12, %v13693_v21 }
 0x26f   : > { %9199 = vmatmul.mubr.msk.bf16.gmra.mrb[20].mxu0 %vm1802_vm12, %v13694_v35 }
 0x270   : > { %9202 = vmatprep.mubr.msk.bf16.mxu0 %vm1802_vm12, %v13695_v39 }
 0x277   : > { %9203 = vmatmul.mubr.msk.bf16.gmra.mrb[24].mxu0 %vm1802_vm12, %v13696_v53 }
 0x278   : > { %9206 = vmatprep.mubr.msk.bf16.mxu0 %vm1802_vm12, %v11240_v7 }
 0x27f   : > { %9207 = vmatmul.mubr.msk.bf16.gmra.mrb[28].mxu0 %vm1802_vm12, %v8246_v47 }
 0x280   : > { %9212 = vmatprep.mubr.msk.bf16.mxu0 %vm1802_vm12, %v13698_v33 }
 0x287   : > { %9213 = vmatmul.mubr.msk.bf16.vlgmr.msra.gmra.mrb[0].mxu0 %vm1802_vm12, %v13699_v44 }
 0x288   : > { %9216 = vmatprep.mubr.msk.bf16.mxu0 %vm1802_vm12, %v13700_v14 }
 0x28f   : > { %9217 = vmatmul.mubr.msk.bf16.gmra.mrb[4].mxu0 %vm1802_vm12, %v11051_v15  ;;  %v1570_v15 = vld [vmem:[#allocation2 + $0xcc] sm:$0xe] }
 0x290   : > { %9220 = vmatprep.mubr.msk.bf16.mxu0 %vm1802_vm12, %v11053_v36  ;;  %v1749_v36 = vrot.slane %v1099_v6, 5 }
 0x297   : > { %9221 = vmatmul.mubr.msk.bf16.gmra.mrb[8].mxu0 %vm1802_vm12, %v11070_v26  ;;  %v8081_v26 = vrot.slane %v1570_v15, 9 }
 0x298   : > { %9224 = vmatprep.mubr.msk.bf16.mxu0 %vm1802_vm12, %v11072_v60  ;;  %v1751_v60 = vrot.slane %v1749_v36, 4 }
 0x29f   : > { %9225 = vmatmul.mubr.msk.bf16.gmra.mrb[12].mxu0 %vm1802_vm12, %v11091_v46  ;;  %v1752_v46 = vrot.slane %v1117_v38, 5 }
 0x2a0   : > { %9228 = vmatprep.mubr.msk.bf16.mxu0 %vm1802_vm12, %v11093_v42  ;;  %v1750_v42 = vsel %vm10978_vm1, %v8081_v26, %v1749_v36 }
 0x2a7   : > { %9229 = vmatmul.mubr.msk.bf16.gmra.mrb[16].mxu0 %vm1802_vm12, %v11113_v63  ;;  %v1753_v63 = vsel %vm10978_vm1, %v1751_v60, %v1752_v46 }
 0x2a8   : > { %9232 = vmatprep.mubr.msk.bf16.mxu0 %vm1802_vm12, %v11115_v57  ;;  %v8263_v57 = vcombine.low %v1750_v42, %v1753_v63 }
 0x2af   : > { %9233 = vmatmul.mubr.msk.bf16.gmra.mrb[20].mxu0 %vm1802_vm12, %v11134_v3  ;;  %v11404_v3 = vld [vmem:[%s13584_s2 + $0x2] sm:$0x3] }
 0x2b0   : > { %9236 = vmatprep.mubr.msk.bf16.mxu0 %vm1802_vm12, %v11136_v5  ;;  %10071 = vmatprep.subr.msk.bf16.mxu1 %vm1851_vm0, %v11404_v3 }
 0x2b7   : > { %9237 = vmatmul.mubr.msk.bf16.gmra.mrb[24].mxu0 %vm1802_vm12, %v11147_v24 }
 0x2b8   : > { %9240 = vmatprep.mubr.msk.bf16.mxu0 %vm1802_vm12, %v11290_v28 }
 0x2bf   : > { %9241 = vmatmul.mubr.msk.bf16.gmra.mrb[28].mxu0 %vm1802_vm12, %v8263_v57 }
 0x35a   : > { %v11408_v5 = vpop.f32.mrb[0].mxu0 }
 0x35b   : > { %v11410_v24 = vpop.f32.mrb[1].mxu0  ;;  %v3869_v21 = vmul.f32 %v11408_v5, %v11408_v5  ;;  %v3801_v2 = vsel %vm1802_vm12, %v11408_v5, 0.0 }
 0x35c   : > { %v3867_v17 = vmul.f32 %v11410_v24, %v11410_v24  ;;  %v11414_v41 = vpop.f32.mrb[2].mxu0  ;;  %v3798_v35 = vsel %vm1802_vm12, %v11410_v24, 0.0 }
 0x35d   : > { %v11416_v13 = vpop.f32.mrb[3].mxu0  ;;  %v3870_v44 = vmul.f32 %v11414_v41, %v11414_v41  ;;  %v3902_v4 = vsel %vm1802_vm12, %v3869_v21, 0.0  ;;  %v3803_v40 = vsel %vm1802_vm12, %v11414_v41, 0.0 }
 0x35e   : > { %v3799_v39 = vsel %vm1802_vm12, %v11416_v13, 0.0  ;;  %v3868_v53 = vmul.f32 %v11416_v13, %v11416_v13  ;;  %v3899_v33 = vsel %vm1802_vm12, %v3867_v17, 0.0 }
 0x35f   : > { %v3800_v7 = vadd.f32 %v3799_v39, %v3798_v35  ;;  %v3904_v12 = vsel %vm1802_vm12, %v3870_v44, 0.0 }
 0x360   : > { %v3900_v14 = vsel %vm1802_vm12, %v3868_v53, 0.0 }
 0x361   : > { %v3802_v10 = vadd.f32 %v3801_v2, %v3800_v7  ;;  %v3901_v52 = vadd.f32 %v3900_v14, %v3899_v33 }
 0x362   : > { %v11435_v1 = vpop.f32.mrb[4].mxu0 }
 0x363   : > { %v3903_v55 = vadd.f32 %v3902_v4, %v3901_v52  ;;  %v11437_v25 = vpop.f32.mrb[5].mxu0  ;;  %v3804_v56 = vadd.f32 %v3803_v40, %v3802_v10  ;;  %v3873_v6 = vmul.f32 %v11435_v1, %v11435_v1  ;;  %v3809_v54 = vsel %vm1802_vm12, %v11435_v1, 0.0 }
 0x364   : > { %v3805_v27 = vsel %vm1802_vm12, %v11437_v25, 0.0  ;;  %v3871_v11 = vmul.f32 %v11437_v25, %v11437_v25  ;;  %v11444_v28 = vpop.f32.mrb[6].mxu0 }
 0x365   : > { %v3806_v22 = vadd.f32 %v3805_v27, %v3804_v56  ;;  %v3905_v43 = vadd.f32 %v3904_v12, %v3903_v55  ;;  %v11446_v61 = vpop.f32.mrb[7].mxu0  ;;  %v3874_v45 = vmul.f32 %v11444_v28, %v11444_v28  ;;  %v3910_v38 = vsel %vm1802_vm12, %v3873_v6, 0.0 }
 0x366   : > { %v3906_v0 = vsel %vm1802_vm12, %v3871_v11, 0.0  ;;  %v3807_v34 = vsel %vm1802_vm12, %v11446_v61, 0.0  ;;  %v3872_v8 = vmul.f32 %v11446_v61, %v11446_v61  ;;  %v3811_v32 = vsel %vm1802_vm12, %v11444_v28, 0.0 }
 0x367   : > { %v3907_v30 = vadd.f32 %v3906_v0, %v3905_v43  ;;  %v3808_v37 = vadd.f32 %v3807_v34, %v3806_v22  ;;  %v3912_v49 = vsel %vm1802_vm12, %v3874_v45, 0.0 }
 0x368   : > { %v3908_v9 = vsel %vm1802_vm12, %v3872_v8, 0.0 }
 0x369   : > { %v3810_v58 = vadd.f32 %v3809_v54, %v3808_v37  ;;  %v3909_v59 = vadd.f32 %v3908_v9, %v3907_v30 }
 0x36a   : > { %v11463_v23 = vpop.f32.mrb[8].mxu0 }
 0x36b   : > { %v3911_v16 = vadd.f32 %v3910_v38, %v3909_v59  ;;  %v11465_v51 = vpop.f32.mrb[9].mxu0  ;;  %v3812_v48 = vadd.f32 %v3811_v32, %v3810_v58  ;;  %v3877_v60 = vmul.f32 %v11463_v23, %v11463_v23  ;;  %v3817_v21 = vsel %vm1802_vm12, %v11463_v23, 0.0 }
 0x36c   : > { %v3813_v50 = vsel %vm1802_vm12, %v11465_v51, 0.0  ;;  %v3875_v62 = vmul.f32 %v11465_v51, %v11465_v51  ;;  %v11472_v47 = vpop.f32.mrb[10].mxu0 }
 0x36d   : > { %v3814_v36 = vadd.f32 %v3813_v50, %v3812_v48  ;;  %v3913_v15 = vadd.f32 %v3912_v49, %v3911_v16  ;;  %v11474_v26 = vpop.f32.mrb[11].mxu0  ;;  %v3878_v35 = vmul.f32 %v11472_v47, %v11472_v47  ;;  %v3918_v2 = vsel %vm1802_vm12, %v3877_v60, 0.0 }
 0x36e   : > { %v3914_v46 = vsel %vm1802_vm12, %v3875_v62, 0.0  ;;  %v3815_v42 = vsel %vm1802_vm12, %v11474_v26, 0.0  ;;  %v3876_v63 = vmul.f32 %v11474_v26, %v11474_v26  ;;  %v3819_v33 = vsel %vm1802_vm12, %v11472_v47, 0.0 }
 0x36f   : > { %v3915_v57 = vadd.f32 %v3914_v46, %v3913_v15  ;;  %v3816_v17 = vadd.f32 %v3815_v42, %v3814_v36  ;;  %v3920_v4 = vsel %vm1802_vm12, %v3878_v35, 0.0 }
 0x370   : > { %v3916_v39 = vsel %vm1802_vm12, %v3876_v63, 0.0 }
 0x371   : > { %v3818_v53 = vadd.f32 %v3817_v21, %v3816_v17  ;;  %v3917_v7 = vadd.f32 %v3916_v39, %v3915_v57 }
 0x372   : > { %v11491_v44 = vpop.f32.mrb[12].mxu0 }
 0x373   : > { %v3919_v14 = vadd.f32 %v3918_v2, %v3917_v7  ;;  %v11493_v10 = vpop.f32.mrb[13].mxu0  ;;  %v3820_v52 = vadd.f32 %v3819_v33, %v3818_v53  ;;  %v3881_v22 = vmul.f32 %v11491_v44, %v11491_v44  ;;  %v3825_v30 = vsel %vm1802_vm12, %v11491_v44, 0.0 }
 0x374   : > { %v3821_v40 = vsel %vm1802_vm12, %v11493_v10, 0.0  ;;  %v3879_v55 = vmul.f32 %v11493_v10, %v11493_v10  ;;  %v11500_v56 = vpop.f32.mrb[14].mxu0 }
 0x375   : > { %v3822_v12 = vadd.f32 %v3821_v40, %v3820_v52  ;;  %v3921_v27 = vadd.f32 %v3920_v4, %v3919_v14  ;;  %v11502_v11 = vpop.f32.mrb[15].mxu0  ;;  %v3882_v37 = vmul.f32 %v11500_v56, %v11500_v56  ;;  %v3926_v58 = vsel %vm1802_vm12, %v3881_v22, 0.0 }
 0x376   : > { %v3922_v43 = vsel %vm1802_vm12, %v3879_v55, 0.0  ;;  %v3823_v6 = vsel %vm1802_vm12, %v11502_v11, 0.0  ;;  %v3880_v0 = vmul.f32 %v11502_v11, %v11502_v11  ;;  %v3827_v59 = vsel %vm1802_vm12, %v11500_v56, 0.0 }
 0x377   : > { %v3923_v34 = vadd.f32 %v3922_v43, %v3921_v27  ;;  %v3824_v8 = vadd.f32 %v3823_v6, %v3822_v12  ;;  %v3928_v49 = vsel %vm1802_vm12, %v3882_v37, 0.0 }
 0x378   : > { %v3924_v54 = vsel %vm1802_vm12, %v3880_v0, 0.0 }
 0x379   : > { %v3826_v45 = vadd.f32 %v3825_v30, %v3824_v8  ;;  %v3925_v9 = vadd.f32 %v3924_v54, %v3923_v34 }
 0x37a   : > { %v11519_v38 = vpop.f32.mrb[16].mxu0 }
 0x37b   : > { %v3927_v32 = vadd.f32 %v3926_v58, %v3925_v9  ;;  %v11521_v16 = vpop.f32.mrb[17].mxu0  ;;  %v3828_v48 = vadd.f32 %v3827_v59, %v3826_v45  ;;  %v3885_v42 = vmul.f32 %v11519_v38, %v11519_v38  ;;  %v3833_v39 = vsel %vm1802_vm12, %v11519_v38, 0.0 }
 0x37c   : > { %v3829_v50 = vsel %vm1802_vm12, %v11521_v16, 0.0  ;;  %v3883_v62 = vmul.f32 %v11521_v16, %v11521_v16  ;;  %v11528_v36 = vpop.f32.mrb[18].mxu0 }
 0x37d   : > { %v3830_v15 = vadd.f32 %v3829_v50, %v3828_v48  ;;  %v3929_v60 = vadd.f32 %v3928_v49, %v3927_v32  ;;  %v11530_v46 = vpop.f32.mrb[19].mxu0  ;;  %v3886_v53 = vmul.f32 %v11528_v36, %v11528_v36  ;;  %v3934_v14 = vsel %vm1802_vm12, %v3885_v42, 0.0 }
 0x37e   : > { %v3930_v63 = vsel %vm1802_vm12, %v3883_v62, 0.0  ;;  %v3831_v57 = vsel %vm1802_vm12, %v11530_v46, 0.0  ;;  %v3884_v17 = vmul.f32 %v11530_v46, %v11530_v46  ;;  %v3835_v52 = vsel %vm1802_vm12, %v11528_v36, 0.0 }
 0x37f   : > { %v3931_v21 = vadd.f32 %v3930_v63, %v3929_v60  ;;  %v3832_v35 = vadd.f32 %v3831_v57, %v3830_v15  ;;  %v3936_v27 = vsel %vm1802_vm12, %v3886_v53, 0.0 }
 0x380   : > { %v3932_v7 = vsel %vm1802_vm12, %v3884_v17, 0.0 }
 0x381   : > { %v3834_v2 = vadd.f32 %v3833_v39, %v3832_v35  ;;  %v3933_v33 = vadd.f32 %v3932_v7, %v3931_v21 }
 0x382   : > { %v11547_v4 = vpop.f32.mrb[20].mxu0 }
 0x383   : > { %v3935_v40 = vadd.f32 %v3934_v14, %v3933_v33  ;;  %v11549_v55 = vpop.f32.mrb[21].mxu0  ;;  %v3836_v12 = vadd.f32 %v3835_v52, %v3834_v2  ;;  %v3889_v30 = vmul.f32 %v11547_v4, %v11547_v4  ;;  %v3841_v59 = vsel %vm1802_vm12, %v11547_v4, 0.0 }
 0x384   : > { %v3837_v22 = vsel %vm1802_vm12, %v11549_v55, 0.0  ;;  %v3887_v43 = vmul.f32 %v11549_v55, %v11549_v55  ;;  %v11556_v6 = vpop.f32.mrb[22].mxu0 }
 0x385   : > { %v3838_v0 = vadd.f32 %v3837_v22, %v3836_v12  ;;  %v3937_v34 = vadd.f32 %v3936_v27, %v3935_v40  ;;  %v11558_v8 = vpop.f32.mrb[23].mxu0  ;;  %v3890_v32 = vmul.f32 %v11556_v6, %v11556_v6  ;;  %v3942_v62 = vsel %vm1802_vm12, %v3889_v30, 0.0 }
 0x386   : > { %v3938_v37 = vsel %vm1802_vm12, %v3887_v43, 0.0  ;;  %v3839_v54 = vsel %vm1802_vm12, %v11558_v8, 0.0  ;;  %v3888_v45 = vmul.f32 %v11558_v8, %v11558_v8  ;;  %v3843_v15 = vsel %vm1802_vm12, %v11556_v6, 0.0 }
 0x387   : > { %v3939_v9 = vadd.f32 %v3938_v37, %v3937_v34  ;;  %v3840_v58 = vadd.f32 %v3839_v54, %v3838_v0  ;;  %v3944_v17 = vsel %vm1802_vm12, %v3890_v32, 0.0 }
 0x388   : > { %v3940_v48 = vsel %vm1802_vm12, %v3888_v45, 0.0 }
 0x389   : > { %v3842_v49 = vadd.f32 %v3841_v59, %v3840_v58  ;;  %v3941_v50 = vadd.f32 %v3940_v48, %v3939_v9 }
 0x38a   : > { %v11575_v60 = vpop.f32.mrb[24].mxu0 }
 0x38b   : > { %v3943_v42 = vadd.f32 %v3942_v62, %v3941_v50  ;;  %v11577_v63 = vpop.f32.mrb[25].mxu0  ;;  %v3844_v57 = vadd.f32 %v3843_v15, %v3842_v49  ;;  %v3893_v33 = vmul.f32 %v11575_v60, %v11575_v60  ;;  %v3849_v22 = vsel %vm1802_vm12, %v11575_v60, 0.0 }
 0x38c   : > { %v3845_v21 = vsel %vm1802_vm12, %v11577_v63, 0.0  ;;  %v3891_v35 = vmul.f32 %v11577_v63, %v11577_v63  ;;  %v11584_v39 = vpop.f32.mrb[26].mxu0 }
 0x38d   : > { %v3846_v53 = vadd.f32 %v3845_v21, %v3844_v57  ;;  %v3945_v7 = vadd.f32 %v3944_v17, %v3943_v42  ;;  %v11586_v2 = vpop.f32.mrb[27].mxu0  ;;  %v3894_v43 = vmul.f32 %v11584_v39, %v11584_v39  ;;  %v3950_v37 = vsel %vm1802_vm12, %v3893_v33, 0.0 }
 0x38e   : > { %v3946_v14 = vsel %vm1802_vm12, %v3891_v35, 0.0  ;;  %v3847_v52 = vsel %vm1802_vm12, %v11586_v2, 0.0  ;;  %v3892_v40 = vmul.f32 %v11586_v2, %v11586_v2  ;;  %v3851_v54 = vsel %vm1802_vm12, %v11584_v39, 0.0 }
 0x38f   : > { %v3947_v12 = vadd.f32 %v3946_v14, %v3945_v7  ;;  %v3848_v27 = vadd.f32 %v3847_v52, %v3846_v53  ;;  %v3952_v32 = vsel %vm1802_vm12, %v3894_v43, 0.0 }
 0x390   : > { %v3948_v0 = vsel %vm1802_vm12, %v3892_v40, 0.0 }
 0x391   : > { %v3850_v34 = vadd.f32 %v3849_v22, %v3848_v27  ;;  %v3949_v30 = vadd.f32 %v3948_v0, %v3947_v12 }
 0x392   : > { %v11603_v45 = vpop.f32.mrb[28].mxu0 }
 0x393   : > { %v3951_v9 = vadd.f32 %v3950_v37, %v3949_v30  ;;  %v11605_v58 = vpop.f32.mrb[29].mxu0  ;;  %v3852_v59 = vadd.f32 %v3851_v54, %v3850_v34  ;;  %v3897_v57 = vmul.f32 %v11603_v45, %v11603_v45  ;;  %v3857_v33 = vsel %vm1802_vm12, %v11603_v45, 0.0 }
 0x394   : > { %v3853_v48 = vsel %vm1802_vm12, %v11605_v58, 0.0  ;;  %v3895_v49 = vmul.f32 %v11605_v58, %v11605_v58  ;;  %v11612_v50 = vpop.f32.mrb[30].mxu0 }
 0x395   : > { %v3854_v62 = vadd.f32 %v3853_v48, %v3852_v59  ;;  %v3953_v15 = vadd.f32 %v3952_v32, %v3951_v9  ;;  %v11614_v42 = vpop.f32.mrb[31].mxu0  ;;  %v3898_v14 = vmul.f32 %v11612_v50, %v11612_v50  ;;  %v3958_v27 = vsel %vm1802_vm12, %v3897_v57, 0.0 }
 0x396   : > { %v3954_v17 = vsel %vm1802_vm12, %v3895_v49, 0.0  ;;  %v3855_v21 = vsel %vm1802_vm12, %v11614_v42, 0.0  ;;  %v3896_v35 = vmul.f32 %v11614_v42, %v11614_v42  ;;  %v3859_v22 = vsel %vm1802_vm12, %v11612_v50, 0.0 }
 0x397   : > { %v3955_v53 = vadd.f32 %v3954_v17, %v3953_v15  ;;  %v3856_v7 = vadd.f32 %v3855_v21, %v3854_v62  ;;  %v3960_v34 = vsel %vm1802_vm12, %v3898_v14, 0.0  ;;  %v5682_v62 = vsel %vm1851_vm0, %v11404_v3, 0 }
 0x398   : > { %v3956_v52 = vsel %vm1802_vm12, %v3896_v35, 0.0  ;;  %9245 = vmatpush3.bf16.msra.mxu1 %v5682_v62 }
 0x399   : > { %v3858_v40 = vadd.f32 %v3857_v33, %v3856_v7  ;;  %v3957_v12 = vadd.f32 %v3956_v52, %v3955_v53 }
 0x39b   : > { %v3860_v43 = vadd.f32 %v3859_v22, %v3858_v40  ;;  %v3959_v0 = vadd.f32 %v3958_v27, %v3957_v12 }
 0x39d   : > { %v3861_v30 = vrot.slane %v3860_v43, 4  ;;  %v3961_v37 = vadd.f32 %v3960_v34, %v3959_v0 }
 0x39f   : > { %v3862_v54 = vadd.f32 %v3861_v30, %v3860_v43  ;;  %v3962_v9 = vrot.slane %v3961_v37, 4 }
 0x3a1   : > { %v3863_v59 = vrot.slane %v3862_v54, 2  ;;  %v3963_v32 = vadd.f32 %v3962_v9, %v3961_v37 }
 0x3a3   : > { %v3864_v48 = vadd.f32 %v3863_v59, %v3862_v54  ;;  %v3964_v49 = vrot.slane %v3963_v32, 2 }
 0x3a5   : > { %v3865_v15 = vrot.slane %v3864_v48, 1  ;;  %v3965_v57 = vadd.f32 %v3964_v49, %v3963_v32 }
 0x3a7   : > { %v3866_v17 = vadd.f32 %v3865_v15, %v3864_v48  ;;  %v3966_v21 = vrot.slane %v3965_v57, 1 }
 0x3a9   : > { %v3967_v35 = vadd.f32 %v3966_v21, %v3965_v57  ;;  %v11634_v53 = vmul.f32 0.00390625, %v3866_v17 }
 0x3ab   : > { %v3969_v7 = vmul.f32 0.00390625, %v3967_v35  ;;  %v3970_v33 = vmul.f32 %v11634_v53, %v11634_v53  ;;  %v4001_v14 = vsub.f32 %v11605_v58, %v11634_v53  ;;  %v4002_v52 = vsub.f32 %v11614_v42, %v11634_v53 }
 0x3ac   : > { %v3973_v3 = vsub.f32 %v11410_v24, %v11634_v53  ;;  %v3974_v40 = vsub.f32 %v11416_v13, %v11634_v53  ;;  %v3975_v12 = vsub.f32 %v11408_v5, %v11634_v53  ;;  %v3976_v27 = vsub.f32 %v11414_v41, %v11634_v53 }
 0x3ad   : > { %v3971_v22 = vsub.f32 %v3969_v7, %v3970_v33  ;;  %v3977_v43 = vsub.f32 %v11437_v25, %v11634_v53  ;;  %v3978_v58 = vsub.f32 %v11446_v61, %v11634_v53  ;;  %v3979_v42 = vsub.f32 %v11435_v1, %v11634_v53  ;;  %v213_v25 = vld [vmem:[%s13584_s2] sm:$0x3] }
 0x3ae   : > { %v3980_v24 = vsub.f32 %v11444_v28, %v11634_v53  ;;  %v3981_v13 = vsub.f32 %v11465_v51, %v11634_v53  ;;  %v3982_v5 = vsub.f32 %v11474_v26, %v11634_v53  ;;  %v3983_v41 = vsub.f32 %v11463_v23, %v11634_v53  ;;  %10072 = vmatprep.subr.msk.bf16.mxu1 %vm1851_vm0, %v213_v25  ;;  %v4589_v25 = vld [vmem:[#allocation2 + $0xbc] sm:$0x1] }
 0x3af   : > { %v3972_v61 = vmax.f32 %v3971_v22, 0.0  ;;  %v3984_v1 = vsub.f32 %v11472_v47, %v11634_v53  ;;  %v3985_v28 = vsub.f32 %v11493_v10, %v11634_v53  ;;  %v3986_v51 = vsub.f32 %v11502_v11, %v11634_v53 }
 0x3b0   : > { %v3987_v26 = vsub.f32 %v11491_v44, %v11634_v53  ;;  %v3988_v23 = vsub.f32 %v11500_v56, %v11634_v53  ;;  %v3989_v0 = vsub.f32 %v11521_v16, %v11634_v53  ;;  %v3990_v47 = vsub.f32 %v11530_v46, %v11634_v53 }
 0x3b1   : > { %v4005_v34 = vadd.f32 1e-05, %v3972_v61  ;;  %v3991_v10 = vsub.f32 %v11519_v38, %v11634_v53  ;;  %v3992_v11 = vsub.f32 %v11528_v36, %v11634_v53  ;;  %v3993_v30 = vsub.f32 %v11549_v55, %v11634_v53  ;;  %v4610_v61 = vld [vmem:[#allocation2 + $0xd4] sm:$0x1] }
 0x3b2   : > { %v3994_v44 = vsub.f32 %v11558_v8, %v11634_v53  ;;  %v3995_v56 = vsub.f32 %v11547_v4, %v11634_v53  ;;  %v3996_v16 = vsub.f32 %v11556_v6, %v11634_v53  ;;  %v3997_v46 = vsub.f32 %v11577_v63, %v11634_v53 }
 0x3b3   : > { %10108 = vrsqrt.f32 %v4005_v34  ;;  %v3998_v38 = vsub.f32 %v11586_v2, %v11634_v53  ;;  %v3999_v36 = vsub.f32 %v11575_v60, %v11634_v53  ;;  %v4000_v55 = vsub.f32 %v11584_v39, %v11634_v53 }
 0x3b4   : > { %v4003_v8 = vsub.f32 %v11603_v45, %v11634_v53  ;;  %v4004_v4 = vsub.f32 %v11612_v50, %v11634_v53 }
 0x3bd   : > { %v10109_v6 = vpop.eup %10108 }
 0x3be   : > { %v4035_v37 = vmul.f32 %v10109_v6, %v4001_v14  ;;  %v4036_v54 = vmul.f32 %v10109_v6, %v4002_v52  ;;  %v11706_v63 = vmul.f32 %v10109_v6, %v3973_v3  ;;  %v11708_v9 = vmul.f32 %v10109_v6, %v3974_v40 }
 0x3bf   : > { %v11710_v2 = vmul.f32 %v10109_v6, %v3975_v12  ;;  %v11712_v59 = vmul.f32 %v10109_v6, %v3976_v27  ;;  %v11714_v60 = vmul.f32 %v10109_v6, %v3977_v43  ;;  %v11716_v39 = vmul.f32 %v10109_v6, %v3978_v58 }
 0x3c0   : > { %v4067_v32 = vmax.f32 %v4035_v37, 0.0  ;;  %v4068_v45 = vmax.f32 %v4036_v54, 0.0  ;;  %v11718_v48 = vmul.f32 %v10109_v6, %v3979_v42  ;;  %v11720_v50 = vmul.f32 %v10109_v6, %v3980_v24 }
 0x3c1   : > { %v11722_v49 = vmul.f32 %v10109_v6, %v3981_v13  ;;  %v11724_v62 = vmul.f32 %v10109_v6, %v3982_v5  ;;  %v11726_v15 = vmul.f32 %v10109_v6, %v3983_v41  ;;  %v11728_v57 = vmul.f32 %v10109_v6, %v3984_v1 }
 0x3c2   : > { %v11730_v17 = vpack.c.bf16 %v4067_v32, %v4067_v32  ;;  %v8629_v21 = vpack.c.bf16 %v4068_v45, %v4068_v45  ;;  %v11732_v35 = vmul.f32 %v10109_v6, %v3985_v28  ;;  %v11734_v53 = vmul.f32 %v10109_v6, %v3986_v51 }
 0x3c3   : > { %v11736_v7 = vmul.f32 %v10109_v6, %v3987_v26  ;;  %v11738_v33 = vmul.f32 %v10109_v6, %v3988_v23  ;;  %v11740_v14 = vmul.f32 %v10109_v6, %v3989_v0  ;;  %v11742_v52 = vmul.f32 %v10109_v6, %v3990_v47 }
 0x3c4   : > { %v4406_v3 = vshrl.u32 %v11730_v17, 16  ;;  %v4414_v40 = vshrl.u32 %v8629_v21, 16  ;;  %v4417_v12 = vshll.u32 %v8629_v21, 16  ;;  %v4409_v27 = vshll.u32 %v11730_v17, 16  ;;  %v4522_v17 = vld [vmem:[#allocation2 + $0x48] sm:$0xf] }
 0x3c5   : > { %v11746_v22 = vmul.f32 %v10109_v6, %v3991_v10  ;;  %v11748_v43 = vmul.f32 %v10109_v6, %v3992_v11  ;;  %v11750_v58 = vmul.f32 %v10109_v6, %v3993_v30  ;;  %v11752_v42 = vmul.f32 %v10109_v6, %v3994_v44 }
 0x3c6   : > { %v11754_v24 = vrot.slane %v4406_v3, 7  ;;  %v4416_v13 = vrot.slane %v4414_v40, 7  ;;  %v11756_v5 = vmul.f32 %v10109_v6, %v3995_v56  ;;  %v11758_v41 = vmul.f32 %v10109_v6, %v3996_v16  ;;  %v12096_v56 = vld [vmem:[#allocation2] sm:$0xf] }
 0x3c7   : > { %v11760_v1 = vmul.f32 %v10109_v6, %v3997_v46  ;;  %v11762_v28 = vmul.f32 %v10109_v6, %v3998_v38  ;;  %v11764_v51 = vmul.f32 %v10109_v6, %v3999_v36  ;;  %v11766_v26 = vmul.f32 %v10109_v6, %v4000_v55 }
 0x3c8   : > { %v4412_v23 = vrot.slane %v11754_v24, 4  ;;  %v4419_v0 = vor.u32 %v4417_v12, %v4416_v13  ;;  %v4421_v47 = vrot.slane %v4416_v13, 4  ;;  %v11769_v34 = vmul.f32 %v10109_v6, %v4003_v8 }
 0x3c9   : > { %v11771_v10 = vmul.f32 %v10109_v6, %v4004_v4  ;;  %v4039_v11 = vmax.f32 %v11706_v63, 0.0  ;;  %v4040_v30 = vmax.f32 %v11708_v9, 0.0  ;;  %v4041_v44 = vmax.f32 %v11710_v2, 0.0 }
 0x3ca   : > { %v4420_v16 = vsel %vm10236_vm6, %v4412_v23, %v4419_v0  ;;  %v4590_v46 = vsel %vm10250_vm8, %v4421_v47, %v4589_v25  ;;  %v4611_v38 = vsel %vm10250_vm8, %v4421_v47, %v4610_v61  ;;  %v4042_v36 = vmax.f32 %v11712_v59, 0.0 }
 0x3cb   : > { %4588 = vst.msk [vmem:[#allocation2 + $0xb8] sm:$0xf] %vm642_vm3, %v4420_v16  ;;  %4591 = vst [vmem:[#allocation2 + $0xbc] sm:$0x1] %v4590_v46  ;;  %v4043_v55 = vmax.f32 %v11714_v60, 0.0  ;;  %v4044_v8 = vmax.f32 %v11716_v39, 0.0  ;;  %v8601_v3 = vpack.c.bf16 %v4040_v30, %v4040_v30 }
 0x3cc   : > { %4609 = vst.msk [vmem:[#allocation2 + $0xd0] sm:$0xf] %vm642_vm3, %v4420_v16  ;;  %4612 = vst [vmem:[#allocation2 + $0xd4] sm:$0x1] %v4611_v38  ;;  %v4045_v4 = vmax.f32 %v11718_v48, 0.0  ;;  %v4046_v6 = vmax.f32 %v11720_v50, 0.0 }
 0x3cd   : > { %v4047_v37 = vmax.f32 %v11722_v49, 0.0  ;;  %v4048_v54 = vmax.f32 %v11724_v62, 0.0  ;;  %v4049_v63 = vmax.f32 %v11726_v15, 0.0  ;;  %v4050_v9 = vmax.f32 %v11728_v57, 0.0 }
 0x3ce   : > { %v4051_v2 = vmax.f32 %v11732_v35, 0.0  ;;  %v4052_v59 = vmax.f32 %v11734_v53, 0.0  ;;  %v4053_v60 = vmax.f32 %v11736_v7, 0.0  ;;  %v4054_v39 = vmax.f32 %v11738_v33, 0.0 }
 0x3cf   : > { %v4055_v32 = vmax.f32 %v11740_v14, 0.0  ;;  %v4056_v45 = vmax.f32 %v11742_v52, 0.0  ;;  %v4057_v48 = vmax.f32 %v11746_v22, 0.0  ;;  %v4058_v50 = vmax.f32 %v11748_v43, 0.0 }
 0x3d0   : > { %v4059_v49 = vmax.f32 %v11750_v58, 0.0  ;;  %v4060_v62 = vmax.f32 %v11752_v42, 0.0  ;;  %v4061_v15 = vmax.f32 %v11756_v5, 0.0  ;;  %v4062_v57 = vmax.f32 %v11758_v41, 0.0 }
 0x3d1   : > { %v4063_v21 = vmax.f32 %v11760_v1, 0.0  ;;  %v4064_v35 = vmax.f32 %v11762_v28, 0.0  ;;  %v4065_v53 = vmax.f32 %v11764_v51, 0.0  ;;  %v4066_v7 = vmax.f32 %v11766_v26, 0.0 }
 0x3d2   : > { %v4069_v33 = vmax.f32 %v11769_v34, 0.0  ;;  %v4070_v14 = vmax.f32 %v11771_v10, 0.0  ;;  %v8600_v52 = vpack.c.bf16 %v4039_v11, %v4039_v11  ;;  %v4772_v40 = vld [vmem:[#allocation2 + $0xb8] sm:$0x8]  ;;  %v8602_v22 = vpack.c.bf16 %v4041_v44, %v4041_v44  ;;  %v4892_v61 = vld [vmem:[#allocation2 + $0xbc] sm:$0x1] }
 0x3d3   : > { %v4774_v12 = vld [vmem:[#allocation2 + $0xd0] sm:$0x8]  ;;  %v8603_v43 = vpack.c.bf16 %v4042_v36, %v4042_v36  ;;  %v11811_v58 = vpack.c.bf16 %v4043_v55, %v4043_v55  ;;  %v11813_v42 = vpack.c.bf16 %v4044_v8, %v4044_v8  ;;  %v8345_v13 = vrot.slane %v4772_v40, 11  ;;  %v4898_v1 = vld [vmem:[#allocation2 + $0xd4] sm:$0x1] }
 0x3d4   : > { %v8347_v5 = vrot.slane %v4774_v12, 11  ;;  %v11815_v41 = vpack.c.bf16 %v4045_v4, %v4045_v4  ;;  %v11817_v25 = vpack.c.bf16 %v4046_v6, %v4046_v6  ;;  %v11819_v28 = vpack.c.bf16 %v4047_v37, %v4047_v37  ;;  %v4536_v40 = vld [vmem:[#allocation2 + $0x60] sm:$0xf] }
 0x3d5   : > { %v11821_v51 = vpack.c.bf16 %v4048_v54, %v4048_v54  ;;  %v11823_v26 = vpack.c.bf16 %v4049_v63, %v4049_v63  ;;  %v11825_v23 = vpack.c.bf16 %v4050_v9, %v4050_v9  ;;  %v4893_v0 = vsel %vm10289_vm9, %v8345_v13, %v4892_v61 }
 0x3d6   : > { %v4899_v47 = vsel %vm10289_vm9, %v8347_v5, %v4898_v1  ;;  %v11831_v34 = vpack.c.bf16 %v4051_v2, %v4051_v2  ;;  %v11833_v10 = vpack.c.bf16 %v4052_v59, %v4052_v59  ;;  %4894 = vst [vmem:[#allocation2 + $0xbc] sm:$0x1] %v4893_v0  ;;  %v11835_v11 = vpack.c.bf16 %v4053_v60, %v4053_v60 }
 0x3d7   : > { %4900 = vst [vmem:[#allocation2 + $0xd4] sm:$0x1] %v4899_v47  ;;  %v11837_v30 = vpack.c.bf16 %v4054_v39, %v4054_v39  ;;  %v11839_v44 = vpack.c.bf16 %v4055_v32, %v4055_v32  ;;  %v11841_v16 = vpack.c.bf16 %v4056_v45, %v4056_v45  ;;  %v11843_v46 = vpack.c.bf16 %v4057_v48, %v4057_v48 }
 0x3d8   : > { %v11845_v38 = vpack.c.bf16 %v4058_v50, %v4058_v50  ;;  %v11847_v36 = vpack.c.bf16 %v4059_v49, %v4059_v49  ;;  %v11849_v55 = vpack.c.bf16 %v4060_v62, %v4060_v62  ;;  %v11851_v8 = vpack.c.bf16 %v4061_v15, %v4061_v15 }
 0x3d9   : > { %v11853_v4 = vpack.c.bf16 %v4062_v57, %v4062_v57  ;;  %v11855_v6 = vpack.c.bf16 %v4063_v21, %v4063_v21  ;;  %v11857_v37 = vpack.c.bf16 %v4064_v35, %v4064_v35  ;;  %v11859_v54 = vpack.c.bf16 %v4065_v53, %v4065_v53 }
 0x3da   : > { %v11861_v63 = vpack.c.bf16 %v4066_v7, %v4066_v7  ;;  %v11863_v9 = vpack.c.bf16 %v4069_v33, %v4069_v33  ;;  %v11865_v2 = vpack.c.bf16 %v4070_v14, %v4070_v14  ;;  %v4168_v59 = vshrl.u32 %v8600_v52, 16 }
 0x3db   : > { %v4171_v60 = vshll.u32 %v8600_v52, 16  ;;  %v4176_v39 = vshrl.u32 %v8601_v3, 16  ;;  %v4179_v32 = vshll.u32 %v8601_v3, 16  ;;  %v4185_v45 = vshrl.u32 %v8602_v22, 16 }
 0x3dc   : > { %v4188_v48 = vshll.u32 %v8602_v22, 16  ;;  %v4193_v50 = vshrl.u32 %v8603_v43, 16  ;;  %v4196_v49 = vshll.u32 %v8603_v43, 16  ;;  %v4170_v62 = vrot.slane %v4168_v59, 7 }
 0x3dd   : > { %v11867_v15 = vrot.slane %v4176_v39, 7  ;;  %v4202_v57 = vshrl.u32 %v11811_v58, 16  ;;  %v4205_v21 = vshll.u32 %v11811_v58, 16  ;;  %v4187_v35 = vrot.slane %v4185_v45, 7 }
 0x3de   : > { %v11871_v53 = vrot.slane %v4193_v50, 7  ;;  %v4210_v7 = vshrl.u32 %v11813_v42, 16  ;;  %v4213_v33 = vshll.u32 %v11813_v42, 16  ;;  %v11875_v14 = vor.u32 %v4171_v60, %v4170_v62 }
 0x3df   : > { %v4174_v52 = vrot.slane %v4170_v62, 4  ;;  %v4181_v3 = vor.u32 %v4179_v32, %v11867_v15  ;;  %v11879_v12 = vor.u32 %v4188_v48, %v4187_v35  ;;  %v4191_v22 = vrot.slane %v4187_v35, 4 }
 0x3e0   : > { %v4198_v43 = vor.u32 %v4196_v49, %v11871_v53  ;;  %v4204_v5 = vrot.slane %v4202_v57, 7  ;;  %v11885_v61 = vrot.slane %v4210_v7, 7  ;;  %v4219_v42 = vshrl.u32 %v11815_v41, 16 }
 0x3e1   : > { %v4182_v13 = vsel %vm10236_vm6, %v4174_v52, %v4181_v3  ;;  %v4222_v0 = vshll.u32 %v11815_v41, 16  ;;  %v4227_v47 = vshrl.u32 %v11817_v25, 16  ;;  %v4230_v59 = vshll.u32 %v11817_v25, 16 }
 0x3e2   : > { %v4199_v1 = vsel %vm10236_vm6, %v4191_v22, %v4198_v43  ;;  %4490 = vst.msk [vmem:[#allocation2 + $0x10] sm:$0xf] %vm642_vm3, %v4182_v13  ;;  %v11894_v60 = vor.u32 %v4205_v21, %v4204_v5  ;;  %v4208_v39 = vrot.slane %v4204_v5, 4  ;;  %v4215_v32 = vor.u32 %v4213_v33, %v11885_v61 }
 0x3e3   : > { %4497 = vst.msk [vmem:[#allocation2 + $0x1c] sm:$0xf] %vm642_vm3, %v4199_v1  ;;  %4602 = vst.msk [vmem:[#allocation2 + $0x4] sm:$0xf] %vm642_vm3, %v4199_v1  ;;  %v4221_v48 = vrot.slane %v4219_v42, 7  ;;  %v11900_v50 = vrot.slane %v4227_v47, 7 }
 0x3e4   : > { %v4236_v41 = vshrl.u32 %v11819_v28, 16  ;;  %v4239_v25 = vshll.u32 %v11819_v28, 16  ;;  %v4216_v49 = vsel %vm10236_vm6, %v4208_v39, %v4215_v32  ;;  %v4244_v62 = vshrl.u32 %v11821_v51, 16 }
 0x3e5   : > { %v4247_v57 = vshll.u32 %v11821_v51, 16  ;;  %v4253_v21 = vshrl.u32 %v11823_v26, 16  ;;  %v11909_v35 = vor.u32 %v4222_v0, %v4221_v48  ;;  %v4225_v7 = vrot.slane %v4221_v48, 4  ;;  %4504 = vst.msk [vmem:[#allocation2 + $0x28] sm:$0xf] %vm642_vm3, %v4216_v49 }
 0x3e6   : > { %v4232_v33 = vor.u32 %v4230_v59, %v11900_v50  ;;  %v4238_v3 = vrot.slane %v4236_v41, 7  ;;  %v11914_v28 = vrot.slane %v4244_v62, 7  ;;  %v4256_v43 = vshll.u32 %v11823_v26, 16 }
 0x3e7   : > { %v4255_v22 = vrot.slane %v4253_v21, 7  ;;  %v4261_v13 = vshrl.u32 %v11825_v23, 16  ;;  %v4264_v5 = vshll.u32 %v11825_v23, 16  ;;  %v4270_v42 = vshrl.u32 %v11831_v34, 16 }
 0x3e8   : > { %v4233_v51 = vsel %vm10236_vm6, %v4225_v7, %v4232_v33  ;;  %v11922_v1 = vor.u32 %v4239_v25, %v4238_v3  ;;  %v4242_v0 = vrot.slane %v4238_v3, 4  ;;  %v4249_v47 = vor.u32 %v4247_v57, %v11914_v28  ;;  %v4501_v57 = vld [vmem:[#allocation2 + $0x24] sm:$0xf] }
 0x3e9   : > { %4511 = vst.msk [vmem:[#allocation2 + $0x34] sm:$0xf] %vm642_vm3, %v4233_v51  ;;  %v11927_v39 = vor.u32 %v4256_v43, %v4255_v22  ;;  %v4259_v26 = vrot.slane %v4255_v22, 4  ;;  %v11929_v32 = vrot.slane %v4261_v13, 7  ;;  %v4272_v48 = vrot.slane %v4270_v42, 7 }
 0x3ea   : > { %v4250_v23 = vsel %vm10236_vm6, %v4242_v0, %v4249_v47  ;;  %v4273_v41 = vshll.u32 %v11831_v34, 16  ;;  %v4278_v25 = vshrl.u32 %v11833_v10, 16  ;;  %v4281_v49 = vshll.u32 %v11833_v10, 16  ;;  %v4508_v42 = vld [vmem:[#allocation2 + $0x30] sm:$0xf] }
 0x3eb   : > { %v4266_v62 = vor.u32 %v4264_v5, %v11929_v32  ;;  %v4276_v21 = vrot.slane %v4272_v48, 4  ;;  %v4287_v7 = vshrl.u32 %v11835_v11, 16  ;;  %4518 = vst.msk [vmem:[#allocation2 + $0x40] sm:$0xf] %vm642_vm3, %v4250_v23  ;;  %v4290_v22 = vshll.u32 %v11835_v11, 16 }
 0x3ec   : > { %v11940_v33 = vor.u32 %v4273_v41, %v4272_v48  ;;  %v11942_v3 = vrot.slane %v4278_v25, 7  ;;  %v4295_v34 = vshrl.u32 %v11837_v30, 16  ;;  %v4298_v51 = vshll.u32 %v11837_v30, 16 }
 0x3ed   : > { %v4267_v10 = vsel %vm10236_vm6, %v4259_v26, %v4266_v62  ;;  %v4289_v43 = vrot.slane %v4287_v7, 7  ;;  %v4304_v13 = vshrl.u32 %v11839_v44, 16  ;;  %v4307_v47 = vshll.u32 %v11839_v44, 16 }
 0x3ee   : > { %v4283_v5 = vor.u32 %v4281_v49, %v11942_v3  ;;  %v11952_v0 = vrot.slane %v4295_v34, 7  ;;  %4525 = vst.msk [vmem:[#allocation2 + $0x4c] sm:$0xf] %vm642_vm3, %v4267_v10  ;;  %v4312_v26 = vshrl.u32 %v11841_v16, 16  ;;  %v4315_v49 = vshll.u32 %v11841_v16, 16 }
 0x3ef   : > { %v11956_v11 = vor.u32 %v4290_v22, %v4289_v43  ;;  %v4293_v48 = vrot.slane %v4289_v43, 4  ;;  %v4306_v23 = vrot.slane %v4304_v13, 7  ;;  %v4321_v22 = vshrl.u32 %v11843_v46, 16 }
 0x3f0   : > { %v4284_v30 = vsel %vm10236_vm6, %v4276_v21, %v4283_v5  ;;  %v4300_v41 = vor.u32 %v4298_v51, %v11952_v0  ;;  %v11966_v7 = vrot.slane %v4312_v26, 7  ;;  %v4324_v21 = vshll.u32 %v11843_v46, 16 }
 0x3f1   : > { %v11964_v62 = vor.u32 %v4307_v47, %v4306_v23  ;;  %v4310_v44 = vrot.slane %v4306_v23, 4  ;;  %4532 = vst.msk [vmem:[#allocation2 + $0x58] sm:$0xf] %vm642_vm3, %v4284_v30  ;;  %v4329_v10 = vshrl.u32 %v11845_v38, 16  ;;  %v4332_v43 = vshll.u32 %v11845_v38, 16 }
 0x3f2   : > { %v4301_v34 = vsel %vm10236_vm6, %v4293_v48, %v4300_v41  ;;  %v4317_v16 = vor.u32 %v4315_v49, %v11966_v7  ;;  %v4323_v13 = vrot.slane %v4321_v22, 7  ;;  %v4338_v5 = vshrl.u32 %v11847_v36, 16 }
 0x3f3   : > { %4539 = vst.msk [vmem:[#allocation2 + $0x64] sm:$0xf] %vm642_vm3, %v4301_v34  ;;  %v11979_v47 = vrot.slane %v4329_v10, 7  ;;  %v4341_v23 = vshll.u32 %v11847_v36, 16  ;;  %v4346_v48 = vshrl.u32 %v11849_v55, 16  ;;  %v4349_v46 = vshll.u32 %v11849_v55, 16 }
 0x3f4   : > { %v4318_v38 = vsel %vm10236_vm6, %v4310_v44, %v4317_v16  ;;  %v11986_v26 = vor.u32 %v4324_v21, %v4323_v13  ;;  %v4327_v30 = vrot.slane %v4323_v13, 4  ;;  %v4340_v41 = vrot.slane %v4338_v5, 7 }
 0x3f5   : > { %v4334_v49 = vor.u32 %v4332_v43, %v11979_v47  ;;  %v11990_v34 = vrot.slane %v4346_v48, 7  ;;  %v4355_v10 = vshrl.u32 %v11851_v8, 16  ;;  %4546 = vst.msk [vmem:[#allocation2 + $0x70] sm:$0xf] %vm642_vm3, %v4318_v38  ;;  %v4358_v51 = vshll.u32 %v11851_v8, 16 }
 0x3f6   : > { %v11994_v36 = vor.u32 %v4341_v23, %v4340_v41  ;;  %v4344_v55 = vrot.slane %v4340_v41, 4  ;;  %v4363_v44 = vshrl.u32 %v11853_v4, 16  ;;  %v4366_v48 = vshll.u32 %v11853_v4, 16 }
 0x3f7   : > { %v4335_v21 = vsel %vm10236_vm6, %v4327_v30, %v4334_v49  ;;  %v4351_v43 = vor.u32 %v4349_v46, %v11990_v34  ;;  %v4357_v13 = vrot.slane %v4355_v10, 7  ;;  %v4372_v23 = vshrl.u32 %v11855_v6, 16  ;;  %v4491_v10 = vld [vmem:[#allocation2 + $0x14] sm:$0x1] }
 0x3f8   : > { %v12002_v5 = vrot.slane %v4363_v44, 7  ;;  %v4375_v38 = vshll.u32 %v11855_v6, 16  ;;  %4553 = vst.msk [vmem:[#allocation2 + $0x7c] sm:$0xf] %vm642_vm3, %v4335_v21  ;;  %v4380_v46 = vshrl.u32 %v11857_v37, 16  ;;  %v4383_v4 = vshll.u32 %v11857_v37, 16 }
 0x3f9   : > { %v4352_v8 = vsel %vm10236_vm6, %v4344_v55, %v4351_v43  ;;  %v12010_v41 = vor.u32 %v4358_v51, %v4357_v13  ;;  %v4361_v30 = vrot.slane %v4357_v13, 4  ;;  %v4374_v44 = vrot.slane %v4372_v23, 7  ;;  %v4494_v43 = vld [vmem:[#allocation2 + $0x18] sm:$0xf]  ;;  %v4487_v13 = vld [vmem:[#allocation2 + $0xc] sm:$0xf] }
 0x3fa   : > { %v4368_v49 = vor.u32 %v4366_v48, %v12002_v5  ;;  %4560 = vst.msk [vmem:[#allocation2 + $0x88] sm:$0xf] %vm642_vm3, %v4352_v8  ;;  %v12017_v6 = vrot.slane %v4380_v46, 7  ;;  %v4389_v21 = vshrl.u32 %v11859_v54, 16  ;;  %v4392_v55 = vshll.u32 %v11859_v54, 16 }
 0x3fb   : > { %v4397_v51 = vshrl.u32 %v11861_v63, 16  ;;  %v12024_v16 = vor.u32 %v4375_v38, %v4374_v44  ;;  %v4378_v23 = vrot.slane %v4374_v44, 4  ;;  %v4400_v37 = vshll.u32 %v11861_v63, 16  ;;  %v4498_v54 = vld [vmem:[#allocation2 + $0x20] sm:$0x1] }
 0x3fc   : > { %v4369_v48 = vsel %vm10236_vm6, %v4361_v30, %v4368_v49  ;;  %v4385_v8 = vor.u32 %v4383_v4, %v12017_v6  ;;  %v4391_v22 = vrot.slane %v4389_v21, 7  ;;  %v12035_v38 = vor.u32 %v4409_v27, %v11754_v24  ;;  %v4512_v44 = vld [vmem:[#allocation2 + $0x38] sm:$0x1]  ;;  %v4505_v4 = vld [vmem:[#allocation2 + $0x2c] sm:$0x1] }
 0x3fd   : > { %v12029_v25 = vrot.slane %v4397_v51, 7  ;;  %4567 = vst.msk [vmem:[#allocation2 + $0x94] sm:$0xf] %vm642_vm3, %v4369_v48  ;;  %v4423_v63 = vshrl.u32 %v11863_v9, 16  ;;  %v4426_v30 = vshll.u32 %v11863_v9, 16  ;;  %v4431_v49 = vshrl.u32 %v11865_v2, 16 }
 0x3fe   : > { %v4515_v21 = vld [vmem:[#allocation2 + $0x3c] sm:$0xf]  ;;  %v4386_v51 = vsel %vm10236_vm6, %v4378_v23, %v4385_v8  ;;  %v12042_v48 = vor.u32 %v4392_v55, %v4391_v22  ;;  %v4395_v46 = vrot.slane %v4391_v22, 4  ;;  %v4526_v27 = vld [vmem:[#allocation2 + $0x50] sm:$0x1]  ;;  %v4434_v58 = vshll.u32 %v11865_v2, 16 }
 0x3ff   : > { %v4402_v59 = vor.u32 %v4400_v37, %v12029_v25  ;;  %v4519_v24 = vld [vmem:[#allocation2 + $0x44] sm:$0x1]  ;;  %v4425_v45 = vrot.slane %v4423_v63, 7  ;;  %v12046_v9 = vrot.slane %v4431_v49, 7  ;;  %4574 = vst.msk [vmem:[#allocation2 + $0xa0] sm:$0xf] %vm642_vm3, %v4386_v51  ;;  %v4488_v37 = vsel %vm10244_vm7, %v11875_v14, %v4487_v13 }
 0x400   : > { %v4540_v23 = vld [vmem:[#allocation2 + $0x68] sm:$0x1]  ;;  %v4533_v55 = vld [vmem:[#allocation2 + $0x5c] sm:$0x1]  ;;  %v13704_v8 = vrot.slane %v11867_v15, 4  ;;  %v4495_v2 = vsel %vm10244_vm7, %v11879_v12, %v4494_v43  ;;  %v13705_v43 = vrot.slane %v11871_v53, 4 }
 0x401   : > { %v4403_v22 = vsel %vm10236_vm6, %v4395_v46, %v4402_v59  ;;  %v12062_v49 = vld [vmem:[#allocation2 + $0x78] sm:$0xf]  ;;  %v4543_v51 = vld [vmem:[#allocation2 + $0x6c] sm:$0xf]  ;;  %v12064_v52 = vor.u32 %v4426_v30, %v4425_v45  ;;  %v4429_v19 = vrot.slane %v4425_v45, 4  ;;  %v4436_v59 = vor.u32 %v4434_v58, %v12046_v9 }
 0x402   : > { %v4492_v63 = vsel %vm10250_vm8, %v13704_v8, %v4491_v10  ;;  %v4438_v46 = vrot.slane %v12046_v9, 4  ;;  %4489 = vst [vmem:[#allocation2 + $0xc] sm:$0xf] %v4488_v37  ;;  %4496 = vst [vmem:[#allocation2 + $0x18] sm:$0xf] %v4495_v2  ;;  %v4499_v13 = vsel %vm10250_vm8, %v13705_v43, %v4498_v54  ;;  %v4502_v45 = vsel %vm10244_vm7, %v11894_v60, %v4501_v57 }
 0x403   : > { %4493 = vst [vmem:[#allocation2 + $0x14] sm:$0x1] %v4492_v63  ;;  %4581 = vst.msk [vmem:[#allocation2 + $0xac] sm:$0xf] %vm642_vm3, %v4403_v22  ;;  %v4554_v15 = vld [vmem:[#allocation2 + $0x80] sm:$0x1]  ;;  %v4509_v22 = vsel %vm10244_vm7, %v11909_v35, %v4508_v42  ;;  %v4437_v2 = vsel %vm10236_vm6, %v4429_v19, %v4436_v59  ;;  %v4516_v57 = vsel %vm10244_vm7, %v11922_v1, %v4515_v21 }
 0x404   : > { %v4547_v14 = vld [vmem:[#allocation2 + $0x74] sm:$0x1]  ;;  %v4564_v10 = vld [vmem:[#allocation2 + $0x90] sm:$0xf]  ;;  %v13706_v58 = vrot.slane %v11885_v61, 4  ;;  %v13707_v60 = vrot.slane %v11900_v50, 4  ;;  %v4523_v50 = vsel %vm10244_vm7, %v11927_v39, %v4522_v17  ;;  %v4530_v1 = vsel %vm10244_vm7, %v11940_v33, %v4529_v18 }
 0x405   : > { %v4557_v37 = vld [vmem:[#allocation2 + $0x84] sm:$0xf]  ;;  %v4568_v8 = vld [vmem:[#allocation2 + $0x98] sm:$0x1]  ;;  %v4561_v63 = vld [vmem:[#allocation2 + $0x8c] sm:$0x1]  ;;  %v4537_v39 = vsel %vm10244_vm7, %v11956_v11, %v4536_v40  ;;  %v4544_v33 = vsel %vm10244_vm7, %v11964_v62, %v4543_v51  ;;  %v4551_v40 = vsel %vm10244_vm7, %v11986_v26, %v12062_v49 }
 0x406   : > { %v4506_v30 = vsel %vm10250_vm8, %v13706_v58, %v4505_v4  ;;  %4500 = vst [vmem:[#allocation2 + $0x20] sm:$0x1] %v4499_v13  ;;  %4503 = vst [vmem:[#allocation2 + $0x24] sm:$0xf] %v4502_v45  ;;  %v4513_v61 = vsel %vm10250_vm8, %v13707_v60, %v4512_v44  ;;  %v13708_v35 = vrot.slane %v11914_v28, 4  ;;  %v13709_v44 = vrot.slane %v11929_v32, 4 }
 0x407   : > { %4507 = vst [vmem:[#allocation2 + $0x2c] sm:$0x1] %v4506_v30  ;;  %4510 = vst [vmem:[#allocation2 + $0x30] sm:$0xf] %v4509_v22  ;;  %v4578_v19 = vld [vmem:[#allocation2 + $0xa8] sm:$0xf]  ;;  %v4558_v62 = vsel %vm10244_vm7, %v11994_v36, %v4557_v37 }
 0x408   : > { %v4520_v42 = vsel %vm10250_vm8, %v13708_v35, %v4519_v24  ;;  %v4571_v54 = vld [vmem:[#allocation2 + $0x9c] sm:$0xf]  ;;  %v4575_v4 = vld [vmem:[#allocation2 + $0xa4] sm:$0x1]  ;;  %4514 = vst [vmem:[#allocation2 + $0x38] sm:$0x1] %v4513_v61  ;;  %v4527_v28 = vsel %vm10250_vm8, %v13709_v44, %v4526_v27 }
 0x409   : > { %4517 = vst [vmem:[#allocation2 + $0x3c] sm:$0xf] %v4516_v57  ;;  %4521 = vst [vmem:[#allocation2 + $0x44] sm:$0x1] %v4520_v42  ;;  %v13710_v21 = vrot.slane %v11942_v3, 4  ;;  %v13711_v18 = vrot.slane %v11952_v0, 4 }
 0x40a   : > { %4595 = vst.msk [vmem:[#allocation2 + $0xc4] sm:$0xf] %vm642_vm3, %v4437_v2  ;;  %v4582_v59 = vld [vmem:[#allocation2 + $0xb0] sm:$0x1]  ;;  %v4592_v43 = vld [vmem:[#allocation2 + $0xc0] sm:$0xf] }
 0x40b   : > { %v4534_v24 = vsel %vm10250_vm8, %v13710_v21, %v4533_v55  ;;  %v4585_v13 = vld [vmem:[#allocation2 + $0xb4] sm:$0xf]  ;;  %4524 = vst [vmem:[#allocation2 + $0x48] sm:$0xf] %v4523_v50  ;;  %4528 = vst [vmem:[#allocation2 + $0x50] sm:$0x1] %v4527_v28  ;;  %v4541_v32 = vsel %vm10250_vm8, %v13711_v18, %v4540_v23 }
 0x40c   : > { %4531 = vst [vmem:[#allocation2 + $0x54] sm:$0xf] %v4530_v1  ;;  %4535 = vst [vmem:[#allocation2 + $0x5c] sm:$0x1] %v4534_v24  ;;  %v13712_v3 = vrot.slane %v11966_v7, 4  ;;  %v13713_v0 = vrot.slane %v11979_v47, 4  ;;  %v4565_v47 = vsel %vm10244_vm7, %v12010_v41, %v4564_v10 }
 0x40d   : > { %v4603_v27 = vld [vmem:[#allocation2 + $0x8] sm:$0x1]  ;;  %v4606_v55 = vld [vmem:[#allocation2 + $0xcc] sm:$0xf]  ;;  %4538 = vst [vmem:[#allocation2 + $0x60] sm:$0xf] %v4537_v39 }
 0x40e   : > { %v4548_v17 = vsel %vm10250_vm8, %v13712_v3, %v4547_v14  ;;  %v4596_v45 = vld [vmem:[#allocation2 + $0xc8] sm:$0x1]  ;;  %4542 = vst [vmem:[#allocation2 + $0x68] sm:$0x1] %v4541_v32  ;;  %4545 = vst [vmem:[#allocation2 + $0x6c] sm:$0xf] %v4544_v33  ;;  %v4555_v11 = vsel %vm10250_vm8, %v13713_v0, %v4554_v15  ;;  %v4607_v30 = vsel %vm10244_vm7, %v12035_v38, %v4606_v55 }
 0x40f   : > { %4549 = vst [vmem:[#allocation2 + $0x74] sm:$0x1] %v4548_v17  ;;  %v13714_v7 = vrot.slane %v11990_v34, 4  ;;  %4552 = vst [vmem:[#allocation2 + $0x78] sm:$0xf] %v4551_v40  ;;  %v13715_v26 = vrot.slane %v12002_v5, 4  ;;  %v4572_v34 = vsel %vm10244_vm7, %v12024_v16, %v4571_v54  ;;  %v4579_v5 = vsel %vm10244_vm7, %v12042_v48, %v4578_v19 }
 0x410   : > { %4556 = vst [vmem:[#allocation2 + $0x80] sm:$0x1] %v4555_v11  ;;  %4559 = vst [vmem:[#allocation2 + $0x84] sm:$0xf] %v4558_v62  ;;  %v13716_v36 = vrot.slane %v12017_v6, 4  ;;  %v13717_v41 = vrot.slane %v12029_v25, 4  ;;  %v4586_v16 = vsel %vm10244_vm7, %v12035_v38, %v4585_v13  ;;  %v4593_v6 = vsel %vm10244_vm7, %v12064_v52, %v4592_v43 }
 0x411   : > { %v4562_v23 = vsel %vm10250_vm8, %v13714_v7, %v4561_v63  ;;  %v4569_v49 = vsel %vm10250_vm8, %v13715_v26, %v4568_v8  ;;  %4566 = vst [vmem:[#allocation2 + $0x90] sm:$0xf] %v4565_v47  ;;  %4573 = vst [vmem:[#allocation2 + $0x9c] sm:$0xf] %v4572_v34  ;;  %v4614_v14 = vld [vmem:[#allocation2 + $0xc] sm:$0x2]  ;;  %v4597_v25 = vsel %vm10250_vm8, %v4438_v46, %v4596_v45 }
 0x412   : > { %4563 = vst [vmem:[#allocation2 + $0x8c] sm:$0x1] %v4562_v23  ;;  %v4576_v51 = vsel %vm10250_vm8, %v13716_v36, %v4575_v4  ;;  %4570 = vst [vmem:[#allocation2 + $0x98] sm:$0x1] %v4569_v49  ;;  %v4583_v15 = vsel %vm10250_vm8, %v13717_v41, %v4582_v59  ;;  %v4615_v10 = vld [vmem:[#allocation2 + $0x18] sm:$0x2]  ;;  %v4600_v48 = vsel %vm10244_vm7, %v11879_v12, %v12096_v56 }
 0x413   : > { %4577 = vst [vmem:[#allocation2 + $0xa4] sm:$0x1] %v4576_v51  ;;  %4580 = vst [vmem:[#allocation2 + $0xa8] sm:$0xf] %v4579_v5  ;;  %v13718_v58 = vrot.slane %v11871_v53, 4  ;;  %v8313_v12 = vrot.slane %v4614_v14, 9 }
 0x414   : > { %4584 = vst [vmem:[#allocation2 + $0xb0] sm:$0x1] %v4583_v15  ;;  %4587 = vst [vmem:[#allocation2 + $0xb4] sm:$0xf] %v4586_v16  ;;  %v4706_v22 = vld [vmem:[#allocation2 + $0xc] sm:$0x1] }
 0x415   : > { %4594 = vst [vmem:[#allocation2 + $0xc0] sm:$0xf] %v4593_v6  ;;  %v4604_v52 = vsel %vm10250_vm8, %v13718_v58, %v4603_v27  ;;  %v4709_v37 = vld [vmem:[#allocation2 + $0x18] sm:$0x1]  ;;  %v12184_v9 = vld [vmem:[#allocation2 + $0x4] sm:$0x8]  ;;  %v4707_v38 = vsel %vm10250_vm8, %v8313_v12, %v4706_v22 }
 0x416   : > { %4598 = vst [vmem:[#allocation2 + $0xc8] sm:$0x1] %v4597_v25  ;;  %4601 = vst [vmem:[#allocation2] sm:$0xf] %v4600_v48  ;;  %v4616_v46 = vld [vmem:[#allocation2 + $0x24] sm:$0x2] }
 0x417   : > { %4605 = vst [vmem:[#allocation2 + $0x8] sm:$0x1] %v4604_v52  ;;  %4608 = vst [vmem:[#allocation2 + $0xcc] sm:$0xf] %v4607_v30  ;;  %v4617_v8 = vld [vmem:[#allocation2 + $0x30] sm:$0x2] }
 0x418   : > { %v8314_v63 = vrot.slane %v4615_v10, 9  ;;  %v4618_v53 = vld [vmem:[#allocation2 + $0x3c] sm:$0x2]  ;;  %v8315_v2 = vrot.slane %v4616_v46, 9  ;;  %v8316_v60 = vrot.slane %v4617_v8, 9  ;;  %v8330_v56 = vrot.slane %v12184_v9, 11 }
 0x419   : > { %v4712_v61 = vld [vmem:[#allocation2 + $0x24] sm:$0x1]  ;;  %v4619_v57 = vld [vmem:[#allocation2 + $0x48] sm:$0x2]  ;;  %v4620_v35 = vld [vmem:[#allocation2 + $0x54] sm:$0x2] }
 0x41a   : > { %v8317_v29 = vrot.slane %v4618_v53, 9  ;;  %v4710_v42 = vsel %vm10250_vm8, %v8314_v63, %v4709_v37  ;;  %v4621_v19 = vld [vmem:[#allocation2 + $0x60] sm:$0x2]  ;;  %v12191_v54 = vld [vmem:[#allocation2 + $0x6c] sm:$0x2]  ;;  %v8318_v4 = vrot.slane %v4619_v57, 9  ;;  %v4713_v44 = vsel %vm10250_vm8, %v8315_v2, %v4712_v61 }
 0x41b   : > { %v8319_v50 = vrot.slane %v4620_v35, 9  ;;  %4708 = vst [vmem:[#allocation2 + $0xc] sm:$0x1] %v4707_v38  ;;  %4711 = vst [vmem:[#allocation2 + $0x18] sm:$0x1] %v4710_v42  ;;  %v8320_v21 = vrot.slane %v4621_v19, 9 }
 0x41c   : > { %v4623_v28 = vld [vmem:[#allocation2 + $0x78] sm:$0x2]  ;;  %v4624_v1 = vld [vmem:[#allocation2 + $0x84] sm:$0x2]  ;;  %v8321_v24 = vrot.slane %v12191_v54, 9 }
 0x41d   : > { %4714 = vst [vmem:[#allocation2 + $0x24] sm:$0x1] %v4713_v44  ;;  %v4758_v59 = vld [vmem:[#allocation2 + $0x10] sm:$0x8]  ;;  %v12196_v43 = vld [vmem:[#allocation2 + $0x90] sm:$0x2] }
 0x41e   : > { %v12198_v13 = vld [vmem:[#allocation2 + $0x9c] sm:$0x2]  ;;  %v8322_v39 = vrot.slane %v4623_v28, 9  ;;  %v8323_v18 = vrot.slane %v4624_v1, 9  ;;  %v4627_v32 = vld [vmem:[#allocation2 + $0xa8] sm:$0x2] }
 0x41f   : > { %v12200_v33 = vld [vmem:[#allocation2 + $0xb4] sm:$0x2]  ;;  %v12202_v3 = vld [vmem:[#allocation2 + $0xc0] sm:$0x2]  ;;  %v12204_v27 = vld [vmem:[#allocation2 + $0xcc] sm:$0x2] }
 0x420   : > { %v4613_v17 = vld [vmem:[#allocation2] sm:$0x2]  ;;  %v8324_v55 = vrot.slane %v12196_v43, 9  ;;  %v8325_v45 = vrot.slane %v12198_v13, 9  ;;  %v8326_v0 = vrot.slane %v4627_v32, 9  ;;  %v8327_v11 = vrot.slane %v12200_v33, 9 }
 0x421   : > { %v8312_v40 = vrot.slane %v4613_v17, 9  ;;  %v8328_v62 = vrot.slane %v12202_v3, 9  ;;  %v4703_v7 = vld [vmem:[#allocation2] sm:$0x1]  ;;  %v4850_v23 = vld [vmem:[#allocation2 + $0x14] sm:$0x1] }
 0x422   : > { %v8329_v47 = vrot.slane %v12204_v27, 9  ;;  %v4715_v26 = vld [vmem:[#allocation2 + $0x30] sm:$0x1]  ;;  %v4718_v49 = vld [vmem:[#allocation2 + $0x3c] sm:$0x1]  ;;  %v8331_v36 = vrot.slane %v4758_v59, 11 }
 0x423   : > { %v12211_v34 = vld [vmem:[#allocation2 + $0x1c] sm:$0x8]  ;;  %v4704_v51 = vsel %vm10250_vm8, %v8312_v40, %v4703_v7  ;;  %v4716_v5 = vsel %vm10250_vm8, %v8316_v60, %v4715_v26  ;;  %v4719_v41 = vsel %vm10250_vm8, %v8317_v29, %v4718_v49  ;;  %v4721_v15 = vld [vmem:[#allocation2 + $0x48] sm:$0x1]  ;;  %v4724_v16 = vld [vmem:[#allocation2 + $0x54] sm:$0x1] }
 0x424   : > { %v4727_v6 = vld [vmem:[#allocation2 + $0x60] sm:$0x1]  ;;  %v12219_v14 = vld [vmem:[#allocation2 + $0x28] sm:$0x8]  ;;  %v12221_v10 = vld [vmem:[#allocation2 + $0x34] sm:$0x8]  ;;  %v4722_v58 = vsel %vm10250_vm8, %v8318_v4, %v4721_v15  ;;  %v4725_v52 = vsel %vm10250_vm8, %v8319_v50, %v4724_v16  ;;  %v4851_v2 = vsel %vm10289_vm9, %v8331_v36, %v4850_v23 }
 0x425   : > { %v12223_v25 = vld [vmem:[#allocation2 + $0x40] sm:$0x8]  ;;  %v12225_v48 = vld [vmem:[#allocation2 + $0x4c] sm:$0x8]  ;;  %4705 = vst [vmem:[#allocation2] sm:$0x1] %v4704_v51  ;;  %v4728_v30 = vsel %vm10250_vm8, %v8320_v21, %v4727_v6 }
 0x426   : > { %4717 = vst [vmem:[#allocation2 + $0x30] sm:$0x1] %v4716_v5  ;;  %4720 = vst [vmem:[#allocation2 + $0x3c] sm:$0x1] %v4719_v41  ;;  %v4730_v22 = vld [vmem:[#allocation2 + $0x6c] sm:$0x1] }
 0x427   : > { %v4733_v37 = vld [vmem:[#allocation2 + $0x78] sm:$0x1]  ;;  %v4736_v46 = vld [vmem:[#allocation2 + $0x84] sm:$0x1]  ;;  %v12233_v8 = vld [vmem:[#allocation2 + $0x58] sm:$0x8]  ;;  %v4731_v60 = vsel %vm10250_vm8, %v8321_v24, %v4730_v22 }
 0x428   : > { %v12235_v12 = vld [vmem:[#allocation2 + $0x64] sm:$0x8]  ;;  %v12237_v63 = vld [vmem:[#allocation2 + $0x70] sm:$0x8]  ;;  %v12239_v53 = vld [vmem:[#allocation2 + $0x7c] sm:$0x8]  ;;  %v4734_v61 = vsel %vm10250_vm8, %v8322_v39, %v4733_v37  ;;  %v4737_v57 = vsel %vm10250_vm8, %v8323_v18, %v4736_v46 }
 0x429   : > { %4723 = vst [vmem:[#allocation2 + $0x48] sm:$0x1] %v4722_v58  ;;  %4726 = vst [vmem:[#allocation2 + $0x54] sm:$0x1] %v4725_v52  ;;  %v4739_v35 = vld [vmem:[#allocation2 + $0x90] sm:$0x1] }
 0x42a   : > { %4729 = vst [vmem:[#allocation2 + $0x60] sm:$0x1] %v4728_v30  ;;  %v4742_v29 = vld [vmem:[#allocation2 + $0x9c] sm:$0x1]  ;;  %v4745_v38 = vld [vmem:[#allocation2 + $0xa8] sm:$0x1]  ;;  %v4740_v4 = vsel %vm10250_vm8, %v8324_v55, %v4739_v35 }
 0x42b   : > { %v12249_v42 = vld [vmem:[#allocation2 + $0x88] sm:$0x8]  ;;  %v12251_v19 = vld [vmem:[#allocation2 + $0x94] sm:$0x8]  ;;  %v12253_v54 = vld [vmem:[#allocation2 + $0xa0] sm:$0x8]  ;;  %v4743_v50 = vsel %vm10250_vm8, %v8325_v45, %v4742_v29  ;;  %v4746_v44 = vsel %vm10250_vm8, %v8326_v0, %v4745_v38 }
 0x42c   : > { %4852 = vst [vmem:[#allocation2 + $0x14] sm:$0x1] %v4851_v2  ;;  %4732 = vst [vmem:[#allocation2 + $0x6c] sm:$0x1] %v4731_v60  ;;  %v4748_v28 = vld [vmem:[#allocation2 + $0xb4] sm:$0x1] }
 0x42d   : > { %4735 = vst [vmem:[#allocation2 + $0x78] sm:$0x1] %v4734_v61  ;;  %4738 = vst [vmem:[#allocation2 + $0x84] sm:$0x1] %v4737_v57  ;;  %v4751_v1 = vld [vmem:[#allocation2 + $0xc0] sm:$0x1]  ;;  %v4749_v24 = vsel %vm10250_vm8, %v8327_v11, %v4748_v28 }
 0x42e   : > { %v4754_v21 = vld [vmem:[#allocation2 + $0xcc] sm:$0x1]  ;;  %4741 = vst [vmem:[#allocation2 + $0x90] sm:$0x1] %v4740_v4  ;;  %4744 = vst [vmem:[#allocation2 + $0x9c] sm:$0x1] %v4743_v50  ;;  %v4752_v59 = vsel %vm10250_vm8, %v8328_v62, %v4751_v1 }
 0x42f   : > { %4747 = vst [vmem:[#allocation2 + $0xa8] sm:$0x1] %v4746_v44  ;;  %v4755_v43 = vsel %vm10250_vm8, %v8329_v47, %v4754_v21  ;;  %v12267_v13 = vld [vmem:[#allocation2 + $0xac] sm:$0x8]  ;;  %v12269_v39 = vld [vmem:[#allocation2 + $0xc4] sm:$0x8] }
 0x430   : > { %v8332_v18 = vrot.slane %v12211_v34, 11  ;;  %4750 = vst [vmem:[#allocation2 + $0xb4] sm:$0x1] %v4749_v24  ;;  %4753 = vst [vmem:[#allocation2 + $0xc0] sm:$0x1] %v4752_v59  ;;  %v8333_v32 = vrot.slane %v12219_v14, 11 }
 0x431   : > { %4756 = vst [vmem:[#allocation2 + $0xcc] sm:$0x1] %v4755_v43  ;;  %v8334_v33 = vrot.slane %v12221_v10, 11  ;;  %v8335_v3 = vrot.slane %v12223_v25, 11  ;;  %v8336_v17 = vrot.slane %v12225_v48, 11  ;;  %v8337_v55 = vrot.slane %v12233_v8, 11 }
 0x432   : > { %v4847_v27 = vld [vmem:[#allocation2 + $0x8] sm:$0x1]  ;;  %v4853_v31 = vld [vmem:[#allocation2 + $0x20] sm:$0x1]  ;;  %v8338_v45 = vrot.slane %v12235_v12, 11  ;;  %v8339_v40 = vrot.slane %v12237_v63, 11 }
 0x433   : > { %v8340_v0 = vrot.slane %v12239_v53, 11  ;;  %v4856_v11 = vld [vmem:[#allocation2 + $0x2c] sm:$0x1]  ;;  %v8341_v62 = vrot.slane %v12249_v42, 11  ;;  %v8342_v7 = vrot.slane %v12251_v19, 11  ;;  %v8343_v23 = vrot.slane %v12253_v54, 11 }
 0x434   : > { %v8344_v47 = vrot.slane %v12267_v13, 11  ;;  %v4859_v26 = vld [vmem:[#allocation2 + $0x38] sm:$0x1]  ;;  %v12284_v49 = vld [vmem:[#allocation2 + $0x4] sm:$0xf]  ;;  %v8346_v34 = vrot.slane %v12269_v39, 11  ;;  %v4848_v36 = vsel %vm10289_vm9, %v8330_v56, %v4847_v27  ;;  %v4854_v51 = vsel %vm10289_vm9, %v8332_v18, %v4853_v31 }
 0x435   : > { %v4857_v5 = vsel %vm10289_vm9, %v8333_v32, %v4856_v11  ;;  %v4862_v41 = vld [vmem:[#allocation2 + $0x44] sm:$0x1]  ;;  %v4865_v15 = vld [vmem:[#allocation2 + $0x50] sm:$0x1]  ;;  %4849 = vst [vmem:[#allocation2 + $0x8] sm:$0x1] %v4848_v36  ;;  %v4860_v16 = vsel %vm10289_vm9, %v8334_v33, %v4859_v26 }
 0x436   : > { %4855 = vst [vmem:[#allocation2 + $0x20] sm:$0x1] %v4854_v51  ;;  %4858 = vst [vmem:[#allocation2 + $0x2c] sm:$0x1] %v4857_v5  ;;  %v4863_v9 = vsel %vm10289_vm9, %v8335_v3, %v4862_v41  ;;  %v4866_v56 = vsel %vm10289_vm9, %v8336_v17, %v4865_v15  ;;  %v4868_v6 = vld [vmem:[#allocation2 + $0x5c] sm:$0x1] }
 0x437   : > { %v4871_v14 = vld [vmem:[#allocation2 + $0x68] sm:$0x1]  ;;  %v4874_v10 = vld [vmem:[#allocation2 + $0x74] sm:$0x1]  ;;  %v12301_v25 = vld [vmem:[#allocation2 + $0x10] sm:$0xf]  ;;  %v4869_v48 = vsel %vm10289_vm9, %v8337_v55, %v4868_v6 }
 0x438   : > { %4861 = vst [vmem:[#allocation2 + $0x38] sm:$0x1] %v4860_v16  ;;  %4864 = vst [vmem:[#allocation2 + $0x44] sm:$0x1] %v4863_v9  ;;  %v4872_v58 = vsel %vm10289_vm9, %v8338_v45, %v4871_v14  ;;  %v4875_v52 = vsel %vm10289_vm9, %v8339_v40, %v4874_v10  ;;  %v4877_v30 = vld [vmem:[#allocation2 + $0x80] sm:$0x1] }
 0x439   : > { %4867 = vst [vmem:[#allocation2 + $0x50] sm:$0x1] %v4866_v56  ;;  %v4880_v22 = vld [vmem:[#allocation2 + $0x8c] sm:$0x1]  ;;  %v4883_v37 = vld [vmem:[#allocation2 + $0x98] sm:$0x1]  ;;  %v4878_v46 = vsel %vm10289_vm9, %v8340_v0, %v4877_v30 }
 0x43a   : > { %4870 = vst [vmem:[#allocation2 + $0x5c] sm:$0x1] %v4869_v48  ;;  %4873 = vst [vmem:[#allocation2 + $0x68] sm:$0x1] %v4872_v58  ;;  %v4881_v8 = vsel %vm10289_vm9, %v8341_v62, %v4880_v22  ;;  %v4884_v12 = vsel %vm10289_vm9, %v8342_v7, %v4883_v37  ;;  %v4886_v63 = vld [vmem:[#allocation2 + $0xa4] sm:$0x1] }
 0x43b   : > { %4876 = vst [vmem:[#allocation2 + $0x74] sm:$0x1] %v4875_v52  ;;  %v4889_v53 = vld [vmem:[#allocation2 + $0xb0] sm:$0x1]  ;;  %v4895_v2 = vld [vmem:[#allocation2 + $0xc8] sm:$0x1]  ;;  %v4887_v60 = vsel %vm10289_vm9, %v8343_v23, %v4886_v63 }
 0x43c   : > { %4879 = vst [vmem:[#allocation2 + $0x80] sm:$0x1] %v4878_v46  ;;  %4882 = vst [vmem:[#allocation2 + $0x8c] sm:$0x1] %v4881_v8  ;;  %v4890_v61 = vsel %vm10289_vm9, %v8344_v47, %v4889_v53  ;;  %v4896_v57 = vsel %vm10289_vm9, %v8346_v34, %v4895_v2  ;;  %v12321_v35 = vld [vmem:[#allocation2] sm:$0xf] }
 0x43d   : > { %4885 = vst [vmem:[#allocation2 + $0x98] sm:$0x1] %v4884_v12  ;;  %v4965_v29 = vshll.u32 %v12284_v49, 16  ;;  %v12324_v38 = vld [vmem:[#allocation2 + $0xc] sm:$0xf]  ;;  %v4956_v42 = vshrl.u32 %v12321_v35, 16 }
 0x43e   : > { %4888 = vst [vmem:[#allocation2 + $0xa4] sm:$0x1] %v4887_v60  ;;  %4891 = vst [vmem:[#allocation2 + $0xb0] sm:$0x1] %v4890_v61  ;;  %v4959_v19 = vshll.u32 %v12321_v35, 16  ;;  %v4969_v54 = vshrl.u32 %v12284_v49, 16 }
 0x43f   : > { %4897 = vst [vmem:[#allocation2 + $0xc8] sm:$0x1] %v4896_v57  ;;  %v12329_v4 = vld [vmem:[#allocation2 + $0x14] sm:$0x1]  ;;  %v4980_v20 = vshrl.u32 %v12324_v38, 16  ;;  %v4967_v50 = vrot.slane %v4965_v29, 5 }
 0x440   : > { %13719 = vst [vmem:[#allocation6_spill] sm:$0xff] %v12329_v4  ;;  %v4983_v44 = vshll.u32 %v12324_v38, 16  ;;  %v4989_v28 = vshll.u32 %v12301_v25, 16  ;;  %v4993_v1 = vshrl.u32 %v12301_v25, 16  ;;  %v4958_v21 = vrot.slane %v4956_v42, 4 }
 0x441   : > { %v4961_v24 = vrot.slane %v4959_v19, 5  ;;  %v4971_v59 = vrot.slane %v4969_v54, 4  ;;  %v4982_v43 = vrot.slane %v4980_v20, 4  ;;  %v12335_v13 = vld [vmem:[#allocation2 + $0x8] sm:$0x1]  ;;  %v4999_v33 = vshll.u32 %v12329_v4, 16 }
 0x442   : > { %13720 = vst [vmem:[#allocation7_spill] sm:$0xff] %v12335_v13  ;;  %v4985_v39 = vrot.slane %v4983_v44, 5  ;;  %v4991_v18 = vrot.slane %v4989_v28, 5  ;;  %v4995_v32 = vrot.slane %v4993_v1, 4  ;;  %v4975_v27 = vshll.u32 %v12335_v13, 16 }
 0x443   : > { %v4962_v3 = vor.u32 %v4961_v24, %v4958_v21  ;;  %v4972_v17 = vor.u32 %v4971_v59, %v4967_v50  ;;  %v12339_v31 = vld [vmem:[#allocation2 + $0x18] sm:$0xf]  ;;  %v5001_v40 = vrot.slane %v4999_v33, 5  ;;  %v12341_v0 = vld [vmem:[#allocation2 + $0x1c] sm:$0xf] }
 0x444   : > { %v4986_v55 = vor.u32 %v4985_v39, %v4982_v43  ;;  %v4996_v45 = vor.u32 %v4995_v32, %v4991_v18  ;;  %v4977_v7 = vrot.slane %v4975_v27, 5  ;;  %v10136_v23 = vld [vmem:[%s13584_s2] sm:$0x3]  ;;  %v5004_v36 = vshrl.u32 %v12339_v31, 16  ;;  %v12349_v5 = vld [vmem:[#allocation2 + $0x28] sm:$0xf] }
 0x445   : > { %v4963_v11 = vrot.slane %v4962_v3, 4  ;;  %v4973_v62 = vrot.slane %v4972_v17, 4  ;;  %v5958_v47 = vsel %vm1851_vm0, %v10136_v23, 0  ;;  %v5007_v51 = vshll.u32 %v12339_v31, 16  ;;  %v12355_v9 = vld [vmem:[#allocation2 + $0x20] sm:$0x1] }
 0x446   : > { %v4987_v26 = vrot.slane %v4986_v55, 4  ;;  %v4997_v34 = vrot.slane %v4996_v45, 4  ;;  %13722 = vst [vmem:[#allocation8_spill] sm:$0xff] %v12355_v9  ;;  %v5013_v56 = vshll.u32 %v12341_v0, 16  ;;  %v5017_v6 = vshrl.u32 %v12341_v0, 16 }
 0x447   : > { %v4968_v15 = vsel %vm10357_vm13, %v4963_v11, %v4967_v50  ;;  %v4978_v16 = vsel %vm10357_vm13, %v4973_v62, %v4977_v7  ;;  %v12359_v14 = vld [vmem:[#allocation2 + $0x24] sm:$0xf]  ;;  %v5006_v52 = vrot.slane %v5004_v36, 4  ;;  %v12365_v30 = vld [vmem:[#allocation2 + $0x2c] sm:$0x1]  ;;  %v5009_v37 = vrot.slane %v5007_v51, 5 }
 0x448   : > { %v8366_v10 = vcombine.low %v4968_v15, %v4978_v16  ;;  %v4992_v48 = vsel %vm10357_vm13, %v4987_v26, %v4991_v18  ;;  %v5002_v58 = vsel %vm10357_vm13, %v4997_v34, %v5001_v40  ;;  %13723 = vst [vmem:[#allocation9_spill] sm:$0xff] %v12365_v30  ;;  %v5015_v46 = vrot.slane %v5013_v56, 5  ;;  %v12377_v60 = vld [vmem:[%s13584_s2 + $0x4] sm:$0x3]  ;;  %v12383_v19 = vld [vmem:[#allocation2 + $0x30] sm:$0xf] }
 0x449   : > { %v12367_v22 = vcombine.low %v4992_v48, %v5002_v58  ;;  %v5019_v8 = vrot.slane %v5017_v6, 4  ;;  %v5023_v12 = vshll.u32 %v12355_v9, 16  ;;  %v5028_v63 = vshrl.u32 %v12359_v14, 16  ;;  %v12385_v54 = vld [vmem:[#allocation2 + $0x34] sm:$0xf] }
 0x44a   : > { %9246 = vmatprep.mubr.msk.bf16.mxu1 %vm1802_vm12, %v8366_v10  ;;  %v5031_v53 = vshll.u32 %v12359_v14, 16  ;;  %v5037_v2 = vshll.u32 %v12349_v5, 16  ;;  %v5010_v61 = vor.u32 %v5009_v37, %v5006_v52  ;;  %v5041_v29 = vshrl.u32 %v12349_v5, 16  ;;  %v12389_v39 = vld [vmem:[#allocation2 + $0x38] sm:$0x1] }
 0x44b   : > { %13724 = vst [vmem:[#allocation10_spill] sm:$0xff] %v12367_v22  ;;  %9247 = vmatmul.mubr.msk.bf16.vlgmr.msra.gmra.mrb[0].mxu1 %vm1802_vm12, %v12367_v22  ;;  %v5020_v57 = vor.u32 %v5019_v8, %v5015_v46  ;;  %v5047_v42 = vshll.u32 %v12365_v30, 16  ;;  %v5025_v20 = vrot.slane %v5023_v12, 5  ;;  %v5030_v50 = vrot.slane %v5028_v63, 4  ;;  %v12399_v45 = vld [vmem:[#allocation2 + $0x3c] sm:$0xf] }
 0x44c   : > { %9279 = vmatpush3.bf16.msra.mxu1 %v5958_v47  ;;  %v5033_v44 = vrot.slane %v5031_v53, 5  ;;  %v5039_v28 = vrot.slane %v5037_v2, 5  ;;  %v5011_v1 = vrot.slane %v5010_v61, 4  ;;  %v5043_v24 = vrot.slane %v5041_v29, 4  ;;  %v12403_v23 = vld [vmem:[#allocation2 + $0x40] sm:$0xf] }
 0x44d   : > { %v5021_v21 = vrot.slane %v5020_v57, 4  ;;  %v5049_v59 = vrot.slane %v5047_v42, 5  ;;  %10073 = vmatprep.subr.msk.bf16.mxu1 %vm1851_vm0, %v12377_v60  ;;  %v5052_v18 = vshrl.u32 %v12383_v19, 16  ;;  %v5055_v32 = vshll.u32 %v12383_v19, 16  ;;  %v12410_v16 = vld [vmem:[#allocation2 + $0x44] sm:$0x1] }
 0x44e   : > { %v5034_v43 = vor.u32 %v5033_v44, %v5030_v50  ;;  %v5061_v33 = vshll.u32 %v12385_v54, 16  ;;  %v5016_v3 = vsel %vm10357_vm13, %v5011_v1, %v5015_v46  ;;  %v5044_v27 = vor.u32 %v5043_v24, %v5039_v28  ;;  %v12417_v37 = vld [vmem:[#allocation2 + $0x48] sm:$0xf]  ;;  %v12421_v53 = vld [vmem:[#allocation2 + $0x4c] sm:$0xf] }
 0x44f   : > { %v5026_v17 = vsel %vm10357_vm13, %v5021_v21, %v5025_v20  ;;  %v5065_v55 = vshrl.u32 %v12385_v54, 16  ;;  %v5054_v62 = vrot.slane %v5052_v18, 4  ;;  %v5057_v7 = vrot.slane %v5055_v32, 5  ;;  %v12429_v50 = vld [vmem:[#allocation2 + $0x50] sm:$0x1] }
 0x450   : > { %v12401_v40 = vcombine.low %v5016_v3, %v5026_v17  ;;  %v5035_v11 = vrot.slane %v5034_v43, 4  ;;  %v5045_v47 = vrot.slane %v5044_v27, 4  ;;  %v5063_v26 = vrot.slane %v5061_v33, 5  ;;  %v12436_v43 = vld [vmem:[#allocation2 + $0x54] sm:$0xf] }
 0x451   : > { %v5067_v34 = vrot.slane %v5065_v55, 4  ;;  %v5071_v36 = vshll.u32 %v12389_v39, 16  ;;  %v5058_v15 = vor.u32 %v5057_v7, %v5054_v62  ;;  %v5076_v56 = vshrl.u32 %v12399_v45, 16  ;;  %v12440_v17 = vld [vmem:[#allocation2 + $0x58] sm:$0xf] }
 0x452   : > { %13725 = vst [vmem:[#allocation11_spill] sm:$0xff] %v12401_v40  ;;  %9250 = vmatprep.mubr.msk.bf16.mxu1 %vm1802_vm12, %v12401_v40  ;;  %v5040_v51 = vsel %vm10357_vm13, %v5035_v11, %v5039_v28  ;;  %v5079_v6 = vshll.u32 %v12399_v45, 16  ;;  %v5050_v10 = vsel %vm10357_vm13, %v5045_v47, %v5049_v59  ;;  %v5085_v52 = vshll.u32 %v12403_v23, 16  ;;  %v12579_v13 = vld [vmem:[#allocation2 + $0xb0] sm:$0x1] }
 0x453   : > { %v5068_v48 = vor.u32 %v5067_v34, %v5063_v26  ;;  %v5073_v58 = vrot.slane %v5071_v36, 5  ;;  %v12419_v46 = vcombine.low %v5040_v51, %v5050_v10  ;;  %v5059_v8 = vrot.slane %v5058_v15, 4  ;;  %13739 = vst [vmem:[#allocation23_spill] sm:$0xff] %v12579_v13 }
 0x454   : > { %v5078_v12 = vrot.slane %v5076_v56, 4  ;;  %v5081_v63 = vrot.slane %v5079_v6, 5  ;;  %v5087_v61 = vrot.slane %v5085_v52, 5  ;;  %v5089_v57 = vshrl.u32 %v12403_v23, 16 }
 0x455   : > { %13726 = vst [vmem:[#allocation4_spill] sm:$0xff] %v12419_v46  ;;  %v5069_v2 = vrot.slane %v5068_v48, 4  ;;  %v5095_v29 = vshll.u32 %v12410_v16, 16  ;;  %9251 = vmatmul.mubr.msk.bf16.gmra.mrb[4].mxu1 %vm1802_vm12, %v12419_v46  ;;  %v5064_v42 = vsel %vm10357_vm13, %v5059_v8, %v5063_v26  ;;  %v5100_v44 = vshrl.u32 %v12417_v37, 16  ;;  %v12448_v26 = vld [vmem:[#allocation2 + $0x5c] sm:$0x1] }
 0x456   : > { %v5082_v20 = vor.u32 %v5081_v63, %v5078_v12  ;;  %v5103_v28 = vshll.u32 %v12417_v37, 16  ;;  %v5091_v21 = vrot.slane %v5089_v57, 4  ;;  %v5109_v59 = vshll.u32 %v12421_v53, 16  ;;  %v12454_v8 = vld [vmem:[#allocation2 + $0x60] sm:$0xf] }
 0x457   : > { %v5074_v1 = vsel %vm10357_vm13, %v5069_v2, %v5073_v58  ;;  %v5097_v24 = vrot.slane %v5095_v29, 5  ;;  %v5102_v33 = vrot.slane %v5100_v44, 4  ;;  %v5113_v11 = vshrl.u32 %v12421_v53, 16  ;;  %v12459_v57 = vld [vmem:[#allocation2 + $0x64] sm:$0xf] }
 0x458   : > { %v12438_v18 = vcombine.low %v5064_v42, %v5074_v1  ;;  %v5083_v32 = vrot.slane %v5082_v20, 4  ;;  %v5105_v3 = vrot.slane %v5103_v28, 5  ;;  %v5092_v27 = vor.u32 %v5091_v21, %v5087_v61  ;;  %v12465_v28 = vld [vmem:[#allocation2 + $0x68] sm:$0x1] }
 0x459   : > { %v5111_v55 = vrot.slane %v5109_v59, 5  ;;  %v5119_v62 = vshll.u32 %v12429_v50, 16  ;;  %v5124_v34 = vshrl.u32 %v12436_v43, 16  ;;  %v5127_v36 = vshll.u32 %v12436_v43, 16 }
 0x45a   : > { %13727 = vst [vmem:[#allocation12_spill] sm:$0xff] %v12438_v18  ;;  %9254 = vmatprep.mubr.msk.bf16.mxu1 %vm1802_vm12, %v12438_v18  ;;  %v5088_v7 = vsel %vm10357_vm13, %v5083_v32, %v5087_v61  ;;  %v5106_v47 = vor.u32 %v5105_v3, %v5102_v33  ;;  %v5093_v51 = vrot.slane %v5092_v27, 4  ;;  %v5115_v15 = vrot.slane %v5113_v11, 4  ;;  %v12541_v18 = vld [vmem:[#allocation2 + $0x98] sm:$0x1] }
 0x45b   : > { %v5121_v56 = vrot.slane %v5119_v62, 5  ;;  %v5133_v6 = vshll.u32 %v12440_v17, 16  ;;  %v5126_v48 = vrot.slane %v5124_v34, 4  ;;  %v5129_v58 = vrot.slane %v5127_v36, 5  ;;  %v12478_v34 = vld [vmem:[#allocation2 + $0x70] sm:$0xf] }
 0x45c   : > { %v5107_v10 = vrot.slane %v5106_v47, 4  ;;  %v5137_v52 = vshrl.u32 %v12440_v17, 16  ;;  %v5098_v12 = vsel %vm10357_vm13, %v5093_v51, %v5097_v24  ;;  %v5116_v63 = vor.u32 %v5115_v15, %v5111_v55  ;;  %13735 = vst [vmem:[#allocation3_spill] sm:$0xff] %v12541_v18 }
 0x45d   : > { %v5135_v2 = vrot.slane %v5133_v6, 5  ;;  %v5143_v61 = vshll.u32 %v12448_v26, 16  ;;  %v12461_v29 = vcombine.low %v5088_v7, %v5098_v12  ;;  %v5130_v20 = vor.u32 %v5129_v58, %v5126_v48 }
 0x45e   : > { %v5112_v42 = vsel %vm10357_vm13, %v5107_v10, %v5111_v55  ;;  %v5139_v44 = vrot.slane %v5137_v52, 4  ;;  %v5117_v1 = vrot.slane %v5116_v63, 4  ;;  %v5148_v59 = vshrl.u32 %v12454_v8, 16  ;;  %v12473_v55 = vld [vmem:[#allocation2 + $0x6c] sm:$0xf] }
 0x45f   : > { %13728 = vst [vmem:[#allocation14_spill] sm:$0xff] %v12461_v29  ;;  %v5145_v21 = vrot.slane %v5143_v61, 5  ;;  %v5151_v24 = vshll.u32 %v12454_v8, 16  ;;  %9255 = vmatmul.mubr.msk.bf16.gmra.mrb[8].mxu1 %vm1802_vm12, %v12461_v29  ;;  %v5131_v32 = vrot.slane %v5130_v20, 4  ;;  %v5157_v3 = vshll.u32 %v12459_v57, 16 }
 0x460   : > { %v5140_v33 = vor.u32 %v5139_v44, %v5135_v2  ;;  %v5161_v27 = vshrl.u32 %v12459_v57, 16  ;;  %v5122_v11 = vsel %vm10357_vm13, %v5117_v1, %v5121_v56  ;;  %v5150_v62 = vrot.slane %v5148_v59, 4  ;;  %v12484_v52 = vld [vmem:[#allocation2 + $0x74] sm:$0x1] }
 0x461   : > { %v5153_v7 = vrot.slane %v5151_v24, 5  ;;  %v5167_v47 = vshll.u32 %v12465_v28, 16  ;;  %v12480_v36 = vcombine.low %v5112_v42, %v5122_v11  ;;  %v5136_v51 = vsel %vm10357_vm13, %v5131_v32, %v5135_v2  ;;  %v12494_v42 = vld [vmem:[#allocation2 + $0x78] sm:$0xf]  ;;  %v12498_v24 = vld [vmem:[#allocation2 + $0x7c] sm:$0xf] }
 0x462   : > { %v5141_v15 = vrot.slane %v5140_v33, 4  ;;  %v5159_v6 = vrot.slane %v5157_v3, 5  ;;  %v5163_v48 = vrot.slane %v5161_v27, 4  ;;  %v5172_v56 = vshrl.u32 %v12473_v55, 16 }
 0x463   : > { %13729 = vst [vmem:[#allocation15_spill] sm:$0xff] %v12480_v36  ;;  %v5154_v10 = vor.u32 %v5153_v7, %v5150_v62  ;;  %v5169_v58 = vrot.slane %v5167_v47, 5  ;;  %9258 = vmatprep.mubr.msk.bf16.mxu1 %vm1802_vm12, %v12480_v36  ;;  %v5175_v63 = vshll.u32 %v12473_v55, 16  ;;  %v5181_v61 = vshll.u32 %v12478_v34, 16 }
 0x464   : > { %v5146_v12 = vsel %vm10357_vm13, %v5141_v15, %v5145_v21  ;;  %v5185_v2 = vshrl.u32 %v12478_v34, 16  ;;  %v5164_v1 = vor.u32 %v5163_v48, %v5159_v6  ;;  %v5174_v59 = vrot.slane %v5172_v56, 4  ;;  %v12510_v56 = vld [vmem:[#allocation2 + $0x84] sm:$0xf] }
 0x465   : > { %v12496_v20 = vcombine.low %v5136_v51, %v5146_v12  ;;  %v5155_v44 = vrot.slane %v5154_v10, 4  ;;  %v5177_v32 = vrot.slane %v5175_v63, 5  ;;  %v5183_v33 = vrot.slane %v5181_v61, 5  ;;  %v12507_v10 = vld [vmem:[#allocation2 + $0x80] sm:$0x1] }
 0x466   : > { %v5187_v3 = vrot.slane %v5185_v2, 4  ;;  %v5191_v21 = vshll.u32 %v12484_v52, 16  ;;  %v5165_v11 = vrot.slane %v5164_v1, 4  ;;  %v5196_v62 = vshrl.u32 %v12494_v42, 16  ;;  %13731 = vst [vmem:[#allocation18_spill] sm:$0xff] %v12507_v10 }
 0x467   : > { %13730 = vst [vmem:[#allocation16_spill] sm:$0xff] %v12496_v20  ;;  %v5160_v27 = vsel %vm10357_vm13, %v5155_v44, %v5159_v6  ;;  %v5199_v7 = vshll.u32 %v12494_v42, 16  ;;  %9259 = vmatmul.mubr.msk.bf16.gmra.mrb[12].mxu1 %vm1802_vm12, %v12496_v20  ;;  %v5178_v47 = vor.u32 %v5177_v32, %v5174_v59  ;;  %v5205_v48 = vshll.u32 %v12498_v24, 16  ;;  %v12515_v2 = vld [vmem:[#allocation2 + $0x88] sm:$0xf] }
 0x468   : > { %v5188_v51 = vor.u32 %v5187_v3, %v5183_v33  ;;  %v5193_v15 = vrot.slane %v5191_v21, 5  ;;  %v5170_v6 = vsel %vm10357_vm13, %v5165_v11, %v5169_v58  ;;  %v5198_v12 = vrot.slane %v5196_v62, 4 }
 0x469   : > { %v5201_v63 = vrot.slane %v5199_v7, 5  ;;  %v5209_v61 = vshrl.u32 %v12498_v24, 16  ;;  %v12517_v44 = vcombine.low %v5160_v27, %v5170_v6  ;;  %v5179_v1 = vrot.slane %v5178_v47, 4  ;;  %v12527_v27 = vld [vmem:[#allocation2 + $0x8c] sm:$0x1] }
 0x46a   : > { %v5189_v59 = vrot.slane %v5188_v51, 4  ;;  %v5207_v32 = vrot.slane %v5205_v48, 5  ;;  %v5215_v20 = vshll.u32 %v12507_v10, 16  ;;  %v5220_v36 = vshrl.u32 %v12510_v56, 16  ;;  %13733 = vst [vmem:[#allocation20_spill] sm:$0xff] %v12527_v27 }
 0x46b   : > { %13732 = vst [vmem:[#allocation19_spill] sm:$0xff] %v12517_v44  ;;  %v5202_v3 = vor.u32 %v5201_v63, %v5198_v12  ;;  %v5211_v21 = vrot.slane %v5209_v61, 4  ;;  %9262 = vmatprep.mubr.msk.bf16.mxu1 %vm1802_vm12, %v12517_v44  ;;  %v5184_v58 = vsel %vm10357_vm13, %v5179_v1, %v5183_v33  ;;  %v5223_v62 = vshll.u32 %v12510_v56, 16  ;;  %v12531_v47 = vld [vmem:[#allocation2 + $0x90] sm:$0xf] }
 0x46c   : > { %v5194_v11 = vsel %vm10357_vm13, %v5189_v59, %v5193_v15  ;;  %v5229_v7 = vshll.u32 %v12515_v2, 16  ;;  %v5217_v12 = vrot.slane %v5215_v20, 5  ;;  %v12535_v63 = vld [vmem:[#allocation2 + $0x94] sm:$0xf]  ;;  %v5222_v61 = vrot.slane %v5220_v36, 4 }
 0x46d   : > { %v12533_v51 = vcombine.low %v5184_v58, %v5194_v11  ;;  %v5203_v48 = vrot.slane %v5202_v3, 4  ;;  %v5212_v6 = vor.u32 %v5211_v21, %v5207_v32  ;;  %v5225_v33 = vrot.slane %v5223_v62, 5  ;;  %v12548_v11 = vld [vmem:[#allocation2 + $0x9c] sm:$0xf] }
 0x46e   : > { %v5231_v1 = vrot.slane %v5229_v7, 5  ;;  %v5233_v15 = vshrl.u32 %v12515_v2, 16  ;;  %v5239_v29 = vshll.u32 %v12527_v27, 16  ;;  %v5244_v58 = vshrl.u32 %v12531_v47, 16 }
 0x46f   : > { %13734 = vst [vmem:[#allocation13_spill] sm:$0xff] %v12533_v51  ;;  %v5208_v59 = vsel %vm10357_vm13, %v5203_v48, %v5207_v32  ;;  %v5213_v44 = vrot.slane %v5212_v6, 4  ;;  %9263 = vmatmul.mubr.msk.bf16.gmra.mrb[16].mxu1 %vm1802_vm12, %v12533_v51  ;;  %v5226_v20 = vor.u32 %v5225_v33, %v5222_v61  ;;  %v5247_v36 = vshll.u32 %v12531_v47, 16  ;;  %v12555_v61 = vld [vmem:[#allocation2 + $0xa0] sm:$0xf] }
 0x470   : > { %v5235_v3 = vrot.slane %v5233_v15, 4  ;;  %v5253_v21 = vshll.u32 %v12535_v63, 16  ;;  %v5241_v62 = vrot.slane %v5239_v29, 5  ;;  %v5246_v7 = vrot.slane %v5244_v58, 4 }
 0x471   : > { %v5218_v32 = vsel %vm10357_vm13, %v5213_v44, %v5217_v12  ;;  %v5257_v48 = vshrl.u32 %v12535_v63, 16  ;;  %v5227_v46 = vrot.slane %v5226_v20, 4  ;;  %v5249_v51 = vrot.slane %v5247_v36, 5 }
 0x472   : > { %v12553_v6 = vcombine.low %v5208_v59, %v5218_v32  ;;  %v5236_v40 = vor.u32 %v5235_v3, %v5231_v1  ;;  %v5255_v33 = vrot.slane %v5253_v21, 5  ;;  %v5263_v22 = vshll.u32 %v12541_v18, 16  ;;  %v12563_v59 = vld [vmem:[#allocation2 + $0xa4] sm:$0x1]  ;;  %v12567_v32 = vld [vmem:[#allocation2 + $0xa8] sm:$0xf] }
 0x473   : > { %v5259_v15 = vrot.slane %v5257_v48, 4  ;;  %v5268_v30 = vshrl.u32 %v12548_v11, 16  ;;  %v5232_v29 = vsel %vm10357_vm13, %v5227_v46, %v5231_v1  ;;  %v5250_v12 = vor.u32 %v5249_v51, %v5246_v7  ;;  %13737 = vst [vmem:[#allocation21_spill] sm:$0xff] %v12563_v59 }
 0x474   : > { %13736 = vst [vmem:[#allocation5_spill] sm:$0xff] %v12553_v6  ;;  %9266 = vmatprep.mubr.msk.bf16.mxu1 %vm1802_vm12, %v12553_v6  ;;  %v5237_v44 = vrot.slane %v5236_v40, 4  ;;  %v5271_v58 = vshll.u32 %v12548_v11, 16  ;;  %v5265_v3 = vrot.slane %v5263_v22, 5  ;;  %v5277_v21 = vshll.u32 %v12555_v61, 16 }
 0x475   : > { %v5260_v20 = vor.u32 %v5259_v15, %v5255_v33  ;;  %v5270_v36 = vrot.slane %v5268_v30, 4  ;;  %v5251_v6 = vrot.slane %v5250_v12, 4  ;;  %v5281_v46 = vshrl.u32 %v12555_v61, 16  ;;  %v12572_v40 = vld [vmem:[#allocation2 + $0xac] sm:$0xf] }
 0x476   : > { %v5242_v48 = vsel %vm10357_vm13, %v5237_v44, %v5241_v62  ;;  %v5273_v9 = vrot.slane %v5271_v58, 5  ;;  %v5279_v7 = vrot.slane %v5277_v21, 5  ;;  %v5287_v22 = vshll.u32 %v12563_v59, 16 }
 0x477   : > { %v12574_v51 = vcombine.low %v5232_v29, %v5242_v48  ;;  %v5261_v1 = vrot.slane %v5260_v20, 4  ;;  %v5256_v30 = vsel %vm10357_vm13, %v5251_v6, %v5255_v33  ;;  %v5283_v4 = vrot.slane %v5281_v46, 4  ;;  %v4931_v20 = vld [vmem:[#allocation2 + $0xb4] sm:$0xf] }
 0x478   : > { %v5274_v15 = vor.u32 %v5273_v9, %v5270_v36  ;;  %v5292_v62 = vshrl.u32 %v12567_v32, 16  ;;  %v5289_v44 = vrot.slane %v5287_v22, 5  ;;  %v5295_v12 = vshll.u32 %v12567_v32, 16  ;;  %v12590_v36 = vld [vmem:[#allocation2 + $0xb8] sm:$0xf] }
 0x479   : > { %13738 = vst [vmem:[#allocation22_spill] sm:$0xff] %v12574_v51  ;;  %9267 = vmatmul.mubr.msk.bf16.gmra.mrb[20].mxu1 %vm1802_vm12, %v12574_v51  ;;  %v5266_v29 = vsel %vm10357_vm13, %v5261_v1, %v5265_v3  ;;  %v5301_v58 = vshll.u32 %v12572_v40, 16  ;;  %v5284_v6 = vor.u32 %v5283_v4, %v5279_v7  ;;  %v5305_v51 = vshrl.u32 %v12572_v40, 16 }
 0x47a   : > { %v12588_v21 = vcombine.low %v5256_v30, %v5266_v29  ;;  %v5275_v9 = vrot.slane %v5274_v15, 4  ;;  %v5294_v33 = vrot.slane %v5292_v62, 4  ;;  %v5297_v48 = vrot.slane %v5295_v12, 5  ;;  %v12598_v29 = vld [vmem:[#allocation2 + $0xbc] sm:$0x1] }
 0x47b   : > { %v5303_v46 = vrot.slane %v5301_v58, 5  ;;  %v5311_v59 = vshll.u32 %v12579_v13, 16  ;;  %v5285_v1 = vrot.slane %v5284_v6, 4  ;;  %v5316_v22 = vshrl.u32 %v4931_v20, 16 }
 0x47c   : > { %13740 = vst [vmem:[#allocation24_spill] sm:$0xff] %v12588_v21  ;;  %9270 = vmatprep.mubr.msk.bf16.mxu1 %vm1802_vm12, %v12588_v21  ;;  %v5280_v3 = vsel %vm10357_vm13, %v5275_v9, %v5279_v7  ;;  %v5319_v30 = vshll.u32 %v4931_v20, 16  ;;  %v5298_v15 = vor.u32 %v5297_v48, %v5294_v33  ;;  %v5307_v4 = vrot.slane %v5305_v51, 4 }
 0x47d   : > { %v5313_v62 = vrot.slane %v5311_v59, 5  ;;  %v5325_v12 = vshll.u32 %v12590_v36, 16  ;;  %v5290_v58 = vsel %vm10357_vm13, %v5285_v1, %v5289_v44  ;;  %v5318_v13 = vrot.slane %v5316_v22, 4 }
 0x47e   : > { %v5321_v18 = vrot.slane %v5319_v30, 5  ;;  %v5329_v21 = vshrl.u32 %v12590_v36, 16  ;;  %v12604_v27 = vcombine.low %v5280_v3, %v5290_v58  ;;  %v5299_v7 = vrot.slane %v5298_v15, 4 }
 0x47f   : > { %v5308_v9 = vor.u32 %v5307_v4, %v5303_v46  ;;  %v5327_v6 = vrot.slane %v5325_v12, 5  ;;  %v5335_v59 = vshll.u32 %v12598_v29, 16  ;;  %v12615_v30 = vcombine.low %v12383_v19, %v12385_v54 }
 0x480   : > { %v5322_v10 = vor.u32 %v5321_v18, %v5318_v13  ;;  %v5331_v33 = vrot.slane %v5329_v21, 4  ;;  %v5304_v51 = vsel %vm10357_vm13, %v5299_v7, %v5303_v46  ;;  %v12619_v13 = vcombine.low %v12399_v45, %v12403_v23  ;;  %v5392_v7 = vld [vmem:[#allocation2 + $0x3c] sm:$0xe] }
 0x481   : > { %9271 = vmatmul.mubr.msk.bf16.gmra.mrb[24].mxu1 %vm1802_vm12, %v12604_v27  ;;  %v5309_v44 = vrot.slane %v5308_v9, 4  ;;  %v5337_v22 = vrot.slane %v5335_v59, 5  ;;  %v12631_v15 = vcombine.low %v12436_v43, %v12440_v17  ;;  %v12635_v19 = vcombine.low %v12454_v8, %v12459_v57  ;;  %v5393_v9 = vld [vmem:[#allocation2 + $0x48] sm:$0xe] }
 0x482   : > { %v5323_v48 = vrot.slane %v5322_v10, 4  ;;  %v5332_v1 = vor.u32 %v5331_v33, %v5327_v6  ;;  %v12627_v10 = vcombine.low %v12417_v37, %v12421_v53  ;;  %v12639_v45 = vcombine.low %v12473_v55, %v12478_v34 }
 0x483   : > { %v5314_v3 = vsel %vm10357_vm13, %v5309_v44, %v5313_v62  ;;  %v12643_v4 = vcombine.low %v12494_v42, %v12498_v24  ;;  %v12651_v43 = vcombine.low %v12510_v56, %v12515_v2  ;;  %v12655_v8 = vcombine.low %v12531_v47, %v12535_v63  ;;  %v5391_v47 = vld [vmem:[#allocation2 + $0x30] sm:$0xe] }
 0x484   : > { %v12621_v18 = vcombine.low %v5304_v51, %v5314_v3  ;;  %v5328_v21 = vsel %vm10357_vm13, %v5323_v48, %v5327_v6  ;;  %v5333_v46 = vrot.slane %v5332_v1, 4  ;;  %v12659_v55 = vcombine.low %v12548_v11, %v12555_v61  ;;  %v5395_v48 = vld [vmem:[#allocation2 + $0x60] sm:$0xe] }
 0x485   : > { %v12665_v62 = vcombine.low %v12567_v32, %v12572_v40  ;;  %v12668_v12 = vcombine.low %v4931_v20, %v12590_v36  ;;  %v8398_v56 = vcombine.low %v12321_v35, %v12284_v49  ;;  %v8352_v11 = vrot.slane %v5391_v47, 9 }
 0x486   : > { %9274 = vmatprep.mubr.msk.bf16.mxu1 %vm1802_vm12, %v12621_v18  ;;  %v5338_v37 = vsel %vm10357_vm13, %v5333_v46, %v5337_v22  ;;  %v5489_v58 = vrot.slane %v12385_v54, 5  ;;  %v12678_v32 = vcombine.low %v12324_v38, %v12301_v25  ;;  %v6218_v20 = vsel %vm1851_vm0, %v12377_v60, 0  ;;  %v5394_v38 = vld [vmem:[#allocation2 + $0x54] sm:$0xe]  ;;  %v12696_v60 = vld [vmem:[%s13584_s2 + $0x6] sm:$0x3] }
 0x487   : > { %v12661_v42 = vcombine.low %v5328_v21, %v5338_v37  ;;  %v12684_v49 = vcombine.low %v12339_v31, %v12341_v0  ;;  %v5492_v6 = vrot.slane %v12389_v39, 5  ;;  %v12689_v33 = vcombine.low %v12359_v14, %v12349_v5 }
 0x488   : > { %v5491_v35 = vrot.slane %v5489_v58, 4  ;;  %v8353_v54 = vrot.slane %v5392_v7, 9  ;;  %v5496_v59 = vrot.slane %v12403_v23, 5  ;;  %v5499_v25 = vrot.slane %v12410_v16, 5 }
 0x489   : > { %9275 = vmatmul.mubr.msk.bf16.gmra.mrb[28].mxu1 %vm1802_vm12, %v12661_v42  ;;  %v5490_v51 = vsel %vm10978_vm1, %v8352_v11, %v5489_v58  ;;  %v8354_v44 = vrot.slane %v5393_v9, 9  ;;  %v5503_v14 = vrot.slane %v12421_v53, 5  ;;  %v5506_v22 = vrot.slane %v12429_v50, 5  ;;  %v5396_v11 = vld [vmem:[#allocation2 + $0x6c] sm:$0xe] }
 0x48a   : > { %9280 = vmatprep.mubr.msk.bf16.mxu1 %vm1802_vm12, %v8398_v56  ;;  %v5493_v39 = vsel %vm10978_vm1, %v5491_v35, %v5492_v6  ;;  %v5497_v16 = vsel %vm10978_vm1, %v8353_v54, %v5496_v59  ;;  %v5498_v1 = vrot.slane %v5496_v59, 4  ;;  %v8355_v21 = vrot.slane %v5394_v38, 9 }
 0x48b   : > { %v12705_v23 = vcombine.low %v5490_v51, %v5493_v39  ;;  %v5504_v3 = vsel %vm10978_vm1, %v8354_v44, %v5503_v14  ;;  %v5505_v53 = vrot.slane %v5503_v14, 4  ;;  %v5510_v46 = vrot.slane %v12440_v17, 5  ;;  %v5398_v51 = vld [vmem:[#allocation2 + $0x84] sm:$0xe] }
 0x48c   : > { %v5500_v37 = vsel %vm10978_vm1, %v5498_v1, %v5499_v25  ;;  %v5513_v56 = vrot.slane %v12448_v26, 5  ;;  %v8356_v50 = vrot.slane %v5395_v48, 9  ;;  %v5517_v47 = vrot.slane %v12459_v57, 5 }
 0x48d   : > { %v12721_v58 = vcombine.low %v5497_v16, %v5500_v37  ;;  %v5507_v7 = vsel %vm10978_vm1, %v5505_v53, %v5506_v22  ;;  %v5511_v17 = vsel %vm10978_vm1, %v8355_v21, %v5510_v46  ;;  %v5512_v9 = vrot.slane %v5510_v46, 4  ;;  %v5399_v16 = vld [vmem:[#allocation2 + $0x90] sm:$0xe]  ;;  %v13743_v37 = vld [vmem:[#allocation20_spill] sm:$0xff] }
 0x48e   : > { %v12727_v35 = vcombine.low %v5504_v3, %v5507_v7  ;;  %v5518_v6 = vsel %vm10978_vm1, %v8356_v50, %v5517_v47  ;;  %v5519_v26 = vrot.slane %v5517_v47, 4  ;;  %v5520_v54 = vrot.slane %v12465_v28, 5  ;;  %v13742_v3 = vld [vmem:[#allocation18_spill] sm:$0xff] }
 0x48f   : > { %v5514_v57 = vsel %vm10978_vm1, %v5512_v9, %v5513_v56  ;;  %v8357_v59 = vrot.slane %v5396_v11, 9  ;;  %v5524_v25 = vrot.slane %v12478_v34, 5  ;;  %v5527_v38 = vrot.slane %v12484_v52, 5  ;;  %v5400_v11 = vld [vmem:[#allocation2 + $0x9c] sm:$0xe] }
 0x490   : > { %v12736_v39 = vcombine.low %v5511_v17, %v5514_v57  ;;  %v5521_v44 = vsel %vm10978_vm1, %v5519_v26, %v5520_v54  ;;  %v5531_v48 = vrot.slane %v12498_v24, 5  ;;  %v5534_v34 = vrot.slane %v13742_v3, 5  ;;  %v13744_v57 = vld [vmem:[#allocation3_spill] sm:$0xff] }
 0x491   : > { %9281 = vmatmul.mubr.msk.bf16.vlgmr.msra.gmra.mrb[0].mxu1 %vm1802_vm12, %v12678_v32  ;;  %v12741_v1 = vcombine.low %v5518_v6, %v5521_v44  ;;  %v5525_v28 = vsel %vm10978_vm1, %v8357_v59, %v5524_v25  ;;  %v5526_v22 = vrot.slane %v5524_v25, 4  ;;  %v8359_v21 = vrot.slane %v5398_v51, 9  ;;  %v13745_v51 = vld [vmem:[#allocation21_spill] sm:$0xff] }
 0x492   : > { %9313 = vmatpush3.bf16.msra.mxu1 %v6218_v20  ;;  %9284 = vmatprep.mubr.msk.bf16.mxu1 %vm1802_vm12, %v12684_v49  ;;  %v5397_v20 = vld [vmem:[#allocation2 + $0x78] sm:$0xe]  ;;  %v5533_v53 = vrot.slane %v5531_v48, 4  ;;  %v5538_v46 = vrot.slane %v12515_v2, 5  ;;  %v5541_v56 = vrot.slane %v13743_v37, 5  ;;  %v8360_v50 = vrot.slane %v5399_v16, 9 }
 0x493   : > { %10074 = vmatprep.subr.msk.bf16.mxu1 %vm1851_vm0, %v12696_v60  ;;  %v8358_v14 = vrot.slane %v5397_v20, 9  ;;  %v5528_v24 = vsel %vm10978_vm1, %v5526_v22, %v5527_v38  ;;  %v5545_v47 = vrot.slane %v12535_v63, 5  ;;  %v5401_v20 = vld [vmem:[#allocation2 + $0xa8] sm:$0xe]  ;;  %v5548_v59 = vrot.slane %v13744_v57, 5 }
 0x494   : > { %v12757_v7 = vcombine.low %v5525_v28, %v5528_v24  ;;  %v5535_v17 = vsel %vm10978_vm1, %v5533_v53, %v5534_v34  ;;  %v5539_v2 = vsel %vm10978_vm1, %v8359_v21, %v5538_v46  ;;  %v5540_v9 = vrot.slane %v5538_v46, 4 }
 0x495   : > { %v5532_v52 = vsel %vm10978_vm1, %v8358_v14, %v5531_v48  ;;  %v5546_v26 = vsel %vm10978_vm1, %v8360_v50, %v5545_v47  ;;  %v5547_v54 = vrot.slane %v5545_v47, 4  ;;  %v8361_v25 = vrot.slane %v5400_v11, 9  ;;  %v5402_v14 = vld [vmem:[#allocation2 + $0xb4] sm:$0xe] }
 0x496   : > { %v12763_v6 = vcombine.low %v5532_v52, %v5535_v17  ;;  %v5542_v63 = vsel %vm10978_vm1, %v5540_v9, %v5541_v56  ;;  %v5552_v38 = vrot.slane %v12555_v61, 5  ;;  %v5555_v44 = vrot.slane %v13745_v51, 5  ;;  %v13746_v52 = vld [vmem:[#allocation23_spill] sm:$0xff]  ;;  %v12798_v17 = vld [vmem:[#allocation2 + $0xc4] sm:$0xf] }
 0x497   : > { %v12772_v48 = vcombine.low %v5539_v2, %v5542_v63  ;;  %v5549_v16 = vsel %vm10978_vm1, %v5547_v54, %v5548_v59  ;;  %v8362_v28 = vrot.slane %v5401_v20, 9  ;;  %v5559_v22 = vrot.slane %v12572_v40, 5  ;;  %v12800_v2 = vld [vmem:[#allocation2 + $0xc8] sm:$0x1]  ;;  %v5403_v9 = vld [vmem:[#allocation2 + $0xc0] sm:$0xe] }
 0x498   : > { %v12777_v3 = vcombine.low %v5546_v26, %v5549_v16  ;;  %v5554_v34 = vrot.slane %v5552_v38, 4  ;;  %v5562_v53 = vrot.slane %v13746_v52, 5  ;;  %v8363_v46 = vrot.slane %v5402_v14, 9  ;;  %v12820_v14 = vld [vmem:[#allocation2 + $0xd4] sm:$0x1] }
 0x499   : > { %9285 = vmatmul.mubr.msk.bf16.gmra.mrb[4].mxu1 %vm1802_vm12, %v12689_v33  ;;  %v5561_v21 = vrot.slane %v5559_v22, 4  ;;  %v5566_v61 = vrot.slane %v12590_v36, 5  ;;  %v5553_v24 = vsel %vm10978_vm1, %v8361_v25, %v5552_v38  ;;  %v5569_v40 = vrot.slane %v12598_v29, 5  ;;  %v12812_v25 = vld [vmem:[#allocation2 + $0xd0] sm:$0xf] }
 0x49a   : > { %9288 = vmatprep.mubr.msk.bf16.mxu1 %vm1802_vm12, %v12615_v30  ;;  %v5556_v37 = vsel %vm10978_vm1, %v5554_v34, %v5555_v44  ;;  %v5560_v50 = vsel %vm10978_vm1, %v8362_v28, %v5559_v22  ;;  %v8364_v54 = vrot.slane %v5403_v9, 9  ;;  %v5573_v57 = vrot.slane %v12798_v17, 5  ;;  %v5404_v38 = vld [vmem:[#allocation2 + $0xcc] sm:$0xe] }
 0x49b   : > { %v12790_v56 = vcombine.low %v5553_v24, %v5556_v37  ;;  %v5563_v36 = vsel %vm10978_vm1, %v5561_v21, %v5562_v53  ;;  %v5568_v47 = vrot.slane %v5566_v61, 4  ;;  %v5567_v29 = vsel %vm10978_vm1, %v8363_v46, %v5566_v61  ;;  %v10137_v61 = vld [vmem:[#allocation2 + $0x4] sm:$0xf]  ;;  %v5387_v37 = vld [vmem:[#allocation2] sm:$0xe] }
 0x49c   : > { %v12796_v11 = vcombine.low %v5560_v50, %v5563_v36  ;;  %v5576_v59 = vrot.slane %v12800_v2, 5  ;;  %v5575_v63 = vrot.slane %v5573_v57, 4  ;;  %v5574_v51 = vsel %vm10978_vm1, %v8364_v54, %v5573_v57  ;;  %v5388_v57 = vld [vmem:[#allocation2 + $0xc] sm:$0xe] }
 0x49d   : > { %v5570_v20 = vsel %vm10978_vm1, %v5568_v47, %v5569_v40  ;;  %v8365_v28 = vrot.slane %v5404_v38, 9  ;;  %v5580_v22 = vrot.slane %v12812_v25, 5  ;;  %v5583_v34 = vrot.slane %v12820_v14, 5  ;;  %v13749_v40 = vld [vmem:[#allocation7_spill] sm:$0xff] }
 0x49e   : > { %v12806_v26 = vcombine.low %v5567_v29, %v5570_v20  ;;  %v5577_v44 = vsel %vm10978_vm1, %v5575_v63, %v5576_v59  ;;  %v5461_v24 = vrot.slane %v10137_v61, 5  ;;  %v5464_v50 = vrot.slane %v13749_v40, 5  ;;  %v10138_v29 = vld [vmem:[#allocation2 + $0x10] sm:$0xf] }
 0x49f   : > { %v12822_v16 = vcombine.low %v5574_v51, %v5577_v44  ;;  %v5582_v52 = vrot.slane %v5580_v22, 4  ;;  %v12828_v53 = vsel %vm10978_vm1, %v8365_v28, %v5580_v22  ;;  %v8348_v36 = vrot.slane %v5387_v37, 9  ;;  %v13750_v63 = vld [vmem:[#allocation6_spill] sm:$0xff]  ;;  %v5389_v44 = vld [vmem:[#allocation2 + $0x18] sm:$0xe]  ;;  %v13751_v28 = vld [vmem:[#allocation8_spill] sm:$0xff] }
 0x4a0   : > { %13747 = vst [vmem:[#allocation17_spill] sm:$0xff] %v12828_v53  ;;  %v5463_v47 = vrot.slane %v5461_v24, 4  ;;  %v5468_v20 = vrot.slane %v10138_v29, 5  ;;  %v5475_v59 = vrot.slane %v12341_v0, 5  ;;  %v5471_v38 = vrot.slane %v13750_v63, 5 }
 0x4a1   : > { %9289 = vmatmul.mubr.msk.bf16.gmra.mrb[8].mxu1 %vm1802_vm12, %v12619_v13  ;;  %v12832_v21 = vsel %vm10978_vm1, %v5582_v52, %v5583_v34  ;;  %v5462_v54 = vsel %vm10978_vm1, %v8348_v36, %v5461_v24  ;;  %v5478_v22 = vrot.slane %v13751_v28, 5  ;;  %v8349_v34 = vrot.slane %v5388_v57, 9  ;;  %v5390_v29 = vld [vmem:[#allocation2 + $0x24] sm:$0xe]  ;;  %v13752_v57 = vld [vmem:[#allocation9_spill] sm:$0xff] }
 0x4a2   : > { %9292 = vmatprep.mubr.msk.bf16.mxu1 %vm1802_vm12, %v12627_v10  ;;  %13748 = vst [vmem:[#allocation18_spill] sm:$0xff] %v12832_v21  ;;  %v5465_v9 = vsel %vm10978_vm1, %v5463_v47, %v5464_v50  ;;  %v5470_v52 = vrot.slane %v5468_v20, 4  ;;  %v8350_v61 = vrot.slane %v5389_v44, 9  ;;  %v5477_v37 = vrot.slane %v5475_v59, 4  ;;  %v218_v44 = vld [vmem:[%s13584_s2 + $0xa] sm:$0x3] }
 0x4a3   : > { %v8430_v51 = vcombine.low %v5462_v54, %v5465_v9  ;;  %v5469_v40 = vsel %vm10978_vm1, %v8349_v34, %v5468_v20  ;;  %v5482_v50 = vrot.slane %v12349_v5, 5  ;;  %v6421_v47 = vsel %vm1851_vm0, %v12696_v60, 0 }
 0x4a4   : > { %v5472_v24 = vsel %vm10978_vm1, %v5470_v52, %v5471_v38  ;;  %v5479_v0 = vsel %vm10978_vm1, %v5477_v37, %v5478_v22  ;;  %v5476_v9 = vsel %vm10978_vm1, %v8350_v61, %v5475_v59  ;;  %v5485_v63 = vrot.slane %v13752_v57, 5  ;;  %v217_v38 = vld [vmem:[%s13584_s2 + $0x8] sm:$0x3]  ;;  %v13753_v22 = vld [vmem:[#allocation10_spill] sm:$0xff]  ;;  %v219_v52 = vld [vmem:[%s13584_s2 + $0xc] sm:$0x3] }
 0x4a5   : > { %v12866_v36 = vcombine.low %v5469_v40, %v5472_v24  ;;  %v12872_v54 = vcombine.low %v5476_v9, %v5479_v0  ;;  %v8351_v5 = vrot.slane %v5390_v29, 9  ;;  %v5484_v60 = vrot.slane %v5482_v50, 4  ;;  %v13754_v61 = vld [vmem:[#allocation11_spill] sm:$0xff]  ;;  %v13755_v37 = vld [vmem:[#allocation4_spill] sm:$0xff]  ;;  %v13757_v0 = vld [vmem:[#allocation14_spill] sm:$0xff] }
 0x4a6   : > { %v6623_v31 = vsel %vm1851_vm0, %v217_v38, 0  ;;  %v6825_v34 = vsel %vm1851_vm0, %v218_v44, 0  ;;  %v13756_v24 = vld [vmem:[#allocation12_spill] sm:$0xff]  ;;  %v13758_v40 = vld [vmem:[#allocation15_spill] sm:$0xff]  ;;  %v13761_v9 = vld [vmem:[#allocation13_spill] sm:$0xff]  ;;  %v5359_v46 = vshll.u32 %v12800_v2, 16 }
 0x4a7   : > { %v5486_v20 = vsel %vm10978_vm1, %v5484_v60, %v5485_v63  ;;  %v5483_v59 = vsel %vm10978_vm1, %v8351_v5, %v5482_v50  ;;  %v13759_v50 = vld [vmem:[#allocation16_spill] sm:$0xff]  ;;  %v13762_v29 = vld [vmem:[#allocation5_spill] sm:$0xff]  ;;  %v13763_v57 = vld [vmem:[#allocation22_spill] sm:$0xff]  ;;  %v7028_v2 = vsel %vm1851_vm0, %v219_v52, 0 }
 0x4a8   : > { %v13765_v41 = vld [vmem:[#allocation17_spill] sm:$0xff] }
 0x4a9   : > { %9293 = vmatmul.mubr.msk.bf16.gmra.mrb[12].mxu1 %vm1802_vm12, %v12631_v15 }
 0x4aa   : > { %9296 = vmatprep.mubr.msk.bf16.mxu1 %vm1802_vm12, %v12635_v19 }
 0x4b1   : > { %9297 = vmatmul.mubr.msk.bf16.gmra.mrb[16].mxu1 %vm1802_vm12, %v12639_v45 }
 0x4b2   : > { %9300 = vmatprep.mubr.msk.bf16.mxu1 %vm1802_vm12, %v12643_v4 }
 0x4b9   : > { %9301 = vmatmul.mubr.msk.bf16.gmra.mrb[20].mxu1 %vm1802_vm12, %v12651_v43 }
 0x4ba   : > { %9304 = vmatprep.mubr.msk.bf16.mxu1 %vm1802_vm12, %v12655_v8 }
 0x4c1   : > { %9305 = vmatmul.mubr.msk.bf16.gmra.mrb[24].mxu1 %vm1802_vm12, %v12659_v55 }
 0x4c2   : > { %9308 = vmatprep.mubr.msk.bf16.mxu1 %vm1802_vm12, %v12665_v62 }
 0x4c9   : > { %9309 = vmatmul.mubr.msk.bf16.gmra.mrb[28].mxu1 %vm1802_vm12, %v12668_v12 }
 0x4ca   : > { %9314 = vmatprep.mubr.msk.bf16.mxu1 %vm1802_vm12, %v8430_v51  ;;  %v12887_v51 = vcombine.low %v5483_v59, %v5486_v20  ;;  %v5353_v20 = vshrl.u32 %v12798_v17, 16  ;;  %v5349_v59 = vshll.u32 %v12798_v17, 16 }
 0x4d1   : > { %9315 = vmatmul.mubr.msk.bf16.vlgmr.msra.gmra.mrb[0].mxu1 %vm1802_vm12, %v12866_v36 }
 0x4d2   : > { %9347 = vmatpush3.bf16.msra.mxu1 %v6421_v47  ;;  %9318 = vmatprep.mubr.msk.bf16.mxu1 %vm1802_vm12, %v12872_v54  ;;  %v13760_v47 = vld [vmem:[#allocation19_spill] sm:$0xff] }
 0x4d3   : > { %10075 = vmatprep.subr.msk.bf16.mxu1 %vm1851_vm0, %v217_v38 }
 0x4d9   : > { %9319 = vmatmul.mubr.msk.bf16.gmra.mrb[4].mxu1 %vm1802_vm12, %v12887_v51 }
 0x4da   : > { %9322 = vmatprep.mubr.msk.bf16.mxu1 %vm1802_vm12, %v12705_v23 }
 0x4e1   : > { %9323 = vmatmul.mubr.msk.bf16.gmra.mrb[8].mxu1 %vm1802_vm12, %v12721_v58 }
 0x4e2   : > { %9326 = vmatprep.mubr.msk.bf16.mxu1 %vm1802_vm12, %v12727_v35 }
 0x4e9   : > { %9327 = vmatmul.mubr.msk.bf16.gmra.mrb[12].mxu1 %vm1802_vm12, %v12736_v39 }
 0x4ea   : > { %9330 = vmatprep.mubr.msk.bf16.mxu1 %vm1802_vm12, %v12741_v1 }
 0x4f1   : > { %9331 = vmatmul.mubr.msk.bf16.gmra.mrb[16].mxu1 %vm1802_vm12, %v12757_v7 }
 0x4f2   : > { %9334 = vmatprep.mubr.msk.bf16.mxu1 %vm1802_vm12, %v12763_v6 }
 0x4f9   : > { %9335 = vmatmul.mubr.msk.bf16.gmra.mrb[20].mxu1 %vm1802_vm12, %v12772_v48 }
 0x4fa   : > { %9338 = vmatprep.mubr.msk.bf16.mxu1 %vm1802_vm12, %v12777_v3 }
 0x501   : > { %9339 = vmatmul.mubr.msk.bf16.gmra.mrb[24].mxu1 %vm1802_vm12, %v12790_v56 }
 0x502   : > { %9342 = vmatprep.mubr.msk.bf16.mxu1 %vm1802_vm12, %v12796_v11 }
 0x509   : > { %9343 = vmatmul.mubr.msk.bf16.gmra.mrb[28].mxu1 %vm1802_vm12, %v12806_v26 }
 0x50a   : > { %9348 = vmatprep.mubr.msk.bf16.mxu1 %vm1802_vm12, %v12678_v32  ;;  %v4933_v32 = vld [vmem:[#allocation2 + $0xc0] sm:$0xf] }
 0x50b   : > { %v12951_v28 = vcombine.low %v4933_v32, %v12798_v17  ;;  %v5340_v63 = vshrl.u32 %v4933_v32, 16  ;;  %v5343_v38 = vshll.u32 %v4933_v32, 16  ;;  %v5361_v17 = vrot.slane %v5359_v46, 5  ;;  %v220_v46 = vld [vmem:[%s13584_s2 + $0xe] sm:$0x3] }
 0x50d   : > { %v5342_v5 = vrot.slane %v5340_v63, 4  ;;  %v5345_v60 = vrot.slane %v5343_v38, 5 }
 0x511   : > { %9349 = vmatmul.mubr.msk.bf16.vlgmr.msra.gmra.mrb[0].mxu1 %vm1802_vm12, %v12684_v49 }
 0x512   : > { %9381 = vmatpush3.bf16.msra.mxu1 %v6623_v31  ;;  %9352 = vmatprep.mubr.msk.bf16.mxu1 %vm1802_vm12, %v12689_v33  ;;  %v13764_v31 = vld [vmem:[#allocation24_spill] sm:$0xff] }
 0x513   : > { %10076 = vmatprep.subr.msk.bf16.mxu1 %vm1851_vm0, %v218_v44  ;;  %v5346_v44 = vor.u32 %v5345_v60, %v5342_v5 }
 0x515   : > { %v5347_v21 = vrot.slane %v5346_v44, 4 }
 0x519   : > { %9353 = vmatmul.mubr.msk.bf16.gmra.mrb[4].mxu1 %vm1802_vm12, %v12615_v30 }
 0x51a   : > { %9356 = vmatprep.mubr.msk.bf16.mxu1 %vm1802_vm12, %v12619_v13 }
 0x521   : > { %9357 = vmatmul.mubr.msk.bf16.gmra.mrb[8].mxu1 %vm1802_vm12, %v12627_v10 }
 0x522   : > { %9360 = vmatprep.mubr.msk.bf16.mxu1 %vm1802_vm12, %v12631_v15 }
 0x529   : > { %9361 = vmatmul.mubr.msk.bf16.gmra.mrb[12].mxu1 %vm1802_vm12, %v12635_v19 }
 0x52a   : > { %9364 = vmatprep.mubr.msk.bf16.mxu1 %vm1802_vm12, %v12639_v45 }
 0x531   : > { %9365 = vmatmul.mubr.msk.bf16.gmra.mrb[16].mxu1 %vm1802_vm12, %v12643_v4 }
 0x532   : > { %9368 = vmatprep.mubr.msk.bf16.mxu1 %vm1802_vm12, %v12651_v43 }
 0x539   : > { %9369 = vmatmul.mubr.msk.bf16.gmra.mrb[20].mxu1 %vm1802_vm12, %v12655_v8 }
 0x53a   : > { %9372 = vmatprep.mubr.msk.bf16.mxu1 %vm1802_vm12, %v12659_v55 }
 0x541   : > { %9373 = vmatmul.mubr.msk.bf16.gmra.mrb[24].mxu1 %vm1802_vm12, %v12665_v62 }
 0x542   : > { %9376 = vmatprep.mubr.msk.bf16.mxu1 %vm1802_vm12, %v12668_v12 }
 0x549   : > { %9377 = vmatmul.mubr.msk.bf16.gmra.mrb[28].mxu1 %vm1802_vm12, %v12951_v28 }
 0x54a   : > { %9382 = vmatprep.mubr.msk.bf16.mxu1 %vm1802_vm12, %v13753_v22  ;;  %v5351_v22 = vrot.slane %v5349_v59, 5 }
 0x54c   : > { %v5352_v32 = vsel %vm10357_vm13, %v5347_v21, %v5351_v22  ;;  %v221_v21 = vld [vmem:[%s13584_s2 + $0x10] sm:$0x3] }
 0x551   : > { %9383 = vmatmul.mubr.msk.bf16.vlgmr.msra.gmra.mrb[0].mxu1 %vm1802_vm12, %v13754_v61 }
 0x552   : > { %9415 = vmatpush3.bf16.msra.mxu1 %v6825_v34  ;;  %9386 = vmatprep.mubr.msk.bf16.mxu1 %vm1802_vm12, %v13755_v37  ;;  %v5355_v34 = vrot.slane %v5353_v20, 4 }
 0x553   : > { %10077 = vmatprep.subr.msk.bf16.mxu1 %vm1851_vm0, %v219_v52 }
 0x554   : > { %v5356_v53 = vor.u32 %v5355_v34, %v5351_v22 }
 0x556   : > { %v5357_v63 = vrot.slane %v5356_v53, 4  ;;  %v7230_v53 = vsel %vm1851_vm0, %v220_v46, 0 }
 0x558   : > { %v5362_v38 = vsel %vm10357_vm13, %v5357_v63, %v5361_v17 }
 0x559   : > { %9387 = vmatmul.mubr.msk.bf16.gmra.mrb[4].mxu1 %vm1802_vm12, %v13756_v24  ;;  %v12997_v5 = vcombine.low %v5352_v32, %v5362_v38 }
 0x55a   : > { %9390 = vmatprep.mubr.msk.bf16.mxu1 %vm1802_vm12, %v13757_v0 }
 0x561   : > { %9391 = vmatmul.mubr.msk.bf16.gmra.mrb[8].mxu1 %vm1802_vm12, %v13758_v40 }
 0x562   : > { %9394 = vmatprep.mubr.msk.bf16.mxu1 %vm1802_vm12, %v13759_v50 }
 0x569   : > { %9395 = vmatmul.mubr.msk.bf16.gmra.mrb[12].mxu1 %vm1802_vm12, %v13760_v47 }
 0x56a   : > { %9398 = vmatprep.mubr.msk.bf16.mxu1 %vm1802_vm12, %v13761_v9 }
 0x571   : > { %9399 = vmatmul.mubr.msk.bf16.gmra.mrb[16].mxu1 %vm1802_vm12, %v13762_v29 }
 0x572   : > { %9402 = vmatprep.mubr.msk.bf16.mxu1 %vm1802_vm12, %v13763_v57 }
 0x579   : > { %9403 = vmatmul.mubr.msk.bf16.gmra.mrb[20].mxu1 %vm1802_vm12, %v13764_v31 }
 0x57a   : > { %9406 = vmatprep.mubr.msk.bf16.mxu1 %vm1802_vm12, %v12604_v27 }
 0x581   : > { %9407 = vmatmul.mubr.msk.bf16.gmra.mrb[24].mxu1 %vm1802_vm12, %v12621_v18 }
 0x582   : > { %9410 = vmatprep.mubr.msk.bf16.mxu1 %vm1802_vm12, %v12661_v42 }
 0x589   : > { %9411 = vmatmul.mubr.msk.bf16.gmra.mrb[28].mxu1 %vm1802_vm12, %v12997_v5 }
 0x58a   : > { %9416 = vmatprep.mubr.msk.bf16.mxu1 %vm1802_vm12, %v12866_v36 }
 0x591   : > { %9417 = vmatmul.mubr.msk.bf16.vlgmr.msra.gmra.mrb[0].mxu1 %vm1802_vm12, %v12872_v54 }
 0x592   : > { %9449 = vmatpush3.bf16.msra.mxu1 %v7028_v2  ;;  %9420 = vmatprep.mubr.msk.bf16.mxu1 %vm1802_vm12, %v12887_v51 }
 0x593   : > { %10078 = vmatprep.subr.msk.bf16.mxu1 %vm1851_vm0, %v220_v46 }
 0x599   : > { %9421 = vmatmul.mubr.msk.bf16.gmra.mrb[4].mxu1 %vm1802_vm12, %v12705_v23 }
 0x59a   : > { %9424 = vmatprep.mubr.msk.bf16.mxu1 %vm1802_vm12, %v12721_v58 }
 0x5a1   : > { %9425 = vmatmul.mubr.msk.bf16.gmra.mrb[8].mxu1 %vm1802_vm12, %v12727_v35 }
 0x5a2   : > { %9428 = vmatprep.mubr.msk.bf16.mxu1 %vm1802_vm12, %v12736_v39 }
 0x5a9   : > { %9429 = vmatmul.mubr.msk.bf16.gmra.mrb[12].mxu1 %vm1802_vm12, %v12741_v1 }
 0x5aa   : > { %9432 = vmatprep.mubr.msk.bf16.mxu1 %vm1802_vm12, %v12757_v7 }
 0x5b1   : > { %9433 = vmatmul.mubr.msk.bf16.gmra.mrb[16].mxu1 %vm1802_vm12, %v12763_v6 }
 0x5b2   : > { %9436 = vmatprep.mubr.msk.bf16.mxu1 %vm1802_vm12, %v12772_v48 }
 0x5b9   : > { %9437 = vmatmul.mubr.msk.bf16.gmra.mrb[20].mxu1 %vm1802_vm12, %v12777_v3 }
 0x5ba   : > { %9440 = vmatprep.mubr.msk.bf16.mxu1 %vm1802_vm12, %v12790_v56 }
 0x5c1   : > { %9441 = vmatmul.mubr.msk.bf16.gmra.mrb[24].mxu1 %vm1802_vm12, %v12796_v11 }
 0x5c2   : > { %9444 = vmatprep.mubr.msk.bf16.mxu1 %vm1802_vm12, %v12806_v26 }
 0x5c9   : > { %9445 = vmatmul.mubr.msk.bf16.gmra.mrb[28].mxu1 %vm1802_vm12, %v12822_v16 }
 0x5ca   : > { %9450 = vmatprep.mubr.msk.bf16.mxu1 %vm1802_vm12, %v12684_v49  ;;  %v5383_v49 = vshll.u32 %v12820_v14, 16 }
 0x5d1   : > { %9451 = vmatmul.mubr.msk.bf16.vlgmr.msra.gmra.mrb[0].mxu1 %vm1802_vm12, %v12689_v33 }
 0x5d2   : > { %9483 = vmatpush3.bf16.msra.mxu1 %v7230_v53  ;;  %9454 = vmatprep.mubr.msk.bf16.mxu1 %vm1802_vm12, %v12615_v30  ;;  %v4935_v30 = vld [vmem:[#allocation2 + $0xcc] sm:$0xf] }
 0x5d3   : > { %10079 = vmatprep.subr.msk.bf16.mxu1 %vm1851_vm0, %v221_v21 }
 0x5d9   : > { %9455 = vmatmul.mubr.msk.bf16.gmra.mrb[4].mxu1 %vm1802_vm12, %v12619_v13  ;;  %v8513_v13 = vcombine.low %v4935_v30, %v12812_v25 }
 0x5da   : > { %9458 = vmatprep.mubr.msk.bf16.mxu1 %vm1802_vm12, %v12627_v10  ;;  %v7432_v10 = vsel %vm1851_vm0, %v221_v21, 0 }
 0x5e1   : > { %9459 = vmatmul.mubr.msk.bf16.gmra.mrb[8].mxu1 %vm1802_vm12, %v12631_v15  ;;  %v5364_v15 = vshrl.u32 %v4935_v30, 16 }
 0x5e2   : > { %9462 = vmatprep.mubr.msk.bf16.mxu1 %vm1802_vm12, %v12635_v19  ;;  %v5367_v19 = vshll.u32 %v4935_v30, 16 }
 0x5e9   : > { %9463 = vmatmul.mubr.msk.bf16.gmra.mrb[12].mxu1 %vm1802_vm12, %v12639_v45  ;;  %v5366_v45 = vrot.slane %v5364_v15, 4 }
 0x5ea   : > { %9466 = vmatprep.mubr.msk.bf16.mxu1 %vm1802_vm12, %v12643_v4  ;;  %v5369_v4 = vrot.slane %v5367_v19, 5 }
 0x5f1   : > { %9467 = vmatmul.mubr.msk.bf16.gmra.mrb[16].mxu1 %vm1802_vm12, %v12651_v43  ;;  %v5377_v43 = vshrl.u32 %v12812_v25, 16 }
 0x5f2   : > { %9470 = vmatprep.mubr.msk.bf16.mxu1 %vm1802_vm12, %v12655_v8  ;;  %v5373_v8 = vshll.u32 %v12812_v25, 16  ;;  %v5385_v25 = vrot.slane %v5383_v49, 5 }
 0x5f9   : > { %9471 = vmatmul.mubr.msk.bf16.gmra.mrb[20].mxu1 %vm1802_vm12, %v12659_v55  ;;  %v5370_v55 = vor.u32 %v5369_v4, %v5366_v45 }
 0x5fa   : > { %9474 = vmatprep.mubr.msk.bf16.mxu1 %vm1802_vm12, %v12665_v62  ;;  %v5375_v62 = vrot.slane %v5373_v8, 5 }
 0x5fb   : > { %v5371_v33 = vrot.slane %v5370_v55, 4 }
 0x601   : > { %9475 = vmatmul.mubr.msk.bf16.gmra.mrb[24].mxu1 %vm1802_vm12, %v12668_v12  ;;  %v5379_v12 = vrot.slane %v5377_v43, 4 }
 0x602   : > { %9478 = vmatprep.mubr.msk.bf16.mxu1 %vm1802_vm12, %v12951_v28 }
 0x603   : > { %v5380_v36 = vor.u32 %v5379_v12, %v5375_v62 }
 0x605   : > { %v5381_v28 = vrot.slane %v5380_v36, 4 }
 0x609   : > { %9479 = vmatmul.mubr.msk.bf16.gmra.mrb[28].mxu1 %vm1802_vm12, %v8513_v13 }
 0x60a   : > { %9484 = vmatprep.mubr.msk.bf16.mxu1 %vm1802_vm12, %v13754_v61 }
 0x611   : > { %9485 = vmatmul.mubr.msk.bf16.vlgmr.msra.gmra.mrb[0].mxu1 %vm1802_vm12, %v13755_v37 }
 0x612   : > { %9517 = vmatpush3.bf16.msra.mxu1 %v7432_v10  ;;  %9488 = vmatprep.mubr.msk.bf16.mxu1 %vm1802_vm12, %v13756_v24 }
 0x619   : > { %9489 = vmatmul.mubr.msk.bf16.gmra.mrb[4].mxu1 %vm1802_vm12, %v13757_v0 }
 0x61a   : > { %9492 = vmatprep.mubr.msk.bf16.mxu1 %vm1802_vm12, %v13758_v40 }
 0x621   : > { %9493 = vmatmul.mubr.msk.bf16.gmra.mrb[8].mxu1 %vm1802_vm12, %v13759_v50 }
 0x622   : > { %9496 = vmatprep.mubr.msk.bf16.mxu1 %vm1802_vm12, %v13760_v47 }
 0x629   : > { %9497 = vmatmul.mubr.msk.bf16.gmra.mrb[12].mxu1 %vm1802_vm12, %v13761_v9 }
 0x62a   : > { %9500 = vmatprep.mubr.msk.bf16.mxu1 %vm1802_vm12, %v13762_v29 }
 0x631   : > { %9501 = vmatmul.mubr.msk.bf16.gmra.mrb[16].mxu1 %vm1802_vm12, %v13763_v57 }
 0x632   : > { %9504 = vmatprep.mubr.msk.bf16.mxu1 %vm1802_vm12, %v13764_v31 }
 0x639   : > { %9505 = vmatmul.mubr.msk.bf16.gmra.mrb[20].mxu1 %vm1802_vm12, %v12604_v27  ;;  %v5376_v27 = vsel %vm10357_vm13, %v5371_v33, %v5375_v62 }
 0x63a   : > { %9508 = vmatprep.mubr.msk.bf16.mxu1 %vm1802_vm12, %v12621_v18  ;;  %v5386_v18 = vsel %vm10357_vm13, %v5381_v28, %v5385_v25 }
 0x63b   : > { %v8530_v52 = vcombine.low %v5376_v27, %v5386_v18 }
 0x641   : > { %9509 = vmatmul.mubr.msk.bf16.gmra.mrb[24].mxu1 %vm1802_vm12, %v12661_v42  ;;  %v13766_v42 = vld [vmem:[#allocation18_spill] sm:$0xff] }
 0x642   : > { %9512 = vmatprep.mubr.msk.bf16.mxu1 %vm1802_vm12, %v12997_v5 }
 0x649   : > { %9513 = vmatmul.mubr.msk.bf16.gmra.mrb[28].mxu1 %vm1802_vm12, %v8530_v52 }
 0x64a   : > { %9518 = vmatprep.mubr.msk.bf16.mxu1 %vm1802_vm12, %v12872_v54 }
 0x651   : > { %9519 = vmatmul.mubr.msk.bf16.vlgmr.msra.gmra.mrb[0].mxu1 %vm1802_vm12, %v12887_v51 }
 0x652   : > { %9522 = vmatprep.mubr.msk.bf16.mxu1 %vm1802_vm12, %v12705_v23  ;;  %v13767_v23 = vcombine.low %v13765_v41, %v13766_v42 }
 0x659   : > { %9523 = vmatmul.mubr.msk.bf16.gmra.mrb[4].mxu1 %vm1802_vm12, %v12721_v58 }
 0x65a   : > { %9526 = vmatprep.mubr.msk.bf16.mxu1 %vm1802_vm12, %v12727_v35 }
 0x661   : > { %9527 = vmatmul.mubr.msk.bf16.gmra.mrb[8].mxu1 %vm1802_vm12, %v12736_v39 }
 0x662   : > { %9530 = vmatprep.mubr.msk.bf16.mxu1 %vm1802_vm12, %v12741_v1 }
 0x669   : > { %9531 = vmatmul.mubr.msk.bf16.gmra.mrb[12].mxu1 %vm1802_vm12, %v12757_v7 }
 0x66a   : > { %9534 = vmatprep.mubr.msk.bf16.mxu1 %vm1802_vm12, %v12763_v6 }
 0x671   : > { %9535 = vmatmul.mubr.msk.bf16.gmra.mrb[16].mxu1 %vm1802_vm12, %v12772_v48 }
 0x672   : > { %9538 = vmatprep.mubr.msk.bf16.mxu1 %vm1802_vm12, %v12777_v3 }
 0x679   : > { %9539 = vmatmul.mubr.msk.bf16.gmra.mrb[20].mxu1 %vm1802_vm12, %v12790_v56 }
 0x67a   : > { %9542 = vmatprep.mubr.msk.bf16.mxu1 %vm1802_vm12, %v12796_v11 }
 0x681   : > { %9543 = vmatmul.mubr.msk.bf16.gmra.mrb[24].mxu1 %vm1802_vm12, %v12806_v26 }
 0x682   : > { %9546 = vmatprep.mubr.msk.bf16.mxu1 %vm1802_vm12, %v12822_v16 }
 0x689   : > { %9547 = vmatmul.mubr.msk.bf16.gmra.mrb[28].mxu1 %vm1802_vm12, %v13767_v23 }
 0x724   : > { %v13148_v58 = vpop.f32.mrb[0].mxu1 }
 0x725   : > { %v13150_v35 = vpop.f32.mrb[1].mxu1  ;;  %v7698_v6 = vmul.f32 %v13148_v58, %v13148_v58  ;;  %v7630_v26 = vsel %vm1802_vm12, %v13148_v58, 0.0 }
 0x726   : > { %v7696_v39 = vmul.f32 %v13150_v35, %v13150_v35  ;;  %v13154_v1 = vpop.f32.mrb[2].mxu1  ;;  %v7627_v48 = vsel %vm1802_vm12, %v13150_v35, 0.0 }
 0x727   : > { %v13156_v7 = vpop.f32.mrb[3].mxu1  ;;  %v7699_v16 = vmul.f32 %v13154_v1, %v13154_v1  ;;  %v7731_v37 = vsel %vm1802_vm12, %v7698_v6, 0.0  ;;  %v7632_v24 = vsel %vm1802_vm12, %v13154_v1, 0.0 }
 0x728   : > { %v7628_v3 = vsel %vm1802_vm12, %v13156_v7, 0.0  ;;  %v7697_v56 = vmul.f32 %v13156_v7, %v13156_v7  ;;  %v7728_v14 = vsel %vm1802_vm12, %v7696_v39, 0.0 }
 0x729   : > { %v7629_v11 = vadd.f32 %v7628_v3, %v7627_v48  ;;  %v7733_v9 = vsel %vm1802_vm12, %v7699_v16, 0.0 }
 0x72a   : > { %v7729_v54 = vsel %vm1802_vm12, %v7697_v56, 0.0 }
 0x72b   : > { %v7631_v51 = vadd.f32 %v7630_v26, %v7629_v11  ;;  %v7730_v61 = vadd.f32 %v7729_v54, %v7728_v14 }
 0x72c   : > { %v13175_v0 = vpop.f32.mrb[4].mxu1 }
 0x72d   : > { %v7732_v40 = vadd.f32 %v7731_v37, %v7730_v61  ;;  %v13177_v50 = vpop.f32.mrb[5].mxu1  ;;  %v7633_v47 = vadd.f32 %v7632_v24, %v7631_v51  ;;  %v7702_v44 = vmul.f32 %v13175_v0, %v13175_v0  ;;  %v7638_v38 = vsel %vm1802_vm12, %v13175_v0, 0.0 }
 0x72e   : > { %v7634_v29 = vsel %vm1802_vm12, %v13177_v50, 0.0  ;;  %v7700_v57 = vmul.f32 %v13177_v50, %v13177_v50  ;;  %v13184_v60 = vpop.f32.mrb[6].mxu1 }
 0x72f   : > { %v7635_v20 = vadd.f32 %v7634_v29, %v7633_v47  ;;  %v7734_v59 = vadd.f32 %v7733_v9, %v7732_v40  ;;  %v13186_v31 = vpop.f32.mrb[7].mxu1  ;;  %v7703_v5 = vmul.f32 %v13184_v60, %v13184_v60  ;;  %v7739_v21 = vsel %vm1802_vm12, %v7702_v44, 0.0 }
 0x730   : > { %v7735_v22 = vsel %vm1802_vm12, %v7700_v57, 0.0  ;;  %v7636_v34 = vsel %vm1802_vm12, %v13186_v31, 0.0  ;;  %v7701_v17 = vmul.f32 %v13186_v31, %v13186_v31  ;;  %v7640_v30 = vsel %vm1802_vm12, %v13184_v60, 0.0 }
 0x731   : > { %v7736_v32 = vadd.f32 %v7735_v22, %v7734_v59  ;;  %v7637_v63 = vadd.f32 %v7636_v34, %v7635_v20  ;;  %v7741_v45 = vsel %vm1802_vm12, %v7703_v5, 0.0 }
 0x732   : > { %v7737_v2 = vsel %vm1802_vm12, %v7701_v17, 0.0 }
 0x733   : > { %v7639_v46 = vadd.f32 %v7638_v38, %v7637_v63  ;;  %v7738_v53 = vadd.f32 %v7737_v2, %v7736_v32 }
 0x734   : > { %v13203_v13 = vpop.f32.mrb[8].mxu1 }
 0x735   : > { %v7740_v10 = vadd.f32 %v7739_v21, %v7738_v53  ;;  %v13205_v15 = vpop.f32.mrb[9].mxu1  ;;  %v7641_v19 = vadd.f32 %v7640_v30, %v7639_v46  ;;  %v7706_v49 = vmul.f32 %v13203_v13, %v13203_v13  ;;  %v7646_v18 = vsel %vm1802_vm12, %v13203_v13, 0.0 }
 0x736   : > { %v7642_v4 = vsel %vm1802_vm12, %v13205_v15, 0.0  ;;  %v7704_v43 = vmul.f32 %v13205_v15, %v13205_v15  ;;  %v13212_v8 = vpop.f32.mrb[10].mxu1 }
 0x737   : > { %v7643_v55 = vadd.f32 %v7642_v4, %v7641_v19  ;;  %v7742_v62 = vadd.f32 %v7741_v45, %v7740_v10  ;;  %v13214_v12 = vpop.f32.mrb[11].mxu1  ;;  %v7707_v52 = vmul.f32 %v13212_v8, %v13212_v8  ;;  %v7747_v39 = vsel %vm1802_vm12, %v7706_v49, 0.0 }
 0x738   : > { %v7743_v33 = vsel %vm1802_vm12, %v7704_v43, 0.0  ;;  %v7644_v36 = vsel %vm1802_vm12, %v13214_v12, 0.0  ;;  %v7705_v25 = vmul.f32 %v13214_v12, %v13214_v12  ;;  %v7648_v6 = vsel %vm1802_vm12, %v13212_v8, 0.0 }
 0x739   : > { %v7744_v27 = vadd.f32 %v7743_v33, %v7742_v62  ;;  %v7645_v28 = vadd.f32 %v7644_v36, %v7643_v55  ;;  %v7749_v26 = vsel %vm1802_vm12, %v7707_v52, 0.0 }
 0x73a   : > { %v7745_v41 = vsel %vm1802_vm12, %v7705_v25, 0.0 }
 0x73b   : > { %v7647_v42 = vadd.f32 %v7646_v18, %v7645_v28  ;;  %v7746_v23 = vadd.f32 %v7745_v41, %v7744_v27 }
 0x73c   : > { %v13231_v48 = vpop.f32.mrb[12].mxu1 }
 0x73d   : > { %v7748_v3 = vadd.f32 %v7747_v39, %v7746_v23  ;;  %v13233_v56 = vpop.f32.mrb[13].mxu1  ;;  %v7649_v11 = vadd.f32 %v7648_v6, %v7647_v42  ;;  %v7710_v24 = vmul.f32 %v13231_v48, %v13231_v48  ;;  %v7654_v20 = vsel %vm1802_vm12, %v13231_v48, 0.0 }
 0x73e   : > { %v7650_v14 = vsel %vm1802_vm12, %v13233_v56, 0.0  ;;  %v7708_v16 = vmul.f32 %v13233_v56, %v13233_v56  ;;  %v13240_v54 = vpop.f32.mrb[14].mxu1 }
 0x73f   : > { %v7651_v51 = vadd.f32 %v7650_v14, %v7649_v11  ;;  %v7750_v61 = vadd.f32 %v7749_v26, %v7748_v3  ;;  %v13242_v37 = vpop.f32.mrb[15].mxu1  ;;  %v7711_v59 = vmul.f32 %v13240_v54, %v13240_v54  ;;  %v7755_v17 = vsel %vm1802_vm12, %v7710_v24, 0.0 }
 0x740   : > { %v7751_v40 = vsel %vm1802_vm12, %v7708_v16, 0.0  ;;  %v7652_v47 = vsel %vm1802_vm12, %v13242_v37, 0.0  ;;  %v7709_v9 = vmul.f32 %v13242_v37, %v13242_v37  ;;  %v7656_v32 = vsel %vm1802_vm12, %v13240_v54, 0.0 }
 0x741   : > { %v7752_v29 = vadd.f32 %v7751_v40, %v7750_v61  ;;  %v7653_v57 = vadd.f32 %v7652_v47, %v7651_v51  ;;  %v7757_v46 = vsel %vm1802_vm12, %v7711_v59, 0.0 }
 0x742   : > { %v7753_v44 = vsel %vm1802_vm12, %v7709_v9, 0.0 }
 0x743   : > { %v7655_v22 = vadd.f32 %v7654_v20, %v7653_v57  ;;  %v7754_v34 = vadd.f32 %v7753_v44, %v7752_v29 }
 0x744   : > { %v13259_v63 = vpop.f32.mrb[16].mxu1 }
 0x745   : > { %v7756_v38 = vadd.f32 %v7755_v17, %v7754_v34  ;;  %v13261_v5 = vpop.f32.mrb[17].mxu1  ;;  %v7657_v2 = vadd.f32 %v7656_v32, %v7655_v22  ;;  %v7714_v4 = vmul.f32 %v13259_v63, %v13259_v63  ;;  %v7662_v36 = vsel %vm1802_vm12, %v13259_v63, 0.0 }
 0x746   : > { %v7658_v53 = vsel %vm1802_vm12, %v13261_v5, 0.0  ;;  %v7712_v21 = vmul.f32 %v13261_v5, %v13261_v5  ;;  %v13268_v30 = vpop.f32.mrb[18].mxu1 }
 0x747   : > { %v7659_v10 = vadd.f32 %v7658_v53, %v7657_v2  ;;  %v7758_v19 = vadd.f32 %v7757_v46, %v7756_v38  ;;  %v13270_v45 = vpop.f32.mrb[19].mxu1  ;;  %v7715_v25 = vmul.f32 %v13268_v30, %v13268_v30  ;;  %v7763_v52 = vsel %vm1802_vm12, %v7714_v4, 0.0 }
 0x748   : > { %v7759_v43 = vsel %vm1802_vm12, %v7712_v21, 0.0  ;;  %v7660_v55 = vsel %vm1802_vm12, %v13270_v45, 0.0  ;;  %v7713_v62 = vmul.f32 %v13270_v45, %v13270_v45  ;;  %v7664_v41 = vsel %vm1802_vm12, %v13268_v30, 0.0 }
 0x749   : > { %v7760_v49 = vadd.f32 %v7759_v43, %v7758_v19  ;;  %v7661_v33 = vadd.f32 %v7660_v55, %v7659_v10  ;;  %v7765_v3 = vsel %vm1802_vm12, %v7715_v25, 0.0 }
 0x74a   : > { %v7761_v27 = vsel %vm1802_vm12, %v7713_v62, 0.0 }
 0x74b   : > { %v7663_v28 = vadd.f32 %v7662_v36, %v7661_v33  ;;  %v7762_v18 = vadd.f32 %v7761_v27, %v7760_v49 }
 0x74c   : > { %v13287_v42 = vpop.f32.mrb[20].mxu1 }
 0x74d   : > { %v7764_v23 = vadd.f32 %v7763_v52, %v7762_v18  ;;  %v13289_v39 = vpop.f32.mrb[21].mxu1  ;;  %v7665_v6 = vadd.f32 %v7664_v41, %v7663_v28  ;;  %v7718_v24 = vmul.f32 %v13287_v42, %v13287_v42  ;;  %v7670_v20 = vsel %vm1802_vm12, %v13287_v42, 0.0 }
 0x74e   : > { %v7666_v11 = vsel %vm1802_vm12, %v13289_v39, 0.0  ;;  %v7716_v26 = vmul.f32 %v13289_v39, %v13289_v39  ;;  %v13296_v14 = vpop.f32.mrb[22].mxu1 }
 0x74f   : > { %v7667_v16 = vadd.f32 %v7666_v11, %v7665_v6  ;;  %v7766_v51 = vadd.f32 %v7765_v3, %v7764_v23  ;;  %v13298_v61 = vpop.f32.mrb[23].mxu1  ;;  %v7719_v59 = vmul.f32 %v13296_v14, %v13296_v14  ;;  %v7771_v17 = vsel %vm1802_vm12, %v7718_v24, 0.0 }
 0x750   : > { %v7767_v40 = vsel %vm1802_vm12, %v7716_v26, 0.0  ;;  %v7668_v47 = vsel %vm1802_vm12, %v13298_v61, 0.0  ;;  %v7717_v9 = vmul.f32 %v13298_v61, %v13298_v61  ;;  %v7672_v32 = vsel %vm1802_vm12, %v13296_v14, 0.0 }
 0x751   : > { %v7768_v29 = vadd.f32 %v7767_v40, %v7766_v51  ;;  %v7669_v57 = vadd.f32 %v7668_v47, %v7667_v16  ;;  %v7773_v21 = vsel %vm1802_vm12, %v7719_v59, 0.0 }
 0x752   : > { %v7769_v44 = vsel %vm1802_vm12, %v7717_v9, 0.0 }
 0x753   : > { %v7671_v22 = vadd.f32 %v7670_v20, %v7669_v57  ;;  %v7770_v34 = vadd.f32 %v7769_v44, %v7768_v29 }
 0x754   : > { %v13315_v38 = vpop.f32.mrb[24].mxu1 }
 0x755   : > { %v7772_v2 = vadd.f32 %v7771_v17, %v7770_v34  ;;  %v13317_v46 = vpop.f32.mrb[25].mxu1  ;;  %v7673_v53 = vadd.f32 %v7672_v32, %v7671_v22  ;;  %v7722_v49 = vmul.f32 %v13315_v38, %v13315_v38  ;;  %v7678_v18 = vsel %vm1802_vm12, %v13315_v38, 0.0 }
 0x756   : > { %v7674_v10 = vsel %vm1802_vm12, %v13317_v46, 0.0  ;;  %v7720_v19 = vmul.f32 %v13317_v46, %v13317_v46  ;;  %v13324_v4 = vpop.f32.mrb[26].mxu1 }
 0x757   : > { %v7675_v43 = vadd.f32 %v7674_v10, %v7673_v53  ;;  %v7774_v55 = vadd.f32 %v7773_v21, %v7772_v2  ;;  %v13326_v62 = vpop.f32.mrb[27].mxu1  ;;  %v7723_v52 = vmul.f32 %v13324_v4, %v13324_v4  ;;  %v7779_v3 = vsel %vm1802_vm12, %v7722_v49, 0.0 }
 0x758   : > { %v7775_v33 = vsel %vm1802_vm12, %v7720_v19, 0.0  ;;  %v7676_v36 = vsel %vm1802_vm12, %v13326_v62, 0.0  ;;  %v7721_v25 = vmul.f32 %v13326_v62, %v13326_v62  ;;  %v7680_v11 = vsel %vm1802_vm12, %v13324_v4, 0.0 }
 0x759   : > { %v7776_v27 = vadd.f32 %v7775_v33, %v7774_v55  ;;  %v7677_v28 = vadd.f32 %v7676_v36, %v7675_v43  ;;  %v7781_v40 = vsel %vm1802_vm12, %v7723_v52, 0.0 }
 0x75a   : > { %v7777_v41 = vsel %vm1802_vm12, %v7721_v25, 0.0 }
 0x75b   : > { %v7679_v23 = vadd.f32 %v7678_v18, %v7677_v28  ;;  %v7778_v6 = vadd.f32 %v7777_v41, %v7776_v27 }
 0x75c   : > { %v13343_v26 = vpop.f32.mrb[28].mxu1 }
 0x75d   : > { %v7780_v16 = vadd.f32 %v7779_v3, %v7778_v6  ;;  %v13345_v51 = vpop.f32.mrb[29].mxu1  ;;  %v7681_v24 = vadd.f32 %v7680_v11, %v7679_v23  ;;  %v7726_v44 = vmul.f32 %v13343_v26, %v13343_v26  ;;  %v7686_v53 = vsel %vm1802_vm12, %v13343_v26, 0.0 }
 0x75e   : > { %v7682_v47 = vsel %vm1802_vm12, %v13345_v51, 0.0  ;;  %v7724_v9 = vmul.f32 %v13345_v51, %v13345_v51  ;;  %v13352_v29 = vpop.f32.mrb[30].mxu1 }
 0x75f   : > { %v7683_v57 = vadd.f32 %v7682_v47, %v7681_v24  ;;  %v7782_v20 = vadd.f32 %v7781_v40, %v7780_v16  ;;  %v13354_v59 = vpop.f32.mrb[31].mxu1  ;;  %v7727_v21 = vmul.f32 %v13352_v29, %v13352_v29  ;;  %v7787_v55 = vsel %vm1802_vm12, %v7726_v44, 0.0 }
 0x760   : > { %v7783_v22 = vsel %vm1802_vm12, %v7724_v9, 0.0  ;;  %v7684_v34 = vsel %vm1802_vm12, %v13354_v59, 0.0  ;;  %v7725_v17 = vmul.f32 %v13354_v59, %v13354_v59  ;;  %v7688_v49 = vsel %vm1802_vm12, %v13352_v29, 0.0 }
 0x761   : > { %v7784_v32 = vadd.f32 %v7783_v22, %v7782_v20  ;;  %v7685_v2 = vadd.f32 %v7684_v34, %v7683_v57  ;;  %v7789_v25 = vsel %vm1802_vm12, %v7727_v21, 0.0 }
 0x762   : > { %v7785_v10 = vsel %vm1802_vm12, %v7725_v17, 0.0 }
 0x763   : > { %v7687_v19 = vadd.f32 %v7686_v53, %v7685_v2  ;;  %v7786_v43 = vadd.f32 %v7785_v10, %v7784_v32 }
 0x765   : > { %v7689_v33 = vadd.f32 %v7688_v49, %v7687_v19  ;;  %v7788_v36 = vadd.f32 %v7787_v55, %v7786_v43 }
 0x767   : > { %v7690_v27 = vrot.slane %v7689_v33, 4  ;;  %v7790_v28 = vadd.f32 %v7789_v25, %v7788_v36 }
 0x769   : > { %v7691_v18 = vadd.f32 %v7690_v27, %v7689_v33  ;;  %v7791_v52 = vrot.slane %v7790_v28, 4 }
 0x76b   : > { %v7692_v41 = vrot.slane %v7691_v18, 2  ;;  %v7792_v23 = vadd.f32 %v7791_v52, %v7790_v28 }
 0x76d   : > { %v7693_v6 = vadd.f32 %v7692_v41, %v7691_v18  ;;  %v7793_v3 = vrot.slane %v7792_v23, 2 }
 0x76f   : > { %v7694_v11 = vrot.slane %v7693_v6, 1  ;;  %v7794_v16 = vadd.f32 %v7793_v3, %v7792_v23 }
 0x771   : > { %v7695_v24 = vadd.f32 %v7694_v11, %v7693_v6  ;;  %v7795_v40 = vrot.slane %v7794_v16, 1 }
 0x773   : > { %v7796_v47 = vadd.f32 %v7795_v40, %v7794_v16  ;;  %v13372_v9 = vmul.f32 0.00390625, %v7695_v24 }
 0x775   : > { %v7798_v57 = vmul.f32 0.00390625, %v7796_v47  ;;  %v7799_v20 = vmul.f32 %v13372_v9, %v13372_v9  ;;  %v7802_v44 = vsub.f32 %v13150_v35, %v13372_v9  ;;  %v7803_v22 = vsub.f32 %v13156_v7, %v13372_v9 }
 0x776   : > { %v7804_v34 = vsub.f32 %v13148_v58, %v13372_v9  ;;  %v7805_v17 = vsub.f32 %v13154_v1, %v13372_v9  ;;  %v7806_v32 = vsub.f32 %v13177_v50, %v13372_v9  ;;  %v7807_v2 = vsub.f32 %v13186_v31, %v13372_v9 }
 0x777   : > { %v7800_v53 = vsub.f32 %v7798_v57, %v7799_v20  ;;  %v7808_v21 = vsub.f32 %v13175_v0, %v13372_v9  ;;  %v7809_v35 = vsub.f32 %v13184_v60, %v13372_v9  ;;  %v7810_v7 = vsub.f32 %v13205_v15, %v13372_v9 }
 0x778   : > { %v7811_v58 = vsub.f32 %v13214_v12, %v13372_v9  ;;  %v7812_v1 = vsub.f32 %v13203_v13, %v13372_v9  ;;  %v7813_v50 = vsub.f32 %v13212_v8, %v13372_v9  ;;  %v7814_v31 = vsub.f32 %v13233_v56, %v13372_v9 }
 0x779   : > { %v7801_v10 = vmax.f32 %v7800_v53, 0.0  ;;  %v7815_v0 = vsub.f32 %v13242_v37, %v13372_v9  ;;  %v7816_v60 = vsub.f32 %v13231_v48, %v13372_v9  ;;  %v7817_v15 = vsub.f32 %v13240_v54, %v13372_v9  ;;  %v10140_v53 = vld [vmem:[%s10225_s21 + $0x8] sm:$0xff] }
 0x77a   : > { %v7818_v12 = vsub.f32 %v13261_v5, %v13372_v9  ;;  %v7819_v13 = vsub.f32 %v13270_v45, %v13372_v9  ;;  %v7820_v8 = vsub.f32 %v13259_v63, %v13372_v9  ;;  %v7821_v56 = vsub.f32 %v13268_v30, %v13372_v9 }
 0x77b   : > { %v7822_v37 = vsub.f32 %v13289_v39, %v13372_v9  ;;  %v7823_v48 = vsub.f32 %v13298_v61, %v13372_v9  ;;  %v7824_v54 = vsub.f32 %v13287_v42, %v13372_v9  ;;  %v7825_v5 = vsub.f32 %v13296_v14, %v13372_v9 }
 0x77c   : > { %v7826_v45 = vsub.f32 %v13317_v46, %v13372_v9  ;;  %v7827_v63 = vsub.f32 %v13326_v62, %v13372_v9  ;;  %v7828_v30 = vsub.f32 %v13315_v38, %v13372_v9  ;;  %v7829_v39 = vsub.f32 %v13324_v4, %v13372_v9 }
 0x77d   : > { %v7830_v61 = vsub.f32 %v13345_v51, %v13372_v9  ;;  %v7831_v42 = vsub.f32 %v13354_v59, %v13372_v9  ;;  %v7832_v14 = vsub.f32 %v13343_v26, %v13372_v9  ;;  %v7833_v46 = vsub.f32 %v13352_v29, %v13372_v9 }
 0x77e   : > { %v7834_v19 = vadd.f32 1e-05, %v7801_v10  ;;  %v10144_v10 = vld [vmem:[%s10225_s21 + $0x28] sm:$0xff] }
 0x780   : > { %10110 = vrsqrt.f32 %v7834_v19  ;;  %v10154_v19 = vld [vmem:[%s10225_s21 + $0x78] sm:$0xff] }
 0x78a   : > { %v10111_v62 = vpop.eup %10110 }
 0x78b   : > { %v7836_v43 = vmul.f32 %v10111_v62, %v7802_v44  ;;  %v7837_v38 = vmul.f32 %v10111_v62, %v7803_v22  ;;  %v7838_v55 = vmul.f32 %v10111_v62, %v7804_v34  ;;  %v7839_v49 = vmul.f32 %v10111_v62, %v7805_v17 }
 0x78c   : > { %v7840_v4 = vmul.f32 %v10111_v62, %v7806_v32  ;;  %v7841_v33 = vmul.f32 %v10111_v62, %v7807_v2  ;;  %v7842_v36 = vmul.f32 %v10111_v62, %v7808_v21  ;;  %v7843_v51 = vmul.f32 %v10111_v62, %v7809_v35  ;;  %v10139_v32 = vld [vmem:[%s10225_s21] sm:$0xff]  ;;  %v10141_v35 = vld [vmem:[%s10225_s21 + $0x10] sm:$0xff] }
 0x78d   : > { %v7844_v25 = vmul.f32 %v10111_v62, %v7810_v7  ;;  %v7845_v27 = vmul.f32 %v10111_v62, %v7811_v58  ;;  %v7846_v59 = vmul.f32 %v10111_v62, %v7812_v1  ;;  %v7847_v28 = vmul.f32 %v10111_v62, %v7813_v50  ;;  %v10142_v58 = vld [vmem:[%s10225_s21 + $0x18] sm:$0xff]  ;;  %v10143_v50 = vld [vmem:[%s10225_s21 + $0x20] sm:$0xff] }
 0x78e   : > { %v7848_v18 = vmul.f32 %v10111_v62, %v7814_v31  ;;  %v7849_v26 = vmul.f32 %v10111_v62, %v7815_v0  ;;  %v7850_v52 = vmul.f32 %v10111_v62, %v7816_v60  ;;  %v7851_v29 = vmul.f32 %v10111_v62, %v7817_v15  ;;  %v10145_v60 = vld [vmem:[%s10225_s21 + $0x30] sm:$0xff] }
 0x78f   : > { %v7852_v41 = vmul.f32 %v10111_v62, %v7818_v12  ;;  %v7853_v23 = vmul.f32 %v10111_v62, %v7819_v13  ;;  %v7854_v6 = vmul.f32 %v10111_v62, %v7820_v8  ;;  %v7855_v3 = vmul.f32 %v10111_v62, %v7821_v56  ;;  %v10146_v12 = vld [vmem:[%s10225_s21 + $0x38] sm:$0xff]  ;;  %v10147_v8 = vld [vmem:[%s10225_s21 + $0x40] sm:$0xff] }
 0x790   : > { %v13440_v11 = vmul.f32 %v10111_v62, %v7822_v37  ;;  %v13442_v16 = vmul.f32 %v10111_v62, %v7823_v48  ;;  %v13444_v24 = vmul.f32 %v10111_v62, %v7824_v54  ;;  %v13446_v40 = vmul.f32 %v10111_v62, %v7825_v5  ;;  %v10148_v37 = vld [vmem:[%s10225_s21 + $0x48] sm:$0xff]  ;;  %v10149_v54 = vld [vmem:[%s10225_s21 + $0x50] sm:$0xff] }
 0x791   : > { %v13448_v47 = vmul.f32 %v10111_v62, %v7826_v45  ;;  %v13450_v9 = vmul.f32 %v10111_v62, %v7827_v63  ;;  %v13452_v57 = vmul.f32 %v10111_v62, %v7828_v30  ;;  %v13454_v20 = vmul.f32 %v10111_v62, %v7829_v39  ;;  %v10150_v45 = vld [vmem:[%s10225_s21 + $0x58] sm:$0xff]  ;;  %v10151_v30 = vld [vmem:[%s10225_s21 + $0x60] sm:$0xff] }
 0x792   : > { %v13463_v44 = vmul.f32 %v10111_v62, %v7830_v61  ;;  %v13465_v22 = vmul.f32 %v10111_v62, %v7831_v42  ;;  %v13467_v34 = vmul.f32 %v10111_v62, %v7832_v14  ;;  %v13469_v17 = vmul.f32 %v10111_v62, %v7833_v46  ;;  %v10152_v61 = vld [vmem:[%s10225_s21 + $0x68] sm:$0xff]  ;;  %v10153_v14 = vld [vmem:[%s10225_s21 + $0x70] sm:$0xff] }
 0x793   : > { %v7868_v2 = vadd.f32 %v10139_v32, %v7836_v43  ;;  %v7869_v21 = vadd.f32 %v10140_v53, %v7837_v38  ;;  %v7870_v7 = vadd.f32 %v10141_v35, %v7838_v55  ;;  %v7871_v1 = vadd.f32 %v10142_v58, %v7839_v49  ;;  %v10155_v43 = vld [vmem:[%s10225_s21 + $0x80] sm:$0xff]  ;;  %v10156_v55 = vld [vmem:[%s10225_s21 + $0x88] sm:$0xff]  ;;  %v10169_v32 = vld [vmem:[%s10225_s21 + $0xf0] sm:$0xff] }
 0x794   : > { %v7872_v31 = vadd.f32 %v10143_v50, %v7840_v4  ;;  %v7873_v0 = vadd.f32 %v10144_v10, %v7841_v33  ;;  %v7874_v15 = vadd.f32 %v10145_v60, %v7842_v36  ;;  %v7875_v13 = vadd.f32 %v10146_v12, %v7843_v51  ;;  %v10157_v4 = vld [vmem:[%s10225_s21 + $0x90] sm:$0xff]  ;;  %v10158_v36 = vld [vmem:[%s10225_s21 + $0x98] sm:$0xff] }
 0x795   : > { %v7876_v56 = vadd.f32 %v10147_v8, %v7844_v25  ;;  %v7877_v48 = vadd.f32 %v10148_v37, %v7845_v27  ;;  %v7878_v5 = vadd.f32 %v10149_v54, %v7846_v59  ;;  %v7879_v63 = vadd.f32 %v10150_v45, %v7847_v28  ;;  %7900 = vst.msk [vmem:[%s13461_s10] sm:$0xff] %vm1802_vm12, %v7868_v2  ;;  %v10159_v25 = vld [vmem:[%s10225_s21 + $0xa0] sm:$0xff]  ;;  %v10160_v59 = vld [vmem:[%s10225_s21 + $0xa8] sm:$0xff]  ;;  %v10170_v53 = vld [vmem:[%s10225_s21 + $0xf8] sm:$0xff] }
 0x796   : > { %7901 = vst.msk [vmem:[%s13461_s10 + $0x8] sm:$0xff] %vm1802_vm12, %v7869_v21  ;;  %7902 = vst.msk [vmem:[%s13461_s10 + $0x10] sm:$0xff] %vm1802_vm12, %v7870_v7  ;;  %v7880_v39 = vadd.f32 %v10151_v30, %v7848_v18  ;;  %v7881_v42 = vadd.f32 %v10152_v61, %v7849_v26  ;;  %v7882_v46 = vadd.f32 %v10153_v14, %v7850_v52  ;;  %v10161_v18 = vld [vmem:[%s10225_s21 + $0xb0] sm:$0xff]  ;;  %v10162_v52 = vld [vmem:[%s10225_s21 + $0xb8] sm:$0xff] }
 0x797   : > { %7903 = vst.msk [vmem:[%s13461_s10 + $0x18] sm:$0xff] %vm1802_vm12, %v7871_v1  ;;  %v7883_v62 = vadd.f32 %v10154_v19, %v7851_v29  ;;  %7904 = vst.msk [vmem:[%s13461_s10 + $0x20] sm:$0xff] %vm1802_vm12, %v7872_v31  ;;  %v7884_v38 = vadd.f32 %v10155_v43, %v7852_v41  ;;  %v7885_v49 = vadd.f32 %v10156_v55, %v7853_v23  ;;  %v10163_v41 = vld [vmem:[%s10225_s21 + $0xc0] sm:$0xff] }
 0x798   : > { %7905 = vst.msk [vmem:[%s13461_s10 + $0x28] sm:$0xff] %vm1802_vm12, %v7873_v0  ;;  %7906 = vst.msk [vmem:[%s13461_s10 + $0x30] sm:$0xff] %vm1802_vm12, %v7874_v15  ;;  %v7886_v33 = vadd.f32 %v10157_v4, %v7854_v6  ;;  %v7887_v51 = vadd.f32 %v10158_v36, %v7855_v3  ;;  %v7888_v27 = vadd.f32 %v10159_v25, %v13440_v11  ;;  %v10164_v6 = vld [vmem:[%s10225_s21 + $0xc8] sm:$0xff]  ;;  %v10165_v11 = vld [vmem:[%s10225_s21 + $0xd0] sm:$0xff] }
 0x799   : > { %7907 = vst.msk [vmem:[%s13461_s10 + $0x38] sm:$0xff] %vm1802_vm12, %v7875_v13  ;;  %7908 = vst.msk [vmem:[%s13461_s10 + $0x40] sm:$0xff] %vm1802_vm12, %v7876_v56  ;;  %v7889_v28 = vadd.f32 %v10160_v59, %v13442_v16  ;;  %v7890_v26 = vadd.f32 %v10161_v18, %v13444_v24  ;;  %v7891_v29 = vadd.f32 %v10162_v52, %v13446_v40  ;;  %v10166_v24 = vld [vmem:[%s10225_s21 + $0xd8] sm:$0xff] }
 0x79a   : > { %7909 = vst.msk [vmem:[%s13461_s10 + $0x48] sm:$0xff] %vm1802_vm12, %v7877_v48  ;;  %7910 = vst.msk [vmem:[%s13461_s10 + $0x50] sm:$0xff] %vm1802_vm12, %v7878_v5  ;;  %v7892_v23 = vadd.f32 %v10163_v41, %v13448_v47  ;;  %v7893_v3 = vadd.f32 %v10164_v6, %v13450_v9  ;;  %v7894_v16 = vadd.f32 %v10165_v11, %v13452_v57  ;;  %v10167_v47 = vld [vmem:[%s10225_s21 + $0xe0] sm:$0xff]  ;;  %v10168_v57 = vld [vmem:[%s10225_s21 + $0xe8] sm:$0xff] }
 0x79b   : > { %7911 = vst.msk [vmem:[%s13461_s10 + $0x58] sm:$0xff] %vm1802_vm12, %v7879_v63  ;;  %7912 = vst.msk [vmem:[%s13461_s10 + $0x60] sm:$0xff] %vm1802_vm12, %v7880_v39  ;;  %v7895_v40 = vadd.f32 %v10166_v24, %v13454_v20  ;;  %v7896_v9 = vadd.f32 %v10167_v47, %v13463_v44  ;;  %v7897_v20 = vadd.f32 %v10168_v57, %v13465_v22 }
 0x79c   : > { %7913 = vst.msk [vmem:[%s13461_s10 + $0x68] sm:$0xff] %vm1802_vm12, %v7881_v42  ;;  %7914 = vst.msk [vmem:[%s13461_s10 + $0x70] sm:$0xff] %vm1802_vm12, %v7882_v46  ;;  %v7898_v2 = vadd.f32 %v10169_v32, %v13467_v34  ;;  %v7899_v21 = vadd.f32 %v10170_v53, %v13469_v17 }
 0x79d   : > { %7915 = vst.msk [vmem:[%s13461_s10 + $0x78] sm:$0xff] %vm1802_vm12, %v7883_v62  ;;  %7916 = vst.msk [vmem:[%s13461_s10 + $0x80] sm:$0xff] %vm1802_vm12, %v7884_v38 }
 0x79e   : > { %7917 = vst.msk [vmem:[%s13461_s10 + $0x88] sm:$0xff] %vm1802_vm12, %v7885_v49  ;;  %7918 = vst.msk [vmem:[%s13461_s10 + $0x90] sm:$0xff] %vm1802_vm12, %v7886_v33 }
 0x79f   : > { %7919 = vst.msk [vmem:[%s13461_s10 + $0x98] sm:$0xff] %vm1802_vm12, %v7887_v51  ;;  %7920 = vst.msk [vmem:[%s13461_s10 + $0xa0] sm:$0xff] %vm1802_vm12, %v7888_v27 }
 0x7a0   : > { %7921 = vst.msk [vmem:[%s13461_s10 + $0xa8] sm:$0xff] %vm1802_vm12, %v7889_v28  ;;  %7922 = vst.msk [vmem:[%s13461_s10 + $0xb0] sm:$0xff] %vm1802_vm12, %v7890_v26 }
 0x7a1   : > { %7923 = vst.msk [vmem:[%s13461_s10 + $0xb8] sm:$0xff] %vm1802_vm12, %v7891_v29  ;;  %7924 = vst.msk [vmem:[%s13461_s10 + $0xc0] sm:$0xff] %vm1802_vm12, %v7892_v23 }
 0x7a2   : > { %7925 = vst.msk [vmem:[%s13461_s10 + $0xc8] sm:$0xff] %vm1802_vm12, %v7893_v3  ;;  %7926 = vst.msk [vmem:[%s13461_s10 + $0xd0] sm:$0xff] %vm1802_vm12, %v7894_v16 }
 0x7a3   : > { %7927 = vst.msk [vmem:[%s13461_s10 + $0xd8] sm:$0xff] %vm1802_vm12, %v7895_v40  ;;  %7928 = vst.msk [vmem:[%s13461_s10 + $0xe0] sm:$0xff] %vm1802_vm12, %v7896_v9 }
 0x7a4   : > { %7929 = vst.msk [vmem:[%s13461_s10 + $0xe8] sm:$0xff] %vm1802_vm12, %v7897_v20  ;;  %7930 = vst.msk [vmem:[%s13461_s10 + $0xf0] sm:$0xff] %vm1802_vm12, %v7898_v2 }
 0x7a5   : > { %7931 = vst.msk [vmem:[%s13461_s10 + $0xf8] sm:$0xff] %vm1802_vm12, %v7899_v21 }
 0x7a6 PF: > { %s13_s12 = sadd.s32 1, %s10177_s12  }
 0x7a7   : > { %p10_p4 = scmp.ge.s32.totalorder %s13_s12, 4  }
 0x7a9   :  { %12 = sbr.rel (!%p10_p4) target bundleno = 1 (0x1), region = 64 }

</bundles_post_ra>
